<compile_context>
chip_gen: v7x
topology: tpu7x:2x2x1
jax: 0.10.0
libtpu: 0.0.40
codegen_flags: <defaults>
</compile_context>

<pallas_src>
import functools

import jax
import jax.numpy as jnp
from jax import lax
from jax.experimental import pallas as pl
from jax.experimental.pallas import tpu as pltpu

EPS = 1e-15


def _round_up(v, m):
    return ((v + m - 1) // m) * m


def gmm_resblock_kernel(x_ref, g_ref, root_ref, bias_ref, invdeg_ref,
                        mu_ref, isig_ref,                     # SMEM (K,) scalars
                        src_ref, dst_ref, ea_ref,             # per-edge-block streams
                        o_ref,                                # output
                        xg_sc, rootx_sc, acc_sc,              # VMEM scratch
                        *, k_size, cp, te, np_pad, add_res):
    """Fused GMMConv (+root, +bias) + mean aggregation + residual + SiLU.

    Grid: one reduction axis over edge blocks.  Step 0 computes xg = x @ g (bf16) and
    x @ root (f32) for all nodes into persistent VMEM scratch.  Each step builds the
    gather one-hot S (TE, NP) and the scatter one-hot T (NP, TE) from the streamed
    src/dst index blocks with broadcasted_iota, folds the Gaussian-mixture weight of
    kernel k into S, and runs both gather and scatter on the MXU.  The 1/deg mean,
    root transform, bias, residual and SiLU run on the last step.
    """
    e_blk = pl.program_id(0)

    @pl.when(e_blk == 0)
    def _init():
        xg_sc[...] = jnp.dot(x_ref[...], g_ref[...],
                             preferred_element_type=jnp.float32).astype(jnp.bfloat16)
        rootx_sc[...] = jnp.dot(x_ref[...], root_ref[...],
                                preferred_element_type=jnp.float32)
        acc_sc[...] = jnp.zeros_like(acc_sc)

    src = src_ref[...]                                    # (TE, 1) int32
    dst = dst_ref[...]                                    # (1, TE) int32
    ea = ea_ref[...]                                      # (TE, 1) f32 pseudo-coords

    # Gather one-hot: S[e, n] = (n == src[e]).  Exact 0/1 in bf16.
    node_cols = lax.broadcasted_iota(jnp.int32, (te, np_pad), 1)
    s_onehot = (node_cols == src).astype(jnp.bfloat16)    # (TE, NP)

    # Fold the per-kernel Gaussian weight into the gather one-hot: the MXU then does
    # gather + weighting + sum over the K kernels in K small matmuls.
    msg = None
    for k in range(k_size):                               # K is tiny & static (3)
        d = ea - mu_ref[k]                                # SMEM scalar broadcast
        w = jnp.exp(-0.5 * d * d * isig_ref[k])           # (TE, 1) f32
        s_k = s_onehot * w.astype(jnp.bfloat16)           # weighted gather one-hot
        term = jnp.dot(s_k, xg_sc[:, k * cp:(k + 1) * cp],
                       preferred_element_type=jnp.float32)  # (TE, CP) f32
        msg = term if msg is None else msg + term

    # Scatter one-hot: T[n, e] = (n == dst[e]); padded edges carry dst = -1 so their
    # column is all zero and contributes nothing.
    node_rows = lax.broadcasted_iota(jnp.int32, (np_pad, te), 0)
    t_onehot = (node_rows == dst).astype(jnp.bfloat16)    # (NP, TE)
    # NOTE: msg is rounded to bf16 for the scatter matmul (part of the 5e-2 tol).
    acc_sc[...] += jnp.dot(t_onehot, msg.astype(jnp.bfloat16),
                           preferred_element_type=jnp.float32)

    # --- epilogue on the last edge block ---
    @pl.when(e_blk == pl.num_programs(0) - 1)
    def _finish():
        out = acc_sc[...] * invdeg_ref[...]               # mean aggregation (f32 1/deg)
        out = out + rootx_sc[...] + bias_ref[...]
        # dropout == identity in eval mode.
        if add_res:
            out = out + x_ref[...].astype(jnp.float32)    # Identity residual (bf16 x)
        o_ref[...] = (out * jax.nn.sigmoid(out)).astype(o_ref.dtype)   # SiLU


def gmm_resblock(x, edge_index, edge_attr, params, *, kernel_size=3, add_res=True,
                 edge_tile=256):
    """Plain-JAX glue: pad/cast operands, build edge-index streams, call the kernel."""
    N, C = x.shape
    E = edge_index.shape[1]
    src = edge_index[0].astype(jnp.int32)
    dst = edge_index[1].astype(jnp.int32)
    K = kernel_size

    CP = _round_up(C, 128)                    # lane-dense channel pad
    NP = _round_up(N, 128)                    # lane-dense node pad (one-hot lane dim)
    TE = edge_tile                            # edge block (multiple of 128; 128 on v5e)
    EP = _round_up(E, TE)

    # --- bf16 MXU operands, padded lane-dense ---
    x_p = jnp.zeros((NP, CP), jnp.bfloat16).at[:N, :C].set(x.astype(jnp.bfloat16))
    g = params["g"].astype(jnp.bfloat16)                       # (C, K*C)
    g_p = jnp.zeros((CP, K * CP), jnp.bfloat16)
    for k in range(K):                                         # place each k block at k*CP
        g_p = g_p.at[:C, k * CP:k * CP + C].set(g[:, k * C:(k + 1) * C])
    root_p = jnp.zeros((CP, CP), jnp.bfloat16).at[:C, :C].set(
        params["root"].astype(jnp.bfloat16))
    bias_p = jnp.zeros((1, CP), jnp.float32).at[0, :C].set(
        params["bias"].astype(jnp.float32))

    mu_s = params["mu"].reshape(K).astype(jnp.float32)          # (K,) SMEM scalars
    isig_s = 1.0 / (params["sigma"].reshape(K).astype(jnp.float32) ** 2 + EPS)

    # --- edges: index/attr streams only (no dense N x E one-hot on the host) ---
    src_p = jnp.zeros((EP, 1), jnp.int32).at[:E, 0].set(src)    # padded edges -> node 0
    dst_p = jnp.full((1, EP), -1, jnp.int32).at[0, :E].set(dst)  # -1 => zero column
    ea_p = jnp.zeros((EP, 1), jnp.float32).at[:E, :].set(edge_attr.astype(jnp.float32))

    deg = jnp.zeros((NP,), jnp.float32).at[dst].add(1.0)
    inv_deg = (1.0 / jnp.maximum(deg, 1.0)).reshape(NP, 1)      # mean rescale, f32

    nblk = EP // TE
    kern = functools.partial(gmm_resblock_kernel, k_size=K, cp=CP, te=TE,
                             np_pad=NP, add_res=add_res)

    grid_spec = pltpu.PrefetchScalarGridSpec(
        num_scalar_prefetch=0,
        grid=(nblk,),
        in_specs=[
            pl.BlockSpec((NP, CP), lambda e: (0, 0)),            # x (resident)
            pl.BlockSpec((CP, K * CP), lambda e: (0, 0)),        # g (resident)
            pl.BlockSpec((CP, CP), lambda e: (0, 0)),            # root (resident)
            pl.BlockSpec((1, CP), lambda e: (0, 0)),             # bias
            pl.BlockSpec((NP, 1), lambda e: (0, 0)),             # 1/deg (f32)
            pl.BlockSpec(memory_space=pltpu.MemorySpace.SMEM),   # mu     (K,)
            pl.BlockSpec(memory_space=pltpu.MemorySpace.SMEM),   # 1/sig2 (K,)
            pl.BlockSpec((TE, 1), lambda e: (e, 0)),             # src index block
            pl.BlockSpec((1, TE), lambda e: (0, e)),             # dst index block
            pl.BlockSpec((TE, 1), lambda e: (e, 0)),             # edge_attr block
        ],
        out_specs=pl.BlockSpec((NP, CP), lambda e: (0, 0)),
        scratch_shapes=[
            pltpu.VMEM((NP, K * CP), jnp.bfloat16),   # xg = x @ g (bf16, persistent)
            pltpu.VMEM((NP, CP), jnp.float32),        # x @ root (persistent)
            pltpu.VMEM((NP, CP), jnp.float32),        # per-node f32 accumulator
        ],
    )

    out = pl.pallas_call(
        kern,
        out_shape=jax.ShapeDtypeStruct((NP, CP), jnp.float32),
        grid_spec=grid_spec,
        compiler_params=pltpu.CompilerParams(
            dimension_semantics=("arbitrary",),        # edge axis is a reduction
            # Fits the v7x 64 MiB budget with headroom; raise (<= 48 MiB on v7x,
            # more on v5e/v6e) only if node residency needs it for large graphs.
            vmem_limit_bytes=32 * 1024 * 1024),
    )(x_p, g_p, root_p, bias_p, inv_deg, mu_s, isig_s, src_p, dst_p, ea_p)
    return out[:N, :C]


def gmm_resblock_ref(x, edge_index, edge_attr, params, *, kernel_size=3, add_res=True):
    """Pure-JAX f32 reference (scatter-based), mirrors PyG GMMConv (aggr='mean')."""
    N, C = x.shape
    src, dst = edge_index[0], edge_index[1]
    g, root, bias, mu, sigma = (params["g"], params["root"], params["bias"],
                                params["mu"], params["sigma"])
    xg = x @ g                                                            # (N, K*C)
    xj = xg[src]                                                          # (E, K*C)
    gauss = jnp.exp(-0.5 * (edge_attr - mu.reshape(1, kernel_size)) ** 2
                    / (sigma.reshape(1, kernel_size) ** 2 + EPS))         # (E, K)
    msg = (xj.reshape(-1, kernel_size, C) * gauss[:, :, None]).sum(axis=1)
    summed = jnp.zeros((N, C), jnp.float32).at[dst].add(msg)
    deg = jnp.zeros((N,), jnp.float32).at[dst].add(1.0)
    agg = summed / jnp.maximum(deg, 1.0)[:, None]
    out = agg + x @ root + bias[None, :]
    if add_res:
        out = out + x
    return jax.nn.silu(out)


if __name__ == "__main__":
    # Small deterministic problem (2 edge blocks at TE=256, including padded edges).
    N, C, E, K = 64, 16, 500, 3   # nodes, channels (in_dim == out_dim), edges, kernel_size
    key = jax.random.PRNGKey(0)
    kx, ks, kd, ka, kg, kr, kb, km, ksg = jax.random.split(key, 9)

    x = jax.random.normal(kx, (N, C), jnp.float32)
    src = jax.random.randint(ks, (E,), 0, N)
    dst = jax.random.randint(kd, (E,), 0, N)
    edge_index = jnp.stack([src, dst], axis=0)                            # (2, E)
    edge_attr = jax.random.uniform(ka, (E, 1), jnp.float32)               # pseudo-coords, dim=1

    # GMMConv parameters (shapes as in torch_geometric.nn.GMMConv):
    params = {
        "g":    jax.random.normal(kg, (C, K * C), jnp.float32) * 0.1,     # (in, K*out)
        "root": jax.random.normal(kr, (C, C), jnp.float32) * 0.1,         # (in, out)
        "bias": jax.random.normal(kb, (C,), jnp.float32) * 0.1,           # (out,)
        "mu":    jax.random.normal(km, (K, 1), jnp.float32),              # (K, dim)
        "sigma": jax.random.uniform(ksg, (K, 1), jnp.float32, 0.5, 1.5),  # (K, dim)
    }

    out = gmm_resblock(x, edge_index, edge_attr, params,
                       kernel_size=K, add_res=True)
    out = jax.block_until_ready(out)

    ref = gmm_resblock_ref(x, edge_index, edge_attr, params,
                           kernel_size=K, add_res=True)
    assert out.shape == (N, C)
    # bf16 matmul operands / bf16 message rounding -> looser tolerance than pure f32.
    max_err = float(jnp.max(jnp.abs(out - ref)))
    assert jnp.allclose(out, ref, atol=5e-2, rtol=5e-2), max_err

    print("KERNEL_OK")
</pallas_src>

<mosaic_0001>
module attributes {stable_mosaic.version = 11 : i64} {
  func.func @gmm_resblock_kernel(%arg0: i32, %arg1: memref<128x128xbf16, #tpu.memory_space<vmem>>, %arg2: memref<128x384xbf16, #tpu.memory_space<vmem>>, %arg3: memref<128x128xbf16, #tpu.memory_space<vmem>>, %arg4: memref<1x128xf32, #tpu.memory_space<vmem>>, %arg5: memref<128x1xf32, #tpu.memory_space<vmem>>, %arg6: memref<3xf32, #tpu.memory_space<smem>>, %arg7: memref<3xf32, #tpu.memory_space<smem>>, %arg8: memref<256x1xi32, #tpu.memory_space<vmem>>, %arg9: memref<1x256xi32, #tpu.memory_space<vmem>>, %arg10: memref<256x1xf32, #tpu.memory_space<vmem>>, %arg11: memref<128x128xf32, #tpu.memory_space<vmem>>, %arg12: memref<128x384xbf16, #tpu.memory_space<vmem>>, %arg13: memref<128x128xf32, #tpu.memory_space<vmem>>, %arg14: memref<128x128xf32, #tpu.memory_space<vmem>>) attributes {dimension_semantics = [#tpu.dimension_semantics<arbitrary>], iteration_bounds = array<i64: 2>, scalar_prefetch = 0 : i64, scratch_operands = 3 : i64, tpu.core_type = #tpu.core_type<tc>, window_params = [{pipeline_mode = #tpu.pipeline_mode<synchronous>, transform_indices = @transform_0, window_bounds = array<i64: 128, 128>}, {pipeline_mode = #tpu.pipeline_mode<synchronous>, transform_indices = @transform_1, window_bounds = array<i64: 128, 384>}, {pipeline_mode = #tpu.pipeline_mode<synchronous>, transform_indices = @transform_2, window_bounds = array<i64: 128, 128>}, {pipeline_mode = #tpu.pipeline_mode<synchronous>, transform_indices = @transform_3, window_bounds = array<i64: 1, 128>}, {pipeline_mode = #tpu.pipeline_mode<synchronous>, transform_indices = @transform_4, window_bounds = array<i64: 128, 1>}, {transform_indices = @transform_5, window_bounds = array<i64: 3>}, {transform_indices = @transform_6, window_bounds = array<i64: 3>}, {transform_indices = @transform_7, window_bounds = array<i64: 256, 1>}, {transform_indices = @transform_8, window_bounds = array<i64: 1, 256>}, {transform_indices = @transform_9, window_bounds = array<i64: 256, 1>}, {pipeline_mode = #tpu.pipeline_mode<synchronous>, transform_indices = @transform_10, window_bounds = array<i64: 128, 128>}]} {
    %c0_i32 = arith.constant 0 : i32
    %0 = arith.cmpi eq, %arg0, %c0_i32 : i32
    %1 = arith.extui %0 : i1 to i32
    %c0_i32_0 = arith.constant 0 : i32
    %2 = arith.cmpi ne, %1, %c0_i32_0 : i32
    scf.if %2 {
      %c0_25 = arith.constant 0 : index
      %c0_26 = arith.constant 0 : index
      %73 = vector.load %arg1[%c0_25, %c0_26] : memref<128x128xbf16, #tpu.memory_space<vmem>>, vector<128x128xbf16>
      %c0_27 = arith.constant 0 : index
      %c0_28 = arith.constant 0 : index
      %74 = vector.load %arg2[%c0_27, %c0_28] : memref<128x384xbf16, #tpu.memory_space<vmem>>, vector<128x384xbf16>
      %cst_29 = arith.constant dense<0.000000e+00> : vector<128x384xf32>
      %75 = tpu.matmul %73, %74, %cst_29 {dimension_numbers = #tpu.dot_dimension_numbers<[1], [0], [0], [1], [0, 0, 1, 1], [], []>} : vector<128x128xbf16>, vector<128x384xbf16>, vector<128x384xf32> -> vector<128x384xf32>
      %76 = arith.truncf %75 : vector<128x384xf32> to vector<128x384xbf16>
      %c0_30 = arith.constant 0 : index
      %c0_31 = arith.constant 0 : index
      %77 = vector.load %arg12[%c0_30, %c0_31] : memref<128x384xbf16, #tpu.memory_space<vmem>>, vector<128x384xbf16>
      tpu.vector_store %arg12[%c0_30, %c0_31], %76 {strides = array<i32>} : memref<128x384xbf16, #tpu.memory_space<vmem>>, vector<128x384xbf16>,
      %c0_32 = arith.constant 0 : index
      %c0_33 = arith.constant 0 : index
      %78 = vector.load %arg1[%c0_32, %c0_33] : memref<128x128xbf16, #tpu.memory_space<vmem>>, vector<128x128xbf16>
      %c0_34 = arith.constant 0 : index
      %c0_35 = arith.constant 0 : index
      %79 = vector.load %arg3[%c0_34, %c0_35] : memref<128x128xbf16, #tpu.memory_space<vmem>>, vector<128x128xbf16>
      %cst_36 = arith.constant dense<0.000000e+00> : vector<128x128xf32>
      %80 = tpu.matmul %78, %79, %cst_36 {dimension_numbers = #tpu.dot_dimension_numbers<[1], [0], [0], [1], [0, 0, 1, 1], [], []>} : vector<128x128xbf16>, vector<128x128xbf16>, vector<128x128xf32> -> vector<128x128xf32>
      %c0_37 = arith.constant 0 : index
      %c0_38 = arith.constant 0 : index
      %81 = vector.load %arg13[%c0_37, %c0_38] : memref<128x128xf32, #tpu.memory_space<vmem>>, vector<128x128xf32>
      tpu.vector_store %arg13[%c0_37, %c0_38], %80 {strides = array<i32>} : memref<128x128xf32, #tpu.memory_space<vmem>>, vector<128x128xf32>,
      %cst_39 = arith.constant 0.000000e+00 : f32
      %82 = vector.broadcast %cst_39 : f32 to vector<128x128xf32>
      %c0_40 = arith.constant 0 : index
      %c0_41 = arith.constant 0 : index
      %83 = vector.load %arg14[%c0_40, %c0_41] : memref<128x128xf32, #tpu.memory_space<vmem>>, vector<128x128xf32>
      tpu.vector_store %arg14[%c0_40, %c0_41], %82 {strides = array<i32>} : memref<128x128xf32, #tpu.memory_space<vmem>>, vector<128x128xf32>,
    } else {
    }
    %c0 = arith.constant 0 : index
    %c0_1 = arith.constant 0 : index
    %3 = vector.load %arg8[%c0, %c0_1] : memref<256x1xi32, #tpu.memory_space<vmem>>, vector<256x1xi32>
    %c0_2 = arith.constant 0 : index
    %c0_3 = arith.constant 0 : index
    %4 = vector.load %arg9[%c0_2, %c0_3] : memref<1x256xi32, #tpu.memory_space<vmem>>, vector<1x256xi32>
    %c0_4 = arith.constant 0 : index
    %c0_5 = arith.constant 0 : index
    %5 = vector.load %arg10[%c0_4, %c0_5] : memref<256x1xf32, #tpu.memory_space<vmem>>, vector<256x1xf32>
    %6 = tpu.iota {dimensions = array<i32: 1>} : vector<256x128xi32>
    %7 = vector.broadcast %3 : vector<256x1xi32> to vector<256x128xi32>
    %8 = arith.cmpi eq, %6, %7 : vector<256x128xi32>
    %9 = arith.extui %8 : vector<256x128xi1> to vector<256x128xi32>
    %10 = arith.sitofp %9 : vector<256x128xi32> to vector<256x128xf32>
    %11 = arith.truncf %10 : vector<256x128xf32> to vector<256x128xbf16>
    %c0_6 = arith.constant 0 : index
    %12 = memref.load %arg6[%c0_6] : memref<3xf32, #tpu.memory_space<smem>>
    %13 = vector.broadcast %12 : f32 to vector<256x1xf32>
    %14 = arith.subf %5, %13 : vector<256x1xf32>
    %cst = arith.constant -5.000000e-01 : f32
    %15 = vector.broadcast %cst : f32 to vector<256x1xf32>
    %16 = arith.mulf %15, %14 : vector<256x1xf32>
    %17 = arith.mulf %16, %14 : vector<256x1xf32>
    %c0_7 = arith.constant 0 : index
    %18 = memref.load %arg7[%c0_7] : memref<3xf32, #tpu.memory_space<smem>>
    %19 = vector.broadcast %18 : f32 to vector<256x1xf32>
    %20 = arith.mulf %17, %19 : vector<256x1xf32>
    %21 = math.exp %20 : vector<256x1xf32>
    %22 = arith.truncf %21 : vector<256x1xf32> to vector<256x1xbf16>
    %23 = vector.broadcast %22 : vector<256x1xbf16> to vector<256x128xbf16>
    %24 = arith.mulf %11, %23 : vector<256x128xbf16>
    %c0_8 = arith.constant 0 : index
    %c0_9 = arith.constant 0 : index
    %25 = vector.load %arg12[%c0_8, %c0_9] : memref<128x384xbf16, #tpu.memory_space<vmem>>, vector<128x128xbf16>
    %cst_10 = arith.constant dense<0.000000e+00> : vector<256x128xf32>
    %26 = tpu.matmul %24, %25, %cst_10 {dimension_numbers = #tpu.dot_dimension_numbers<[1], [0], [0], [1], [0, 0, 1, 1], [], []>} : vector<256x128xbf16>, vector<128x128xbf16>, vector<256x128xf32> -> vector<256x128xf32>
    %c1 = arith.constant 1 : index
    %27 = memref.load %arg6[%c1] : memref<3xf32, #tpu.memory_space<smem>>
    %28 = vector.broadcast %27 : f32 to vector<256x1xf32>
    %29 = arith.subf %5, %28 : vector<256x1xf32>
    %cst_11 = arith.constant -5.000000e-01 : f32
    %30 = vector.broadcast %cst_11 : f32 to vector<256x1xf32>
    %31 = arith.mulf %30, %29 : vector<256x1xf32>
    %32 = arith.mulf %31, %29 : vector<256x1xf32>
    %c1_12 = arith.constant 1 : index
    %33 = memref.load %arg7[%c1_12] : memref<3xf32, #tpu.memory_space<smem>>
    %34 = vector.broadcast %33 : f32 to vector<256x1xf32>
    %35 = arith.mulf %32, %34 : vector<256x1xf32>
    %36 = math.exp %35 : vector<256x1xf32>
    %37 = arith.truncf %36 : vector<256x1xf32> to vector<256x1xbf16>
    %38 = vector.broadcast %37 : vector<256x1xbf16> to vector<256x128xbf16>
    %39 = arith.mulf %11, %38 : vector<256x128xbf16>
    %c0_13 = arith.constant 0 : index
    %c128 = arith.constant 128 : index
    %40 = vector.load %arg12[%c0_13, %c128] : memref<128x384xbf16, #tpu.memory_space<vmem>>, vector<128x128xbf16>
    %cst_14 = arith.constant dense<0.000000e+00> : vector<256x128xf32>
    %41 = tpu.matmul %39, %40, %cst_14 {dimension_numbers = #tpu.dot_dimension_numbers<[1], [0], [0], [1], [0, 0, 1, 1], [], []>} : vector<256x128xbf16>, vector<128x128xbf16>, vector<256x128xf32> -> vector<256x128xf32>
    %42 = arith.addf %26, %41 : vector<256x128xf32>
    %c2 = arith.constant 2 : index
    %43 = memref.load %arg6[%c2] : memref<3xf32, #tpu.memory_space<smem>>
    %44 = vector.broadcast %43 : f32 to vector<256x1xf32>
    %45 = arith.subf %5, %44 : vector<256x1xf32>
    %cst_15 = arith.constant -5.000000e-01 : f32
    %46 = vector.broadcast %cst_15 : f32 to vector<256x1xf32>
    %47 = arith.mulf %46, %45 : vector<256x1xf32>
    %48 = arith.mulf %47, %45 : vector<256x1xf32>
    %c2_16 = arith.constant 2 : index
    %49 = memref.load %arg7[%c2_16] : memref<3xf32, #tpu.memory_space<smem>>
    %50 = vector.broadcast %49 : f32 to vector<256x1xf32>
    %51 = arith.mulf %48, %50 : vector<256x1xf32>
    %52 = math.exp %51 : vector<256x1xf32>
    %53 = arith.truncf %52 : vector<256x1xf32> to vector<256x1xbf16>
    %54 = vector.broadcast %53 : vector<256x1xbf16> to vector<256x128xbf16>
    %55 = arith.mulf %11, %54 : vector<256x128xbf16>
    %c0_17 = arith.constant 0 : index
    %c256 = arith.constant 256 : index
    %56 = vector.load %arg12[%c0_17, %c256] : memref<128x384xbf16, #tpu.memory_space<vmem>>, vector<128x128xbf16>
    %cst_18 = arith.constant dense<0.000000e+00> : vector<256x128xf32>
    %57 = tpu.matmul %55, %56, %cst_18 {dimension_numbers = #tpu.dot_dimension_numbers<[1], [0], [0], [1], [0, 0, 1, 1], [], []>} : vector<256x128xbf16>, vector<128x128xbf16>, vector<256x128xf32> -> vector<256x128xf32>
    %58 = arith.addf %42, %57 : vector<256x128xf32>
    %59 = tpu.iota {dimensions = array<i32: 0>} : vector<128x256xi32>
    %60 = vector.broadcast %4 : vector<1x256xi32> to vector<128x256xi32>
    %61 = arith.cmpi eq, %59, %60 : vector<128x256xi32>
    %62 = arith.extui %61 : vector<128x256xi1> to vector<128x256xi32>
    %63 = arith.sitofp %62 : vector<128x256xi32> to vector<128x256xf32>
    %64 = arith.truncf %63 : vector<128x256xf32> to vector<128x256xbf16>
    %c0_19 = arith.constant 0 : index
    %c0_20 = arith.constant 0 : index
    %65 = vector.load %arg14[%c0_19, %c0_20] : memref<128x128xf32, #tpu.memory_space<vmem>>, vector<128x128xf32>
    %66 = arith.truncf %58 : vector<256x128xf32> to vector<256x128xbf16>
    %cst_21 = arith.constant dense<0.000000e+00> : vector<128x128xf32>
    %67 = tpu.matmul %64, %66, %cst_21 {dimension_numbers = #tpu.dot_dimension_numbers<[1], [0], [0], [1], [0, 0, 1, 1], [], []>} : vector<128x256xbf16>, vector<256x128xbf16>, vector<128x128xf32> -> vector<128x128xf32>
    %68 = arith.addf %65, %67 : vector<128x128xf32>
    %c0_22 = arith.constant 0 : index
    %c0_23 = arith.constant 0 : index
    %69 = vector.load %arg14[%c0_22, %c0_23] : memref<128x128xf32, #tpu.memory_space<vmem>>, vector<128x128xf32>
    tpu.vector_store %arg14[%c0_22, %c0_23], %68 {strides = array<i32>} : memref<128x128xf32, #tpu.memory_space<vmem>>, vector<128x128xf32>,
    %c1_i32 = arith.constant 1 : i32
    %70 = arith.cmpi eq, %arg0, %c1_i32 : i32
    %71 = arith.extui %70 : i1 to i32
    %c0_i32_24 = arith.constant 0 : i32
    %72 = arith.cmpi ne, %71, %c0_i32_24 : i32
    scf.if %72 {
      %c0_25 = arith.constant 0 : index
      %c0_26 = arith.constant 0 : index
      %73 = vector.load %arg14[%c0_25, %c0_26] : memref<128x128xf32, #tpu.memory_space<vmem>>, vector<128x128xf32>
      %c0_27 = arith.constant 0 : index
      %c0_28 = arith.constant 0 : index
      %74 = vector.load %arg5[%c0_27, %c0_28] : memref<128x1xf32, #tpu.memory_space<vmem>>, vector<128x1xf32>
      %75 = vector.broadcast %74 : vector<128x1xf32> to vector<128x128xf32>
      %76 = arith.mulf %73, %75 : vector<128x128xf32>
      %c0_29 = arith.constant 0 : index
      %c0_30 = arith.constant 0 : index
      %77 = vector.load %arg13[%c0_29, %c0_30] : memref<128x128xf32, #tpu.memory_space<vmem>>, vector<128x128xf32>
      %78 = arith.addf %76, %77 : vector<128x128xf32>
      %c0_31 = arith.constant 0 : index
      %c0_32 = arith.constant 0 : index
      %79 = vector.load %arg4[%c0_31, %c0_32] : memref<1x128xf32, #tpu.memory_space<vmem>>, vector<1x128xf32>
      %80 = vector.broadcast %79 : vector<1x128xf32> to vector<128x128xf32>
      %81 = arith.addf %78, %80 : vector<128x128xf32>
      %c0_33 = arith.constant 0 : index
      %c0_34 = arith.constant 0 : index
      %82 = vector.load %arg1[%c0_33, %c0_34] : memref<128x128xbf16, #tpu.memory_space<vmem>>, vector<128x128xbf16>
      %83 = arith.extf %82 : vector<128x128xbf16> to vector<128x128xf32>
      %84 = arith.addf %81, %83 : vector<128x128xf32>
      %85 = arith.negf %84 : vector<128x128xf32>
      %86 = math.exp %85 : vector<128x128xf32>
      %cst_35 = arith.constant 1.000000e+00 : f32
      %87 = vector.broadcast %cst_35 : f32 to vector<128x128xf32>
      %88 = arith.addf %87, %86 : vector<128x128xf32>
      %89 = arith.divf %87, %88 : vector<128x128xf32>
      %90 = arith.mulf %84, %89 : vector<128x128xf32>
      %c0_36 = arith.constant 0 : index
      %c0_37 = arith.constant 0 : index
      %91 = vector.load %arg11[%c0_36, %c0_37] : memref<128x128xf32, #tpu.memory_space<vmem>>, vector<128x128xf32>
      tpu.vector_store %arg11[%c0_36, %c0_37], %90 {strides = array<i32>} : memref<128x128xf32, #tpu.memory_space<vmem>>, vector<128x128xf32>,
    } else {
    }
    return
  }
  func.func @transform_0(%arg0: i32) -> (i32, i32) {
    %c0_i32 = arith.constant 0 : i32
    %c0_i32_0 = arith.constant 0 : i32
    %c0_i32_1 = arith.constant 0 : i32
    return %c0_i32, %c0_i32_0 : i32, i32
  }
  func.func @transform_1(%arg0: i32) -> (i32, i32) {
    %c0_i32 = arith.constant 0 : i32
    %c0_i32_0 = arith.constant 0 : i32
    %c0_i32_1 = arith.constant 0 : i32
    return %c0_i32, %c0_i32_0 : i32, i32
  }
  func.func @transform_2(%arg0: i32) -> (i32, i32) {
    %c0_i32 = arith.constant 0 : i32
    %c0_i32_0 = arith.constant 0 : i32
    %c0_i32_1 = arith.constant 0 : i32
    return %c0_i32, %c0_i32_0 : i32, i32
  }
  func.func @transform_3(%arg0: i32) -> (i32, i32) {
    %c0_i32 = arith.constant 0 : i32
    %c0_i32_0 = arith.constant 0 : i32
    %c0_i32_1 = arith.constant 0 : i32
    return %c0_i32, %c0_i32_0 : i32, i32
  }
  func.func @transform_4(%arg0: i32) -> (i32, i32) {
    %c0_i32 = arith.constant 0 : i32
    %c0_i32_0 = arith.constant 0 : i32
    %c0_i32_1 = arith.constant 0 : i32
    return %c0_i32, %c0_i32_0 : i32, i32
  }
  func.func @transform_5(%arg0: i32) -> i32 {
    %c0_i32 = arith.constant 0 : i32
    %c0_i32_0 = arith.constant 0 : i32
    return %c0_i32 : i32
  }
  func.func @transform_6(%arg0: i32) -> i32 {
    %c0_i32 = arith.constant 0 : i32
    %c0_i32_0 = arith.constant 0 : i32
    return %c0_i32 : i32
  }
  func.func @transform_7(%arg0: i32) -> (i32, i32) {
    %c0_i32 = arith.constant 0 : i32
    %c0_i32_0 = arith.constant 0 : i32
    return %arg0, %c0_i32 : i32, i32
  }
  func.func @transform_8(%arg0: i32) -> (i32, i32) {
    %c0_i32 = arith.constant 0 : i32
    %c0_i32_0 = arith.constant 0 : i32
    return %c0_i32, %arg0 : i32, i32
  }
  func.func @transform_9(%arg0: i32) -> (i32, i32) {
    %c0_i32 = arith.constant 0 : i32
    %c0_i32_0 = arith.constant 0 : i32
    return %arg0, %c0_i32 : i32, i32
  }
  func.func @transform_10(%arg0: i32) -> (i32, i32) {
    %c0_i32 = arith.constant 0 : i32
    %c0_i32_0 = arith.constant 0 : i32
    %c0_i32_1 = arith.constant 0 : i32
    return %c0_i32, %c0_i32_0 : i32, i32
  }
}

</mosaic_0001>

<bundles_post_ra>
// kernel: tpu_custom_call.1
= control target key start
LH: loop header
LB: loop body
LE: loop exit
PB: predicated region body
PF: predicated region fallthrough
CT: control target
= control target key end

     0   :  { %15 = vsyncpa [#allocation7], 0  ;;  %s6275_s0 = inlined_call_operand.vmem [shape: bf16[128,128], index: 0, kind: input, shape index: {}]   ;;  %s6276_s1 = inlined_call_operand.vmem [shape: bf16[128,384], index: 1, kind: input, shape index: {}]   ;;  %s6277_s2 = inlined_call_operand.vmem [shape: bf16[128,128], index: 2, kind: input, shape index: {}]   ;;  %s6278_s3 = inlined_call_operand.vmem [shape: f32[1,128], index: 3, kind: input, shape index: {}]   ;;  %s6279_s4 = inlined_call_operand.vmem [shape: f32[128,1], index: 4, kind: input, shape index: {}]   ;;  %s6280_s5 = inlined_call_operand.vmem [shape: f32[3], index: 5, kind: input, shape index: {}]   ;;  %s6281_s6 = inlined_call_operand.vmem [shape: f32[3], index: 6, kind: input, shape index: {}]   ;;  %s6282_s7 = inlined_call_operand.vmem [shape: s32[512,1], index: 7, kind: input, shape index: {}]   ;;  %s6283_s8 = inlined_call_operand.vmem [shape: s32[1,512], index: 8, kind: input, shape index: {}]   ;;  %s6284_s9 = inlined_call_operand.vmem [shape: f32[512,1], index: 9, kind: input, shape index: {}]   ;;  %s6285_s10 = inlined_call_operand.hbm [shape: f32[128,128], index: 10, kind: output, shape index: {}]  }
   0x1   :  { %16 = vsyncpa [#allocation9], 0 }
   0x2   :  { %17 = vsyncpa [#allocation6], 0  ;;  %s4831_s13 = smov 0  }
   0x3 LB: > { %s4837_s14 = sadd.s32 4294967295, %s4763_s13   ;;  %p3651_p0 = scmp.ge.s32.totalorder %s4763_s13, 1  ;;  %s4763_s13 = sphi %s4831_s13, %s23_s13  }
   0x4   : > { %p274_p1 = scmp.lt.s32.totalorder %s4763_s13, 3  ;;  %s302_s17 = sshll.u32 %s6280_s5, 4  ;;  %s303_s17 = int_to_ptr.vmem [resolvable:$true] %s302_s17 }
   0x5   : > { %p6286_p4 = scmp.eq.s32.totalorder %s4837_s14, 0  ;;  %s313_s21 = sshll.u32 %s6281_s6, 4  ;;  %s314_s21 = int_to_ptr.vmem [resolvable:$true] %s313_s21 }
   0x6   : > { %p4845_p3 = pnand %p3651_p0, %p274_p1  ;;  %s4689_s23 = scalar_lea.vmem %s303_s17, 16 }
   0x7   : > { %p4690_p7 = scmp.ne.s32.totalorder %s303_s17, %s4689_s23  ;;  %p4697_p11 = scmp.lt.s32.totalorder %s303_s17, %s303_s17 }
   0x8   : > { %s6288_s18 = scalar_select %p4845_p3, 1, 0 }
   0x9   : > { %p4325_p5 = pneg %p4845_p3  ;;  %p4698_p12 = scmp.lt.s32.totalorder %s4689_s23, %s4689_s23 }
   0xb   : > { %p4857_p6 = pnand %p6286_p4, %p4325_p5  ;;  %p4699_p13 = por %p4698_p12, %p4697_p11 }
   0xd   : > { %p4691_p8 = pneg %p4857_p6 }
   0xf   : > { %p4692_p9 = pnand %p4691_p8, %p4690_p7 }
  0x11   : > { %p4693_p10 = pneg %p4692_p9 }
  0x13   : > { %p4700_p0 = pnand %p4699_p13, %p4693_p10 }
  0x15   : > { %4703 = shalt.err (!%p4700_p0)
}
  0x16   : > { %s4765_s24 = smov [#allocation5]   ;;  %s4704_s25 = scalar_lea.vmem %s314_s21, 16 }
  0x17   : > { %4328 = dma.vmem_to_smem (!%p4857_p6), %s303_s17, 16, %s4765_s24, [#allocation7]  }
  0x18   : > { %p4705_p1 = scmp.ne.s32.totalorder %s314_s21, %s4704_s25  ;;  %p4712_p4 = scmp.lt.s32.totalorder %s314_s21, %s314_s21 }
  0x19   : > { %p4713_p3 = scmp.lt.s32.totalorder %s4704_s25, %s4704_s25 }
  0x1a   : > { %p4707_p5 = pnand %p4705_p1, %p4691_p8 }
  0x1b   : > { %p4714_p7 = por %p4713_p3, %p4712_p4 }
  0x1c   : > { %p4708_p2 = pneg %p4707_p5 }
  0x1e   : > { %p4715_p9 = pnand %p4714_p7, %p4708_p2 }
  0x20   : > { %4718 = shalt.err (!%p4715_p9)
}
  0x21   : > { %s4766_s26 = smov [#allocation8]   ;;  %p6290_p10 = scmp.ne.s32.totalorder %s6288_s18, 0 }
  0x22   : > { %4331 = dma.vmem_to_smem (!%p4857_p6), %s314_s21, 16, %s4766_s26, [#allocation9]  }
  0x23   : > { %352 = sbr.rel (%p6290_p10) target bundleno = 1354 (0x54a), region = 60  ;;  %p6291_p11 = scmp.eq.s32.totalorder (!%p6290_p10), %s4837_s14, 0 }
  0x2a   : > { %4750 = dma.done.wait (%p6291_p11), [#allocation7], 16   ;;  %p6292_p12 = pmov %p6291_p11 }
  0x2b   : > { %p6293_p8 = pmov %p6291_p11 }
  0x2c   : > { %4752 = vsyncadd (%p6292_p12), [#allocation7], 4294967280 }
  0x2d   : > { %4754 = dma.done.wait (%p6293_p8), [#allocation9], 16   ;;  %p6294_p3 = pmov %p6293_p8 }
  0x2f   : > { %4756 = vsyncadd (%p6294_p3), [#allocation9], 4294967280 }
  0x30   : > { %362 = sfence }
  0x31   : > { %s3658_s27 = sshll.u32 %s4837_s14, 5  ;;  %s3660_s28 = sshll.u32 %s4837_s14, 1 }
  0x32   : > { %p400_p2 = scmp.lt.s32.totalorder %s3658_s27, 63  ;;  %p406_p4 = scmp.lt.s32.totalorder %s3660_s28, 3 }
  0x33   : > { %p6295_p6 = scmp.ne.s32.totalorder %s4837_s14, 0 }
  0x34   : > { %s6330_s27 = smov (!%p400_p2, %s3658_s27), 63  ;;  %s6332_s28 = smov (!%p406_p4, %s3660_s28), 3 }
  0x35   : > { %s3659_s29 = sshll.u32 %s6330_s27, 3  ;;  %s408_s17 = scalar_lea.vmem %s6283_s8, %s6332_s28  ;;  %v4357_v0 = vld [vmem:[%s6276_s1 + $0x4] ss:$12 sps:$4 sm:$0xff] (!%p6295_p6)   ;;  %v4359_v1 = vld [vmem:[%s6276_s1 + $0x8] ss:$12 sps:$4 sm:$0xff] (!%p6295_p6)   ;;  %v4767_v2 = vmov (!%p6295_p6), 0  }
  0x36   : > { %s4884_s12 = scalar_lea.vmem %s6282_s7, %s3659_s29  ;;  %s4893_s20 = scalar_lea.vmem %s6284_s9, %s3659_s29  ;;  %677 = vmatprep.mubr.bf16.mxu0 (!%p6295_p6), %v4767_v2  ;;  %645 = vmatprep.subr.bf16.mxu0 (!%p6295_p6), %v4357_v0  ;;  %v4360_v3 = vld [vmem:[%s6276_s1] ss:$12 sps:$4 sm:$0xff] (!%p6295_p6)   ;;  %v4361_v4 = vld [vmem:[%s6276_s1 + $0x1c] ss:$12 sps:$4 sm:$0xff] (!%p6295_p6)   ;;  %v4364_v6 = vld [vmem:[%s6276_s1 + $0x18] ss:$12 sps:$4 sm:$0xff] (!%p6295_p6)  }
  0x37   : > { %420 = sbr.rel (%p6295_p6) target bundleno = 360 (0x168), region = 72  ;;  %4041 = vmatprep.subr.bf16.mxu1 (!%p6295_p6), %v4359_v1  ;;  %646 = vmatpush1.bf16.msra.mxu0 (!%p6295_p6), %v4360_v3  ;;  %v4363_v5 = vld [vmem:[%s6276_s1 + $0x20] ss:$12 sps:$4 sm:$0xff] (!%p6295_p6)   ;;  %v4367_v8 = vld [vmem:[%s6276_s1 + $0x38] ss:$12 sps:$4 sm:$0xff] (!%p6295_p6)   ;;  %v4393_v29 = vld [vmem:[%s6275_s0 + $0x10] sm:$0xff] (!%p6295_p6)  }
  0x38   : > { %4042 = vmatpush3.bf16.msra.mxu1 (!%p6295_p6), %v4359_v1  ;;  %647 = vmatprep.subr.bf16.mxu0 (!%p6295_p6), %v4361_v4  ;;  %v4365_v7 = vld [vmem:[%s6276_s1 + $0x34] ss:$12 sps:$4 sm:$0xff] (!%p6295_p6)   ;;  %v4368_v9 = vld [vmem:[%s6276_s1 + $0x30] ss:$12 sps:$4 sm:$0xff] (!%p6295_p6)   ;;  %v4369_v10 = vld [vmem:[%s6276_s1 + $0x4c] ss:$12 sps:$4 sm:$0xff] (!%p6295_p6)  }
  0x39   : > { %4043 = vmatprep.subr.bf16.mxu1 (!%p6295_p6), %v4363_v5  ;;  %v4371_v11 = vld [vmem:[%s6276_s1 + $0x50] ss:$12 sps:$4 sm:$0xff] (!%p6295_p6)   ;;  %v4372_v12 = vld [vmem:[%s6276_s1 + $0x48] ss:$12 sps:$4 sm:$0xff] (!%p6295_p6)   ;;  %v4376_v15 = vld [vmem:[%s6276_s1 + $0x60] ss:$12 sps:$4 sm:$0xff] (!%p6295_p6)  }
  0x3a   : > { %v4373_v13 = vld [vmem:[%s6276_s1 + $0x64] ss:$12 sps:$4 sm:$0xff] (!%p6295_p6)   ;;  %v4375_v14 = vld [vmem:[%s6276_s1 + $0x68] ss:$12 sps:$4 sm:$0xff] (!%p6295_p6)   ;;  %v4379_v17 = vld [vmem:[%s6276_s1 + $0x80] ss:$12 sps:$4 sm:$0xff] (!%p6295_p6)  }
  0x3b   : > { %648 = vmatpush1.bf16.msra.mxu0 (!%p6295_p6), %v4364_v6  ;;  %v4377_v16 = vld [vmem:[%s6276_s1 + $0x7c] ss:$12 sps:$4 sm:$0xff] (!%p6295_p6)   ;;  %v4380_v18 = vld [vmem:[%s6276_s1 + $0x78] ss:$12 sps:$4 sm:$0xff] (!%p6295_p6)   ;;  %v4381_v20 = vld [vmem:[%s6276_s1 + $0x94] ss:$12 sps:$4 sm:$0xff] (!%p6295_p6)  }
  0x3c   : > { %4044 = vmatpush3.bf16.msra.mxu1 (!%p6295_p6), %v4363_v5  ;;  %649 = vmatprep.subr.bf16.mxu0 (!%p6295_p6), %v4365_v7  ;;  %v4389_v19 = vld [vmem:[%s6275_s0] sm:$0xff] (!%p6295_p6)   ;;  %v4384_v22 = vld [vmem:[%s6276_s1 + $0x90] ss:$12 sps:$4 sm:$0xff] (!%p6295_p6)   ;;  %v4385_v23 = vld [vmem:[%s6276_s1 + $0xac] ss:$12 sps:$4 sm:$0xff] (!%p6295_p6)   ;;  %v4768_v49 = vmov (!%p6295_p6), 0.0  }
  0x3d   : > { %4045 = vmatprep.subr.bf16.mxu1 (!%p6295_p6), %v4367_v8  ;;  %v4383_v21 = vld [vmem:[%s6276_s1 + $0x98] ss:$12 sps:$4 sm:$0xff] (!%p6295_p6)   ;;  %4057 = vmatprep.mubr.bf16.mxu1 (!%p6295_p6), %v4389_v19  ;;  %v4387_v24 = vld [vmem:[%s6276_s1 + $0xb0] ss:$12 sps:$4 sm:$0xff] (!%p6295_p6)   ;;  %v4388_v25 = vld [vmem:[%s6276_s1 + $0xa8] ss:$12 sps:$4 sm:$0xff] (!%p6295_p6)  }
  0x3e   : > { %v4391_v26 = vld [vmem:[%s6277_s2] sm:$0xff]   ;;  %v4390_v27 = vld [vmem:[%s6275_s0 + $0x8] sm:$0xff]   ;;  %v4395_v30 = vld [vmem:[%s6277_s2 + $0x10] sm:$0xff]   ;;  %1144 = vst [vmem:[#allocation4] sm:$0xff] %v4768_v49 }
  0x3f   : > { %650 = vmatpush1.bf16.msra.mxu0 %v4368_v9  ;;  %v4392_v28 = vld [vmem:[%s6277_s2 + $0x8] sm:$0xff]   ;;  %v4394_v31 = vld [vmem:[%s6275_s0 + $0x18] sm:$0xff]   ;;  %v4397_v33 = vld [vmem:[%s6275_s0 + $0x20] sm:$0xff]   ;;  %1145 = vst [vmem:[#allocation4 + $0x8] sm:$0xff] %v4768_v49 }
  0x40   : > { %4046 = vmatpush3.bf16.msra.mxu1 %v4367_v8  ;;  %651 = vmatprep.subr.bf16.mxu0 %v4369_v10  ;;  %v4396_v32 = vld [vmem:[%s6277_s2 + $0x18] sm:$0xff]   ;;  %v4399_v34 = vld [vmem:[%s6277_s2 + $0x20] sm:$0xff]   ;;  %v4398_v35 = vld [vmem:[%s6275_s0 + $0x28] sm:$0xff]   ;;  %1146 = vst [vmem:[#allocation4 + $0x10] sm:$0xff] %v4768_v49 }
  0x41   : > { %4047 = vmatprep.subr.bf16.mxu1 %v4371_v11  ;;  %v4400_v36 = vld [vmem:[%s6277_s2 + $0x28] sm:$0xff]   ;;  %v4401_v37 = vld [vmem:[%s6275_s0 + $0x30] sm:$0xff]   ;;  %v4402_v39 = vld [vmem:[%s6275_s0 + $0x38] sm:$0xff]   ;;  %1147 = vst [vmem:[#allocation4 + $0x18] sm:$0xff] %v4768_v49 }
  0x42   : > { %v4403_v38 = vld [vmem:[%s6277_s2 + $0x30] sm:$0xff]   ;;  %v4404_v40 = vld [vmem:[%s6277_s2 + $0x38] sm:$0xff]   ;;  %v4405_v41 = vld [vmem:[%s6275_s0] sm:$0xff]   ;;  %1148 = vst [vmem:[#allocation4 + $0x20] sm:$0xff] %v4768_v49 }
  0x43   : > { %652 = vmatpush1.bf16.msra.mxu0 %v4372_v12  ;;  %v4406_v42 = vld [vmem:[%s6275_s0 + $0x8] sm:$0xff]   ;;  %v4407_v43 = vld [vmem:[%s6275_s0 + $0x10] sm:$0xff]   ;;  %v4408_v44 = vld [vmem:[%s6275_s0 + $0x18] sm:$0xff]   ;;  %1149 = vst [vmem:[#allocation4 + $0x28] sm:$0xff] %v4768_v49 }
  0x44   : > { %4048 = vmatpush3.bf16.msra.mxu1 %v4371_v11  ;;  %653 = vmatprep.subr.bf16.mxu0 %v4373_v13  ;;  %v4409_v45 = vld [vmem:[%s6275_s0 + $0x20] sm:$0xff]   ;;  %v4410_v46 = vld [vmem:[%s6275_s0 + $0x28] sm:$0xff]   ;;  %v4411_v47 = vld [vmem:[%s6275_s0 + $0x30] sm:$0xff]   ;;  %1150 = vst [vmem:[#allocation4 + $0x30] sm:$0xff] %v4768_v49 }
  0x45   : > { %4049 = vmatprep.subr.bf16.mxu1 %v4375_v14  ;;  %v4412_v48 = vld [vmem:[%s6275_s0 + $0x38] sm:$0xff]   ;;  %1151 = vst [vmem:[#allocation4 + $0x38] sm:$0xff] %v4768_v49  ;;  %1152 = vst [vmem:[#allocation4 + $0x40] sm:$0xff] %v4768_v49 }
  0x46   : > { %1153 = vst [vmem:[#allocation4 + $0x48] sm:$0xff] %v4768_v49  ;;  %1154 = vst [vmem:[#allocation4 + $0x50] sm:$0xff] %v4768_v49 }
  0x47   : > { %654 = vmatpush1.bf16.msra.mxu0 %v4376_v15  ;;  %1155 = vst [vmem:[#allocation4 + $0x58] sm:$0xff] %v4768_v49  ;;  %1156 = vst [vmem:[#allocation4 + $0x60] sm:$0xff] %v4768_v49 }
  0x48   : > { %4050 = vmatpush3.bf16.msra.mxu1 %v4375_v14  ;;  %655 = vmatprep.subr.bf16.mxu0 %v4377_v16  ;;  %1157 = vst [vmem:[#allocation4 + $0x68] sm:$0xff] %v4768_v49  ;;  %1158 = vst [vmem:[#allocation4 + $0x70] sm:$0xff] %v4768_v49 }
  0x49   : > { %4051 = vmatprep.subr.bf16.mxu1 %v4379_v17  ;;  %1159 = vst [vmem:[#allocation4 + $0x78] sm:$0xff] %v4768_v49 }
  0x4b   : > { %656 = vmatpush1.bf16.msra.mxu0 %v4380_v18 }
  0x4c   : > { %4052 = vmatpush3.bf16.msra.mxu1 %v4379_v17  ;;  %657 = vmatprep.subr.bf16.mxu0 %v4381_v20 }
  0x4d   : > { %4053 = vmatprep.subr.bf16.mxu1 %v4383_v21 }
  0x4f   : > { %658 = vmatpush1.bf16.msra.mxu0 %v4384_v22 }
  0x50   : > { %4054 = vmatpush3.bf16.msra.mxu1 %v4383_v21  ;;  %659 = vmatprep.subr.bf16.mxu0 %v4385_v23 }
  0x51   : > { %4055 = vmatprep.subr.bf16.mxu1 %v4387_v24 }
  0x53   : > { %660 = vmatpush1.bf16.msra.mxu0 %v4388_v25 }
  0x54   : > { %4056 = vmatpush3.bf16.msra.mxu1 %v4387_v24 }
  0x55   : > { %4073 = vmatprep.subr.bf16.mxu1 %v4391_v26 }
  0x56   : > { %678 = vmatmul.mubr.bf16.vlgmr.msra.gmra.mrb[0].mxu0 %v4389_v19 }
  0x57   : > { %4058 = vmatmul.mubr.bf16.vlgmr.msra.gmra.mrb[0].mxu1 %v4390_v27  ;;  %687 = vmatprep.mubr.bf16.mxu0 %v4767_v2 }
  0x58   : > { %4074 = vmatpush3.bf16.msra.mxu1 %v4391_v26  ;;  %4061 = vmatprep.mubr.bf16.mxu1 %v4393_v29 }
  0x59   : > { %4075 = vmatprep.subr.bf16.mxu1 %v4392_v28 }
  0x5c   : > { %4076 = vmatpush3.bf16.msra.mxu1 %v4392_v28 }
  0x5d   : > { %4077 = vmatprep.subr.bf16.mxu1 %v4395_v30 }
  0x5e   : > { %688 = vmatmul.mubr.bf16.gmra.mrb[4].mxu0 %v4390_v27 }
  0x5f   : > { %4062 = vmatmul.mubr.bf16.gmra.mrb[4].mxu1 %v4394_v31  ;;  %697 = vmatprep.mubr.bf16.mxu0 %v4767_v2 }
  0x60   : > { %4078 = vmatpush3.bf16.msra.mxu1 %v4395_v30  ;;  %4065 = vmatprep.mubr.bf16.mxu1 %v4397_v33 }
  0x61   : > { %4079 = vmatprep.subr.bf16.mxu1 %v4396_v32 }
  0x64   : > { %4080 = vmatpush3.bf16.msra.mxu1 %v4396_v32 }
  0x65   : > { %4081 = vmatprep.subr.bf16.mxu1 %v4399_v34 }
  0x66   : > { %698 = vmatmul.mubr.bf16.gmra.mrb[8].mxu0 %v4393_v29 }
  0x67   : > { %4066 = vmatmul.mubr.bf16.gmra.mrb[8].mxu1 %v4398_v35  ;;  %707 = vmatprep.mubr.bf16.mxu0 %v4767_v2 }
  0x68   : > { %4082 = vmatpush3.bf16.msra.mxu1 %v4399_v34  ;;  %4069 = vmatprep.mubr.bf16.mxu1 %v4401_v37 }
  0x69   : > { %4083 = vmatprep.subr.bf16.mxu1 %v4400_v36 }
  0x6c   : > { %4084 = vmatpush3.bf16.msra.mxu1 %v4400_v36 }
  0x6d   : > { %4085 = vmatprep.subr.bf16.mxu1 %v4403_v38 }
  0x6e   : > { %708 = vmatmul.mubr.bf16.gmra.mrb[12].mxu0 %v4394_v31 }
  0x6f   : > { %4070 = vmatmul.mubr.bf16.gmra.mrb[12].mxu1 %v4402_v39  ;;  %717 = vmatprep.mubr.bf16.mxu0 %v4767_v2 }
  0x70   : > { %4086 = vmatpush3.bf16.msra.mxu1 %v4403_v38  ;;  %4089 = vmatprep.mubr.bf16.mxu1 %v4405_v41 }
  0x71   : > { %4087 = vmatprep.subr.bf16.mxu1 %v4404_v40 }
  0x74   : > { %4088 = vmatpush3.bf16.msra.mxu1 %v4404_v40 }
  0x76   : > { %718 = vmatmul.mubr.bf16.gmra.mrb[16].mxu0 %v4397_v33 }
  0x77   : > { %4090 = vmatmul.mubr.bf16.vlgmr.msra.gmra.mrb[16].mxu1 %v4406_v42  ;;  %727 = vmatprep.mubr.bf16.mxu0 %v4767_v2 }
  0x78   : > { %4093 = vmatprep.mubr.bf16.mxu1 %v4407_v43 }
  0x7e   : > { %728 = vmatmul.mubr.bf16.gmra.mrb[20].mxu0 %v4398_v35 }
  0x7f   : > { %4094 = vmatmul.mubr.bf16.gmra.mrb[20].mxu1 %v4408_v44  ;;  %737 = vmatprep.mubr.bf16.mxu0 %v4767_v2 }
  0x80   : > { %4097 = vmatprep.mubr.bf16.mxu1 %v4409_v45 }
  0x86   : > { %738 = vmatmul.mubr.bf16.gmra.mrb[24].mxu0 %v4401_v37 }
  0x87   : > { %4098 = vmatmul.mubr.bf16.gmra.mrb[24].mxu1 %v4410_v46  ;;  %747 = vmatprep.mubr.bf16.mxu0 %v4767_v2 }
  0x88   : > { %4101 = vmatprep.mubr.bf16.mxu1 %v4411_v47 }
  0x8e   : > { %748 = vmatmul.mubr.bf16.gmra.mrb[28].mxu0 %v4402_v39 }
  0x8f   : > { %4102 = vmatmul.mubr.bf16.gmra.mrb[28].mxu1 %v4412_v48 }
 0x129   : > { %v679_v50 = vpop.f32.mrb[0].mxu0 }
 0x12a   : > { %v4059_v51 = vpop.f32.mrb[0].mxu1  ;;  %v681_v52 = vpop.f32.mrb[1].mxu0 }
 0x12b   : > { %v792_v53 = vpop.f32.mrb[1].mxu1  ;;  %v683_v54 = vpop.f32.mrb[2].mxu0 }
 0x12c   : > { %v4060_v55 = vpop.f32.mrb[2].mxu1  ;;  %v855_v56 = vpack.c.bf16 %v683_v54, %v679_v50  ;;  %v685_v58 = vpop.f32.mrb[3].mxu0 }
 0x12d   : > { %v860_v57 = vpack.c.bf16 %v4060_v55, %v4059_v51  ;;  %v795_v59 = vpop.f32.mrb[3].mxu1  ;;  %v856_v60 = vpack.c.bf16 %v685_v58, %v681_v52 }
 0x12e   : > { %v857_v61 = vpack.c.bf16 %v795_v59, %v792_v53  ;;  %879 = vst [vmem:[#allocation2] sm:$0xff] %v855_v56 }
 0x12f   : > { %884 = vst [vmem:[#allocation2 + $0x28] sm:$0xff] %v860_v57  ;;  %880 = vst [vmem:[#allocation2 + $0x8] sm:$0xff] %v856_v60 }
 0x130   : > { %881 = vst [vmem:[#allocation2 + $0x10] sm:$0xff] %v857_v61 }
 0x131   : > { %v689_v62 = vpop.f32.mrb[4].mxu0 }
 0x132   : > { %v4063_v63 = vpop.f32.mrb[4].mxu1  ;;  %v691_v0 = vpop.f32.mrb[5].mxu0 }
 0x133   : > { %v808_v1 = vpop.f32.mrb[5].mxu1  ;;  %v693_v2 = vpop.f32.mrb[6].mxu0 }
 0x134   : > { %v4064_v3 = vpop.f32.mrb[6].mxu1  ;;  %v858_v4 = vpack.c.bf16 %v693_v2, %v689_v62  ;;  %v695_v6 = vpop.f32.mrb[7].mxu0 }
 0x135   : > { %v866_v5 = vpack.c.bf16 %v4064_v3, %v4063_v63  ;;  %v811_v7 = vpop.f32.mrb[7].mxu1  ;;  %v859_v8 = vpack.c.bf16 %v695_v6, %v691_v0 }
 0x136   : > { %v863_v9 = vpack.c.bf16 %v811_v7, %v808_v1  ;;  %882 = vst [vmem:[#allocation2 + $0x18] sm:$0xff] %v858_v4 }
 0x137   : > { %890 = vst [vmem:[#allocation2 + $0x58] sm:$0xff] %v866_v5  ;;  %883 = vst [vmem:[#allocation2 + $0x20] sm:$0xff] %v859_v8 }
 0x138   : > { %887 = vst [vmem:[#allocation2 + $0x40] sm:$0xff] %v863_v9 }
 0x139   : > { %v699_v10 = vpop.f32.mrb[8].mxu0 }
 0x13a   : > { %v4067_v11 = vpop.f32.mrb[8].mxu1  ;;  %v701_v12 = vpop.f32.mrb[9].mxu0 }
 0x13b   : > { %v824_v13 = vpop.f32.mrb[9].mxu1  ;;  %v703_v14 = vpop.f32.mrb[10].mxu0 }
 0x13c   : > { %v4068_v15 = vpop.f32.mrb[10].mxu1  ;;  %v861_v16 = vpack.c.bf16 %v703_v14, %v699_v10  ;;  %v705_v18 = vpop.f32.mrb[11].mxu0 }
 0x13d   : > { %v872_v17 = vpack.c.bf16 %v4068_v15, %v4067_v11  ;;  %v827_v19 = vpop.f32.mrb[11].mxu1  ;;  %v862_v20 = vpack.c.bf16 %v705_v18, %v701_v12 }
 0x13e   : > { %v869_v21 = vpack.c.bf16 %v827_v19, %v824_v13  ;;  %885 = vst [vmem:[#allocation2 + $0x30] sm:$0xff] %v861_v16 }
 0x13f   : > { %896 = vst [vmem:[#allocation2 + $0x88] sm:$0xff] %v872_v17  ;;  %886 = vst [vmem:[#allocation2 + $0x38] sm:$0xff] %v862_v20 }
 0x140   : > { %893 = vst [vmem:[#allocation2 + $0x70] sm:$0xff] %v869_v21 }
 0x141   : > { %v709_v22 = vpop.f32.mrb[12].mxu0 }
 0x142   : > { %v4071_v23 = vpop.f32.mrb[12].mxu1  ;;  %v711_v24 = vpop.f32.mrb[13].mxu0 }
 0x143   : > { %v840_v25 = vpop.f32.mrb[13].mxu1  ;;  %v713_v26 = vpop.f32.mrb[14].mxu0 }
 0x144   : > { %v4072_v27 = vpop.f32.mrb[14].mxu1  ;;  %v864_v28 = vpack.c.bf16 %v713_v26, %v709_v22  ;;  %v715_v30 = vpop.f32.mrb[15].mxu0 }
 0x145   : > { %v878_v29 = vpack.c.bf16 %v4072_v27, %v4071_v23  ;;  %v843_v31 = vpop.f32.mrb[15].mxu1  ;;  %v865_v32 = vpack.c.bf16 %v715_v30, %v711_v24 }
 0x146   : > { %v875_v33 = vpack.c.bf16 %v843_v31, %v840_v25  ;;  %888 = vst [vmem:[#allocation2 + $0x48] sm:$0xff] %v864_v28 }
 0x147   : > { %902 = vst [vmem:[#allocation2 + $0xb8] sm:$0xff] %v878_v29  ;;  %889 = vst [vmem:[#allocation2 + $0x50] sm:$0xff] %v865_v32 }
 0x148   : > { %899 = vst [vmem:[#allocation2 + $0xa0] sm:$0xff] %v875_v33 }
 0x149   : > { %v719_v34 = vpop.f32.mrb[16].mxu0 }
 0x14a   : > { %v4091_v35 = vpop.f32.mrb[16].mxu1  ;;  %v721_v36 = vpop.f32.mrb[17].mxu0 }
 0x14b   : > { %1130 = vst [vmem:[#allocation3 + $0x10] sm:$0xff] %v4091_v35  ;;  %v1065_v37 = vpop.f32.mrb[17].mxu1  ;;  %v723_v38 = vpop.f32.mrb[18].mxu0 }
 0x14c   : > { %1128 = vst [vmem:[#allocation3] sm:$0xff] %v1065_v37  ;;  %v4092_v39 = vpop.f32.mrb[18].mxu1  ;;  %v867_v40 = vpack.c.bf16 %v723_v38, %v719_v34  ;;  %v725_v41 = vpop.f32.mrb[19].mxu0 }
 0x14d   : > { %1131 = vst [vmem:[#allocation3 + $0x18] sm:$0xff] %v4092_v39  ;;  %v1068_v42 = vpop.f32.mrb[19].mxu1  ;;  %v868_v43 = vpack.c.bf16 %v725_v41, %v721_v36 }
 0x14e   : > { %1129 = vst [vmem:[#allocation3 + $0x8] sm:$0xff] %v1068_v42  ;;  %891 = vst [vmem:[#allocation2 + $0x60] sm:$0xff] %v867_v40 }
 0x14f   : > { %892 = vst [vmem:[#allocation2 + $0x68] sm:$0xff] %v868_v43 }
 0x151   : > { %v729_v44 = vpop.f32.mrb[20].mxu0 }
 0x152   : > { %v4095_v45 = vpop.f32.mrb[20].mxu1  ;;  %v731_v46 = vpop.f32.mrb[21].mxu0 }
 0x153   : > { %1134 = vst [vmem:[#allocation3 + $0x30] sm:$0xff] %v4095_v45  ;;  %v1081_v47 = vpop.f32.mrb[21].mxu1  ;;  %v733_v48 = vpop.f32.mrb[22].mxu0 }
 0x154   : > { %1132 = vst [vmem:[#allocation3 + $0x20] sm:$0xff] %v1081_v47  ;;  %v4096_v49 = vpop.f32.mrb[22].mxu1  ;;  %v870_v50 = vpack.c.bf16 %v733_v48, %v729_v44  ;;  %v735_v51 = vpop.f32.mrb[23].mxu0 }
 0x155   : > { %1135 = vst [vmem:[#allocation3 + $0x38] sm:$0xff] %v4096_v49  ;;  %v1084_v52 = vpop.f32.mrb[23].mxu1  ;;  %v871_v53 = vpack.c.bf16 %v735_v51, %v731_v46 }
 0x156   : > { %1133 = vst [vmem:[#allocation3 + $0x28] sm:$0xff] %v1084_v52  ;;  %894 = vst [vmem:[#allocation2 + $0x78] sm:$0xff] %v870_v50 }
 0x157   : > { %895 = vst [vmem:[#allocation2 + $0x80] sm:$0xff] %v871_v53 }
 0x159   : > { %v739_v54 = vpop.f32.mrb[24].mxu0 }
 0x15a   : > { %v4099_v55 = vpop.f32.mrb[24].mxu1  ;;  %v741_v56 = vpop.f32.mrb[25].mxu0 }
 0x15b   : > { %1138 = vst [vmem:[#allocation3 + $0x50] sm:$0xff] %v4099_v55  ;;  %v1097_v57 = vpop.f32.mrb[25].mxu1  ;;  %v743_v58 = vpop.f32.mrb[26].mxu0 }
 0x15c   : > { %1136 = vst [vmem:[#allocation3 + $0x40] sm:$0xff] %v1097_v57  ;;  %v4100_v59 = vpop.f32.mrb[26].mxu1  ;;  %v873_v60 = vpack.c.bf16 %v743_v58, %v739_v54  ;;  %v745_v61 = vpop.f32.mrb[27].mxu0 }
 0x15d   : > { %1139 = vst [vmem:[#allocation3 + $0x58] sm:$0xff] %v4100_v59  ;;  %v1100_v62 = vpop.f32.mrb[27].mxu1  ;;  %v874_v63 = vpack.c.bf16 %v745_v61, %v741_v56 }
 0x15e   : > { %1137 = vst [vmem:[#allocation3 + $0x48] sm:$0xff] %v1100_v62  ;;  %897 = vst [vmem:[#allocation2 + $0x90] sm:$0xff] %v873_v60 }
 0x15f   : > { %898 = vst [vmem:[#allocation2 + $0x98] sm:$0xff] %v874_v63 }
 0x161   : > { %v749_v0 = vpop.f32.mrb[28].mxu0 }
 0x162   : > { %v4103_v1 = vpop.f32.mrb[28].mxu1  ;;  %v751_v2 = vpop.f32.mrb[29].mxu0 }
 0x163   : > { %1142 = vst [vmem:[#allocation3 + $0x70] sm:$0xff] %v4103_v1  ;;  %v1113_v3 = vpop.f32.mrb[29].mxu1  ;;  %v753_v4 = vpop.f32.mrb[30].mxu0 }
 0x164   : > { %1140 = vst [vmem:[#allocation3 + $0x60] sm:$0xff] %v1113_v3  ;;  %v4104_v5 = vpop.f32.mrb[30].mxu1  ;;  %v876_v6 = vpack.c.bf16 %v753_v4, %v749_v0  ;;  %v755_v7 = vpop.f32.mrb[31].mxu0 }
 0x165   : > { %1143 = vst [vmem:[#allocation3 + $0x78] sm:$0xff] %v4104_v5  ;;  %v1116_v8 = vpop.f32.mrb[31].mxu1  ;;  %v877_v9 = vpack.c.bf16 %v755_v7, %v751_v2 }
 0x166   : > { %1141 = vst [vmem:[#allocation3 + $0x68] sm:$0xff] %v1116_v8  ;;  %900 = vst [vmem:[#allocation2 + $0xa8] sm:$0xff] %v876_v6 }
 0x167   : > { %901 = vst [vmem:[#allocation2 + $0xb0] sm:$0xff] %v877_v9 }
 0x168 PF: > { %v1162_v10 = vld [vmem:[%s4884_s12 + $0x10] sm:$0xff]  ;;  %v1160_v11 = vld [vmem:[%s4884_s12] sm:$0xff]  ;;  %s1435_s18 = sld [smem:[#allocation5]]  ;;  %v4769_v12 = vmov 0   ;;  %v1163_v13 = vld [vmem:[%s4884_s12 + $0x18] sm:$0xff]  ;;  %s5079_s21 = sld [smem:[#allocation5 + $0x2]] }
 0x169   : > { %4414 = vset.pattern.permute.xlu1 %v4769_v12  ;;  %4413 = vset.pattern.permute.xlu0 %v4769_v12  ;;  %s1533_s19 = sld [smem:[#allocation8]]  ;;  %v1161_v14 = vld [vmem:[%s4884_s12 + $0x8] sm:$0xff]  ;;  %v5054_v15 = vld [vmem:[%s4893_s20 + $0x10] sm:$0xff]  ;;  %v5057_v16 = vld [vmem:[%s4893_s20 + $0x18] sm:$0xff]  ;;  %s5231_s22 = sld [smem:[#allocation8 + $0x2]] }
 0x16a   : > { %1234 = vperm.xlu1 %4414, %v1162_v10   ;;  %1228 = vperm.xlu0 %4413, %v1160_v11   ;;  %v5060_v17 = vld [vmem:[%s4893_s20] sm:$0xff]  ;;  %v5063_v18 = vld [vmem:[%s4893_s20 + $0x8] sm:$0xff]  ;;  %v5066_v19 = vld [vmem:[%s4893_s20 + $0x30] sm:$0xff]  ;;  %s5238_s23 = sld [smem:[#allocation5 + $0x1]]  ;;  %p3812_p13 = scmp.ne.s32.totalorder %s4837_s14, 1 }
 0x16b   : > { %v5069_v20 = vld [vmem:[%s4893_s20 + $0x38] sm:$0xff]  ;;  %v5074_v22 = vld [vmem:[%s4893_s20 + $0x20] sm:$0xff]  ;;  %v5077_v23 = vld [vmem:[%s4893_s20 + $0x28] sm:$0xff]  ;;  %s5251_s24 = sld [smem:[#allocation8 + $0x1]] }
 0x16c   : > { %v1165_v24 = vld [vmem:[%s4884_s12 + $0x28] sm:$0xff]  ;;  %v1164_v25 = vld [vmem:[%s4884_s12 + $0x20] sm:$0xff]  ;;  %v1167_v42 = vld [vmem:[%s4884_s12 + $0x38] sm:$0xff] }
 0x16d   : > { %v1166_v43 = vld [vmem:[%s4884_s12 + $0x30] sm:$0xff]  ;;  %v1169_v52 = vld [vmem:[%s4884_s12 + $0x48] sm:$0xff]  ;;  %v1168_v53 = vld [vmem:[%s4884_s12 + $0x40] sm:$0xff] }
 0x16e   : > { %1237 = vperm.xlu1 %4414, %v1163_v13   ;;  %1231 = vperm.xlu0 %4413, %v1161_v14   ;;  %v5071_v21 = vstv %s1435_s18  ;;  %v5109_v58 = vld [vmem:[%s4893_s20 + $0x50] sm:$0xff]  ;;  %v5112_v59 = vld [vmem:[%s4893_s20 + $0x58] sm:$0xff]  ;;  %v5118_v63 = vld [vmem:[%s4893_s20 + $0x40] sm:$0xff] }
 0x16f   : > { %v1439_v26 = vsub.f32 %v5054_v15, %v5071_v21  ;;  %v1440_v27 = vsub.f32 %v5057_v16, %v5071_v21  ;;  %v5087_v28 = vstv %s1533_s19  ;;  %v1437_v29 = vsub.f32 %v5060_v17, %v5071_v21  ;;  %v5121_v0 = vld [vmem:[%s4893_s20 + $0x48] sm:$0xff]  ;;  %v1207_v1 = vld [vmem:[%s4893_s20 + $0x70] sm:$0xff]  ;;  %v5134_v14 = vld [vmem:[%s4893_s20 + $0x78] sm:$0xff] }
 0x170   : > { %v1438_v30 = vsub.f32 %v5063_v18, %v5071_v21  ;;  %v1443_v31 = vsub.f32 %v5066_v19, %v5071_v21  ;;  %v1444_v32 = vsub.f32 %v5069_v20, %v5071_v21  ;;  %v1441_v33 = vsub.f32 %v5074_v22, %v5071_v21 }
 0x171   : > { %v1471_v34 = vmul.f32 -0.5, %v1439_v26  ;;  %v1472_v35 = vmul.f32 -0.5, %v1440_v27  ;;  %v1469_v36 = vmul.f32 -0.5, %v1437_v29  ;;  %v1442_v37 = vsub.f32 %v5077_v23, %v5071_v21 }
 0x172   : > { %1243 = vperm.xlu1 %4414, %v1165_v24   ;;  %1240 = vperm.xlu0 %4413, %v1164_v25   ;;  %v1470_v38 = vmul.f32 -0.5, %v1438_v30  ;;  %v1475_v39 = vmul.f32 -0.5, %v1443_v31  ;;  %v1476_v40 = vmul.f32 -0.5, %v1444_v32  ;;  %v1473_v41 = vmul.f32 -0.5, %v1441_v33 }
 0x173   : > { %v1503_v44 = vmul.f32 %v1471_v34, %v1439_v26  ;;  %v1504_v45 = vmul.f32 %v1472_v35, %v1440_v27  ;;  %v1501_v46 = vmul.f32 %v1469_v36, %v1437_v29  ;;  %v1474_v47 = vmul.f32 -0.5, %v1442_v37  ;;  %v1171_v27 = vld [vmem:[%s4884_s12 + $0x58] sm:$0xff]  ;;  %v1170_v29 = vld [vmem:[%s4884_s12 + $0x50] sm:$0xff] }
 0x174   : > { %v1502_v48 = vmul.f32 %v1470_v38, %v1438_v30  ;;  %v1507_v49 = vmul.f32 %v1475_v39, %v1443_v31  ;;  %v1508_v50 = vmul.f32 %v1476_v40, %v1444_v32  ;;  %v1505_v51 = vmul.f32 %v1473_v41, %v1441_v33 }
 0x175   : > { %v1537_v54 = vmul.f32 %v5087_v28, %v1503_v44  ;;  %v1538_v55 = vmul.f32 %v5087_v28, %v1504_v45  ;;  %v1535_v56 = vmul.f32 %v5087_v28, %v1501_v46  ;;  %v1506_v57 = vmul.f32 %v1474_v47, %v1442_v37  ;;  %v5151_v46 = vld [vmem:[%s4893_s20 + $0x68] sm:$0xff]  ;;  %v1743_v47 = vld [vmem:[#allocation2] sm:$0xff] }
 0x176   : > { %1249 = vperm.xlu1 %4414, %v1167_v42   ;;  %1246 = vperm.xlu0 %4413, %v1166_v43   ;;  %v1536_v60 = vmul.f32 %v5087_v28, %v1502_v48  ;;  %v1541_v61 = vmul.f32 %v5087_v28, %v1507_v49  ;;  %v1542_v62 = vmul.f32 %v5087_v28, %v1508_v50  ;;  %v5125_v2 = vstv %s5079_s21  ;;  %v5146_v42 = vld [vmem:[%s4893_s20 + $0x60] sm:$0xff] }
 0x177   : > { %v1571_v3 = vmul.f32 1.442695, %v1537_v54  ;;  %v1573_v4 = vmul.f32 1.442695, %v1538_v55  ;;  %v1567_v5 = vmul.f32 1.442695, %v1535_v56  ;;  %v1539_v6 = vmul.f32 %v5087_v28, %v1505_v51  ;;  %4153 = vmatprep.subr.bf16.mxu0 %v1743_v47 }
 0x178   : > { %v1569_v7 = vmul.f32 1.442695, %v1536_v60  ;;  %v1579_v8 = vmul.f32 1.442695, %v1541_v61  ;;  %v1581_v9 = vmul.f32 1.442695, %v1542_v62  ;;  %v1540_v10 = vmul.f32 %v5087_v28, %v1506_v57  ;;  %4154 = vmatpush3.bf16.msra.mxu0 %v1743_v47 }
 0x179   : > { %4415 = vpow2.f32 %v1571_v3  ;;  %v1575_v11 = vmul.f32 1.442695, %v1539_v6  ;;  %v1447_v12 = vsub.f32 %v5109_v58, %v5071_v21  ;;  %v1448_v13 = vsub.f32 %v5112_v59, %v5071_v21  ;;  %v1211_v51 = vld [vmem:[%s4893_s20 + $0x90] sm:$0xff]  ;;  %v1212_v57 = vld [vmem:[%s4893_s20 + $0x98] sm:$0xff] }
 0x17a   : > { %1255 = vperm.xlu1 %4414, %v1169_v52   ;;  %1252 = vperm.xlu0 %4413, %v1168_v53   ;;  %4417 = vpow2.f32 %v1573_v4  ;;  %v1577_v24 = vmul.f32 1.442695, %v1540_v10  ;;  %v1445_v25 = vsub.f32 %v5118_v63, %v5071_v21  ;;  %v1446_v26 = vsub.f32 %v5121_v0, %v5071_v21  ;;  %v1744_v52 = vld [vmem:[#allocation2 + $0x18] sm:$0xff] }
 0x17b   : > { %4419 = vpow2.f32 %v1567_v5  ;;  %v1479_v30 = vmul.f32 -0.5, %v1447_v12  ;;  %v1480_v31 = vmul.f32 -0.5, %v1448_v13  ;;  %v1451_v32 = vsub.f32 %v1207_v1, %v5071_v21  ;;  %4155 = vmatprep.subr.bf16.mxu0 %v1744_v52 }
 0x17c   : > { %4421 = vpow2.f32 %v1569_v7  ;;  %v1477_v33 = vmul.f32 -0.5, %v1445_v25  ;;  %v1478_v34 = vmul.f32 -0.5, %v1446_v26  ;;  %v1452_v35 = vsub.f32 %v5134_v14, %v5071_v21  ;;  %v5165_v7 = vld [vmem:[%s4893_s20 + $0x80] sm:$0xff]  ;;  %4156 = vmatpush3.bf16.msra.mxu0 %v1744_v52 }
 0x17d   : > { %4423 = vpow2.f32 %v1579_v8  ;;  %v1511_v36 = vmul.f32 %v1479_v30, %v1447_v12  ;;  %v1512_v37 = vmul.f32 %v1480_v31, %v1448_v13  ;;  %v1483_v38 = vmul.f32 -0.5, %v1451_v32  ;;  %v1745_v8 = vld [vmem:[#allocation2 + $0x30] sm:$0xff] }
 0x17e   : > { %1261 = vperm.xlu1 %4414, %v1171_v27   ;;  %1258 = vperm.xlu0 %4413, %v1170_v29   ;;  %4425 = vpow2.f32 %v1581_v9  ;;  %v1509_v39 = vmul.f32 %v1477_v33, %v1445_v25  ;;  %v1510_v40 = vmul.f32 %v1478_v34, %v1446_v26  ;;  %v1484_v41 = vmul.f32 -0.5, %v1452_v35  ;;  %v5169_v27 = vld [vmem:[%s4893_s20 + $0x88] sm:$0xff] }
 0x17f   : > { %4427 = vpow2.f32 %v1575_v11  ;;  %v1545_v43 = vmul.f32 %v5087_v28, %v1511_v36  ;;  %v1546_v44 = vmul.f32 %v5087_v28, %v1512_v37  ;;  %v1515_v45 = vmul.f32 %v1483_v38, %v1451_v32  ;;  %4157 = vmatprep.subr.bf16.mxu0 %v1745_v8  ;;  %v1215_v37 = vld [vmem:[%s4893_s20 + $0xb0] sm:$0xff]  ;;  %v1746_v38 = vld [vmem:[#allocation2 + $0x48] sm:$0xff] }
 0x180   : > { %4429 = vpow2.f32 %v1577_v24  ;;  %v1543_v48 = vmul.f32 %v5087_v28, %v1509_v39  ;;  %v1544_v49 = vmul.f32 %v5087_v28, %v1510_v40  ;;  %v1516_v50 = vmul.f32 %v1484_v41, %v1452_v35  ;;  %4158 = vmatpush3.bf16.msra.mxu0 %v1745_v8 }
 0x181   : > { %v1587_v53 = vmul.f32 1.442695, %v1545_v43  ;;  %v1589_v54 = vmul.f32 1.442695, %v1546_v44  ;;  %v1549_v55 = vmul.f32 %v5087_v28, %v1515_v45  ;;  %v1449_v56 = vsub.f32 %v5146_v42, %v5071_v21  ;;  %4159 = vmatprep.subr.bf16.mxu0 %v1746_v38 }
 0x182   : > { %v1583_v60 = vmul.f32 1.442695, %v1543_v48  ;;  %v1585_v61 = vmul.f32 1.442695, %v1544_v49  ;;  %v1550_v62 = vmul.f32 %v5087_v28, %v1516_v50  ;;  %v1450_v1 = vsub.f32 %v5151_v46, %v5071_v21  ;;  %v1216_v50 = vld [vmem:[%s4893_s20 + $0xb8] sm:$0xff] }
 0x183   : > { %v4416_v3 = vpop.eup %4415  ;;  %4431 = vpow2.f32 %v1587_v53  ;;  %v1595_v4 = vmul.f32 1.442695, %v1549_v55  ;;  %v1481_v5 = vmul.f32 -0.5, %v1449_v56  ;;  %v1455_v6 = vsub.f32 %v1211_v51, %v5071_v21 }
 0x184   : > { %v4418_v9 = vpop.eup %4417  ;;  %4433 = vpow2.f32 %v1589_v54  ;;  %v1597_v10 = vmul.f32 1.442695, %v1550_v62  ;;  %v1482_v11 = vmul.f32 -0.5, %v1450_v1  ;;  %v1456_v12 = vsub.f32 %v1212_v57, %v5071_v21  ;;  %v5186_v62 = vld [vmem:[%s4893_s20 + $0xa8] sm:$0xff]  ;;  %4160 = vmatpush3.bf16.msra.mxu0 %v1746_v38 }
 0x185   : > { %v4420_v13 = vpop.eup %4419  ;;  %v1632_v24 = vpack.c.bf16 %v4418_v9, %v4416_v3  ;;  %4435 = vpow2.f32 %v1583_v60  ;;  %v1513_v25 = vmul.f32 %v1481_v5, %v1449_v56  ;;  %v1487_v26 = vmul.f32 -0.5, %v1455_v6  ;;  %v5183_v56 = vld [vmem:[%s4893_s20 + $0xa0] sm:$0xff] }
 0x186   : > { %v4422_v29 = vpop.eup %4421  ;;  %4437 = vpow2.f32 %v1585_v61  ;;  %v1514_v30 = vmul.f32 %v1482_v11, %v1450_v1  ;;  %v1488_v31 = vmul.f32 -0.5, %v1456_v12  ;;  %v1453_v32 = vsub.f32 %v5165_v7, %v5071_v21  ;;  %v1747_v1 = vld [vmem:[#allocation2 + $0x60] sm:$0xff]  ;;  %v1219_v11 = vld [vmem:[%s4893_s20 + $0xd0] sm:$0xff] }
 0x187   : > { %v4424_v33 = vpop.eup %4423  ;;  %1654 = vperm.xlu1 %4414, %v1632_v24   ;;  %v1631_v34 = vpack.c.bf16 %v4422_v29, %v4420_v13  ;;  %4439 = vpow2.f32 %v1595_v4  ;;  %v1547_v35 = vmul.f32 %v5087_v28, %v1513_v25  ;;  %v1519_v36 = vmul.f32 %v1487_v26, %v1455_v6  ;;  %4161 = vmatprep.subr.bf16.mxu0 %v1747_v1 }
 0x188   : > { %v4426_v39 = vpop.eup %4425  ;;  %4441 = vpow2.f32 %v1597_v10  ;;  %v1548_v40 = vmul.f32 %v5087_v28, %v1514_v30  ;;  %v1520_v41 = vmul.f32 %v1488_v31, %v1456_v12  ;;  %v1454_v43 = vsub.f32 %v5169_v27, %v5071_v21  ;;  %4162 = vmatpush3.bf16.msra.mxu0 %v1747_v1 }
 0x189   : > { %v4428_v44 = vpop.eup %4427  ;;  %1649 = vperm.xlu0 %4413, %v1631_v34   ;;  %v1634_v45 = vpack.c.bf16 %v4426_v39, %v4424_v33  ;;  %v1591_v47 = vmul.f32 1.442695, %v1547_v35  ;;  %v1553_v48 = vmul.f32 %v5087_v28, %v1519_v36  ;;  %v1485_v49 = vmul.f32 -0.5, %v1453_v32  ;;  %v1220_v33 = vld [vmem:[%s4893_s20 + $0xd8] sm:$0xff] }
 0x18a   : > { %v4430_v51 = vpop.eup %4429  ;;  %v1593_v52 = vmul.f32 1.442695, %v1548_v40  ;;  %v1554_v53 = vmul.f32 %v5087_v28, %v1520_v41  ;;  %v1486_v54 = vmul.f32 -0.5, %v1454_v43  ;;  %v1459_v55 = vsub.f32 %v1215_v37, %v5071_v21  ;;  %v1748_v34 = vld [vmem:[#allocation2 + $0x78] sm:$0xff] }
 0x18b   : > { %1664 = vperm.xlu1 %4414, %v1634_v45   ;;  %v1633_v57 = vpack.c.bf16 %v4430_v51, %v4428_v44  ;;  %4443 = vpow2.f32 %v1591_v47  ;;  %v1603_v60 = vmul.f32 1.442695, %v1553_v48  ;;  %v1517_v61 = vmul.f32 %v1485_v49, %v1453_v32  ;;  %v1217_v45 = vld [vmem:[%s4893_s20 + $0xc0] sm:$0xff]  ;;  %v1173_v48 = vld [vmem:[%s4884_s12 + $0x68] sm:$0xff]  ;;  %4163 = vmatprep.subr.bf16.mxu0 %v1748_v34 }
 0x18c   : > { %4445 = vpow2.f32 %v1593_v52  ;;  %v1605_v3 = vmul.f32 1.442695, %v1554_v53  ;;  %v1518_v4 = vmul.f32 %v1486_v54, %v1454_v43  ;;  %v1460_v5 = vsub.f32 %v1216_v50, %v5071_v21  ;;  %v1218_v52 = vld [vmem:[%s4893_s20 + $0xc8] sm:$0xff]  ;;  %4164 = vmatpush3.bf16.msra.mxu0 %v1748_v34  ;;  %v1221_v34 = vld [vmem:[%s4893_s20 + $0xe0] sm:$0xff] }
 0x18d   : > { %v4432_v6 = vpop.eup %4431  ;;  %1659 = vperm.xlu0 %4413, %v1633_v57   ;;  %4447 = vpow2.f32 %v1603_v60  ;;  %v1551_v8 = vmul.f32 %v5087_v28, %v1517_v61  ;;  %v1491_v9 = vmul.f32 -0.5, %v1459_v55  ;;  %v1457_v10 = vsub.f32 %v5183_v56, %v5071_v21  ;;  %v1749_v60 = vld [vmem:[#allocation2 + $0x90] sm:$0xff]  ;;  %v1172_v61 = vld [vmem:[%s4884_s12 + $0x60] sm:$0xff] }
 0x18e   : > { %v4434_v12 = vpop.eup %4433  ;;  %4449 = vpow2.f32 %v1605_v3  ;;  %v1552_v13 = vmul.f32 %v5087_v28, %v1518_v4  ;;  %v1492_v24 = vmul.f32 -0.5, %v1460_v5  ;;  %v1458_v25 = vsub.f32 %v5186_v62, %v5071_v21  ;;  %4165 = vmatprep.subr.bf16.mxu0 %v1749_v60 }
 0x18f   : > { %v4436_v26 = vpop.eup %4435  ;;  %v1636_v29 = vpack.c.bf16 %v4434_v12, %v4432_v6  ;;  %v1599_v30 = vmul.f32 1.442695, %v1551_v8  ;;  %v1523_v31 = vmul.f32 %v1491_v9, %v1459_v55  ;;  %v1489_v32 = vmul.f32 -0.5, %v1457_v10 }
 0x190   : > { %v4438_v35 = vpop.eup %4437  ;;  %v1601_v36 = vmul.f32 1.442695, %v1552_v13  ;;  %v1524_v37 = vmul.f32 %v1492_v24, %v1460_v5  ;;  %v1490_v38 = vmul.f32 -0.5, %v1458_v25  ;;  %v1463_v39 = vsub.f32 %v1219_v11, %v5071_v21  ;;  %v1223_v11 = vld [vmem:[%s4893_s20 + $0xf0] sm:$0xff]  ;;  %v1175_v13 = vld [vmem:[%s4884_s12 + $0x78] sm:$0xff]  ;;  %4166 = vmatpush3.bf16.msra.mxu0 %v1749_v60 }
 0x191   : > { %v5198_v40 = vpop.eup %4439  ;;  %1674 = vperm.xlu1 %4414, %v1636_v29   ;;  %v1635_v41 = vpack.c.bf16 %v4438_v35, %v4436_v26  ;;  %4451 = vpow2.f32 %v1599_v30  ;;  %v1557_v43 = vmul.f32 %v5087_v28, %v1523_v31  ;;  %v1521_v44 = vmul.f32 %v1489_v32, %v1457_v10  ;;  %v1224_v29 = vld [vmem:[%s4893_s20 + $0xf8] sm:$0xff]  ;;  %v1750_v35 = vld [vmem:[#allocation2 + $0xa8] sm:$0xff] }
 0x192   : > { %v5202_v47 = vpop.eup %4441  ;;  %4453 = vpow2.f32 %v1601_v36  ;;  %v1558_v49 = vmul.f32 %v5087_v28, %v1524_v37  ;;  %v1522_v50 = vmul.f32 %v1490_v38, %v1458_v25  ;;  %v1464_v51 = vsub.f32 %v1220_v33, %v5071_v21  ;;  %v1174_v37 = vld [vmem:[%s4884_s12 + $0x70] sm:$0xff]  ;;  %4167 = vmatprep.subr.bf16.mxu0 %v1750_v35 }
 0x193   : > { %1669 = vperm.xlu0 %4413, %v1635_v41   ;;  %v1638_v53 = vpack.c.bf16 %v5202_v47, %v5198_v40  ;;  %v1611_v54 = vmul.f32 1.442695, %v1557_v43  ;;  %v1555_v55 = vmul.f32 %v5087_v28, %v1521_v44  ;;  %v1495_v57 = vmul.f32 -0.5, %v1463_v39  ;;  %v1222_v43 = vld [vmem:[%s4893_s20 + $0xe8] sm:$0xff] }
 0x194   : > { %v1613_v1 = vmul.f32 1.442695, %v1558_v49  ;;  %v1556_v3 = vmul.f32 %v5087_v28, %v1522_v50  ;;  %v1496_v4 = vmul.f32 -0.5, %v1464_v51  ;;  %v1461_v5 = vsub.f32 %v1217_v45, %v5071_v21  ;;  %4168 = vmatpush3.bf16.msra.mxu0 %v1750_v35 }
 0x195   : > { %v5214_v6 = vpop.eup %4443  ;;  %1267 = vperm.xlu1 %4414, %v1173_v48   ;;  %4455 = vpow2.f32 %v1611_v54  ;;  %v1607_v8 = vmul.f32 1.442695, %v1555_v55  ;;  %v1527_v9 = vmul.f32 %v1495_v57, %v1463_v39  ;;  %v1462_v10 = vsub.f32 %v1218_v52, %v5071_v21 }
 0x196   : > { %v4446_v12 = vpop.eup %4445  ;;  %4457 = vpow2.f32 %v1613_v1  ;;  %v1609_v24 = vmul.f32 1.442695, %v1556_v3  ;;  %v1528_v25 = vmul.f32 %v1496_v4, %v1464_v51  ;;  %v1493_v26 = vmul.f32 -0.5, %v1461_v5 }
 0x197   : > { %v5220_v30 = vpop.eup %4447  ;;  %1264 = vperm.xlu0 %4413, %v1172_v61   ;;  %v1637_v31 = vpack.c.bf16 %v4446_v12, %v5214_v6  ;;  %4459 = vpow2.f32 %v1607_v8  ;;  %v1561_v32 = vmul.f32 %v5087_v28, %v1527_v9  ;;  %v1494_v33 = vmul.f32 -0.5, %v1462_v10 }
 0x198   : > { %v5225_v36 = vpop.eup %4449  ;;  %4461 = vpow2.f32 %v1609_v24  ;;  %v1562_v38 = vmul.f32 %v5087_v28, %v1528_v25  ;;  %v1525_v39 = vmul.f32 %v1493_v26, %v1461_v5  ;;  %v1467_v41 = vsub.f32 %v1223_v11, %v5071_v21  ;;  %v1176_v26 = vld [vmem:[%s4884_s12 + $0x80] sm:$0xff] }
 0x199   : > { %1273 = vperm.xlu1 %4414, %v1175_v13   ;;  %v1640_v44 = vpack.c.bf16 %v5225_v36, %v5220_v30  ;;  %v1619_v45 = vmul.f32 1.442695, %v1561_v32  ;;  %v1526_v48 = vmul.f32 %v1494_v33, %v1462_v10  ;;  %v1468_v49 = vsub.f32 %v1224_v29, %v5071_v21 }
 0x19a   : > { %v1621_v50 = vmul.f32 1.442695, %v1562_v38  ;;  %v1559_v51 = vmul.f32 %v5087_v28, %v1525_v39  ;;  %v1499_v52 = vmul.f32 -0.5, %v1467_v41  ;;  %v1465_v54 = vsub.f32 %v1221_v34, %v5071_v21 }
 0x19b   : > { %v5240_v55 = vpop.eup %4451  ;;  %1270 = vperm.xlu0 %4413, %v1174_v37   ;;  %4463 = vpow2.f32 %v1619_v45  ;;  %v1560_v57 = vmul.f32 %v5087_v28, %v1526_v48  ;;  %v1500_v61 = vmul.f32 -0.5, %v1468_v49  ;;  %v1466_v1 = vsub.f32 %v1222_v43, %v5071_v21  ;;  %v1177_v21 = vld [vmem:[%s4884_s12 + $0x88] sm:$0xff]  ;;  %v1179_v43 = vld [vmem:[%s4884_s12 + $0x98] sm:$0xff] }
 0x19c   : > { %v5244_v60 = vpop.eup %4453  ;;  %4465 = vpow2.f32 %v1621_v50  ;;  %v1615_v3 = vmul.f32 1.442695, %v1559_v51  ;;  %v1531_v4 = vmul.f32 %v1499_v52, %v1467_v41  ;;  %v1497_v5 = vmul.f32 -0.5, %v1465_v54 }
 0x19d   : > { %1684 = vperm.xlu1 %4414, %v1638_v53   ;;  %v1639_v6 = vpack.c.bf16 %v5244_v60, %v5240_v55  ;;  %v1617_v8 = vmul.f32 1.442695, %v1560_v57  ;;  %v1532_v9 = vmul.f32 %v1500_v61, %v1468_v49  ;;  %v1498_v10 = vmul.f32 -0.5, %v1466_v1 }
 0x19e   : > { %4467 = vpow2.f32 %v1615_v3  ;;  %v1565_v11 = vmul.f32 %v5087_v28, %v1531_v4  ;;  %v1529_v12 = vmul.f32 %v1497_v5, %v1465_v54  ;;  %v2391_v40 = vsub.f32 %v5060_v17, %v5125_v2  ;;  %v1178_v54 = vld [vmem:[%s4884_s12 + $0x90] sm:$0xff] }
 0x19f   : > { %v5257_v47 = vpop.eup %4455  ;;  %1679 = vperm.xlu0 %4413, %v1637_v31   ;;  %4469 = vpow2.f32 %v1617_v8  ;;  %v1566_v53 = vmul.f32 %v5087_v28, %v1532_v9  ;;  %v1530_v13 = vmul.f32 %v1498_v10, %v1466_v1  ;;  %v2392_v24 = vsub.f32 %v5063_v18, %v5125_v2 }
 0x1a0   : > { %v5262_v25 = vpop.eup %4457  ;;  %v1627_v29 = vmul.f32 1.442695, %v1565_v11  ;;  %v1563_v32 = vmul.f32 %v5087_v28, %v1529_v12  ;;  %v2423_v33 = vmul.f32 -0.5, %v2391_v40  ;;  %v5267_v34 = vstv %s5231_s22 }
 0x1a1   : > { %v5269_v35 = vpop.eup %4459  ;;  %1279 = vperm.xlu1 %4414, %v1177_v21   ;;  %v1642_v31 = vpack.c.bf16 %v5262_v25, %v5257_v47  ;;  %v1629_v37 = vmul.f32 1.442695, %v1566_v53  ;;  %v1564_v38 = vmul.f32 %v5087_v28, %v1530_v13  ;;  %v2424_v39 = vmul.f32 -0.5, %v2392_v24 }
 0x1a2   : > { %v5274_v41 = vpop.eup %4461  ;;  %4471 = vpow2.f32 %v1627_v29  ;;  %v1623_v45 = vmul.f32 1.442695, %v1563_v32  ;;  %v2455_v48 = vmul.f32 %v2423_v33, %v2391_v40  ;;  %v5278_v49 = vstv %s5238_s23 }
 0x1a3   : > { %1276 = vperm.xlu0 %4413, %v1176_v26   ;;  %v1641_v50 = vpack.c.bf16 %v5274_v41, %v5269_v35  ;;  %4473 = vpow2.f32 %v1629_v37  ;;  %v1625_v51 = vmul.f32 1.442695, %v1564_v38  ;;  %v2456_v52 = vmul.f32 %v2424_v39, %v2392_v24 }
 0x1a4   : > { %4475 = vpow2.f32 %v1623_v45  ;;  %v2489_v28 = vmul.f32 %v5267_v34, %v2455_v48  ;;  %v1753_v57 = vsub.f32 %v5060_v17, %v5278_v49  ;;  %v1754_v61 = vsub.f32 %v5063_v18, %v5278_v49 }
 0x1a5   : > { %v5288_v1 = vpop.eup %4463  ;;  %1285 = vperm.xlu1 %4414, %v1179_v43   ;;  %4477 = vpow2.f32 %v1625_v51  ;;  %v2490_v3 = vmul.f32 %v5267_v34, %v2456_v52  ;;  %v5292_v4 = vstv %s5251_s24  ;;  %v2393_v5 = vsub.f32 %v5054_v15, %v5125_v2  ;;  %v1180_v51 = vld [vmem:[%s4884_s12 + $0xa0] sm:$0xff] }
 0x1a6   : > { %v5296_v8 = vpop.eup %4465  ;;  %v2521_v9 = vmul.f32 1.442695, %v2489_v28  ;;  %v1785_v10 = vmul.f32 -0.5, %v1753_v57  ;;  %v1786_v21 = vmul.f32 -0.5, %v1754_v61  ;;  %v2394_v17 = vsub.f32 %v5057_v16, %v5125_v2 }
 0x1a7   : > { %1282 = vperm.xlu0 %4413, %v1178_v54   ;;  %v1644_v18 = vpack.c.bf16 %v5296_v8, %v5288_v1  ;;  %v2523_v11 = vmul.f32 1.442695, %v2490_v3  ;;  %v2425_v12 = vmul.f32 -0.5, %v2393_v5  ;;  %v1755_v40 = vsub.f32 %v5054_v15, %v5278_v49  ;;  %v1181_v15 = vld [vmem:[%s4884_s12 + $0xa8] sm:$0xff] }
 0x1a8   : > { %v5304_v53 = vpop.eup %4467  ;;  %4479 = vpow2.f32 %v2521_v9  ;;  %v1817_v13 = vmul.f32 %v1785_v10, %v1753_v57  ;;  %v1818_v24 = vmul.f32 %v1786_v21, %v1754_v61  ;;  %v2426_v26 = vmul.f32 -0.5, %v2394_v17  ;;  %v1183_v9 = vld [vmem:[%s4884_s12 + $0xb8] sm:$0xff] }
 0x1a9   : > { %v5306_v29 = vpop.eup %4469  ;;  %1694 = vperm.xlu1 %4414, %v1640_v44   ;;  %4481 = vpow2.f32 %v2523_v11  ;;  %v2457_v32 = vmul.f32 %v2425_v12, %v2393_v5  ;;  %v1756_v33 = vsub.f32 %v5057_v16, %v5278_v49  ;;  %v1787_v37 = vmul.f32 -0.5, %v1755_v40 }
 0x1aa   : > { %v1643_v38 = vpack.c.bf16 %v5306_v29, %v5304_v53  ;;  %v1851_v39 = vmul.f32 %v5292_v4, %v1817_v13  ;;  %v1852_v43 = vmul.f32 %v5292_v4, %v1818_v24  ;;  %v2458_v45 = vmul.f32 %v2426_v26, %v2394_v17  ;;  %v1182_v24 = vld [vmem:[%s4884_s12 + $0xb0] sm:$0xff] }
 0x1ab   : > { %1689 = vperm.xlu0 %4413, %v1639_v6   ;;  %v2491_v30 = vmul.f32 %v5267_v34, %v2457_v32  ;;  %v1788_v36 = vmul.f32 -0.5, %v1756_v33  ;;  %v1819_v44 = vmul.f32 %v1787_v37, %v1755_v40  ;;  %v2395_v16 = vsub.f32 %v5074_v22, %v5125_v2 }
 0x1ac   : > { %v5324_v48 = vpop.eup %4471  ;;  %v1883_v52 = vmul.f32 1.442695, %v1851_v39  ;;  %v1885_v54 = vmul.f32 1.442695, %v1852_v43  ;;  %v2492_v28 = vmul.f32 %v5267_v34, %v2458_v45  ;;  %v2396_v57 = vsub.f32 %v5077_v23, %v5125_v2 }
 0x1ad   : > { %v5330_v55 = vpop.eup %4473  ;;  %1291 = vperm.xlu1 %4414, %v1181_v15   ;;  %v2525_v60 = vmul.f32 1.442695, %v2491_v30  ;;  %v1820_v6 = vmul.f32 %v1788_v36, %v1756_v33  ;;  %v1853_v61 = vmul.f32 %v5292_v4, %v1819_v44  ;;  %v2427_v3 = vmul.f32 -0.5, %v2395_v16 }
 0x1ae   : > { %v5333_v5 = vpop.eup %4475  ;;  %v1646_v10 = vpack.c.bf16 %v5330_v55, %v5324_v48  ;;  %4483 = vpow2.f32 %v1883_v52  ;;  %v2527_v21 = vmul.f32 1.442695, %v2492_v28  ;;  %v2428_v17 = vmul.f32 -0.5, %v2396_v57 }
 0x1af   : > { %v5338_v11 = vpop.eup %4477  ;;  %1288 = vperm.xlu0 %4413, %v1180_v51   ;;  %4485 = vpow2.f32 %v1885_v54  ;;  %v1854_v12 = vmul.f32 %v5292_v4, %v1820_v6  ;;  %v1887_v40 = vmul.f32 1.442695, %v1853_v61  ;;  %v2459_v13 = vmul.f32 %v2427_v3, %v2395_v16  ;;  %v1185_v61 = vld [vmem:[%s4884_s12 + $0xc8] sm:$0xff] }
 0x1b0   : > { %v1645_v26 = vpack.c.bf16 %v5338_v11, %v5333_v5  ;;  %4487 = vpow2.f32 %v2525_v60  ;;  %v2460_v32 = vmul.f32 %v2428_v17, %v2396_v57  ;;  %v1757_v33 = vsub.f32 %v5074_v22, %v5278_v49 }
 0x1b1   : > { %1297 = vperm.xlu1 %4414, %v1183_v9   ;;  %4489 = vpow2.f32 %v2527_v21  ;;  %v1889_v37 = vmul.f32 1.442695, %v1854_v12  ;;  %v2493_v15 = vmul.f32 %v5267_v34, %v2459_v13  ;;  %v1758_v39 = vsub.f32 %v5077_v23, %v5278_v49 }
 0x1b2   : > { %v5349_v43 = vpop.eup %4479  ;;  %4491 = vpow2.f32 %v1887_v40  ;;  %v2494_v45 = vmul.f32 %v5267_v34, %v2460_v32  ;;  %v1789_v30 = vmul.f32 -0.5, %v1757_v33  ;;  %v2397_v36 = vsub.f32 %v5066_v19, %v5125_v2  ;;  %v1184_v40 = vld [vmem:[%s4884_s12 + $0xc0] sm:$0xff] }
 0x1b3   : > { %v5354_v44 = vpop.eup %4481  ;;  %1294 = vperm.xlu0 %4413, %v1182_v24   ;;  %4493 = vpow2.f32 %v1889_v37  ;;  %v2529_v22 = vmul.f32 1.442695, %v2493_v15  ;;  %v1790_v16 = vmul.f32 -0.5, %v1758_v39  ;;  %v2398_v51 = vsub.f32 %v5069_v20, %v5125_v2  ;;  %v5384_v15 = vld [vmem:[#allocation2 + $0x10] sm:$0xff] }
 0x1b4   : > { %v2585_v23 = vpack.c.bf16 %v5354_v44, %v5349_v43  ;;  %v2531_v52 = vmul.f32 1.442695, %v2494_v45  ;;  %v1821_v54 = vmul.f32 %v1789_v30, %v1757_v33  ;;  %v2429_v28 = vmul.f32 -0.5, %v2397_v36  ;;  %v1187_v45 = vld [vmem:[%s4884_s12 + $0xd8] sm:$0xff]  ;;  %4201 = vmatprep.subr.bf16.mxu0 %v5384_v15 }
 0x1b5   : > { %1704 = vperm.xlu1 %4414, %v1642_v31   ;;  %4495 = vpow2.f32 %v2529_v22  ;;  %v1822_v57 = vmul.f32 %v1790_v16, %v1758_v39  ;;  %v2430_v60 = vmul.f32 -0.5, %v2398_v51  ;;  %v1759_v6 = vsub.f32 %v5066_v19, %v5278_v49  ;;  %v2059_v19 = vld [vmem:[#allocation2 + $0x8] sm:$0xff] }
 0x1b6   : > { %4497 = vpow2.f32 %v2531_v52  ;;  %v1855_v3 = vmul.f32 %v5292_v4, %v1821_v54  ;;  %v2461_v9 = vmul.f32 %v2429_v28, %v2397_v36  ;;  %v1760_v21 = vsub.f32 %v5069_v20, %v5278_v49  ;;  %4105 = vmatprep.subr.bf16.mxu1 %v2059_v19 }
 0x1b7   : > { %1699 = vperm.xlu0 %4413, %v1641_v50   ;;  %v1856_v47 = vmul.f32 %v5292_v4, %v1822_v57  ;;  %v2462_v25 = vmul.f32 %v2430_v60, %v2398_v51  ;;  %v1791_v31 = vmul.f32 -0.5, %v1759_v6  ;;  %v2399_v17 = vsub.f32 %v5118_v63, %v5125_v2  ;;  %4106 = vmatpush3.bf16.msra.mxu1 %v2059_v19  ;;  %v1186_v57 = vld [vmem:[%s4884_s12 + $0xd0] sm:$0xff] }
 0x1b8   : > { %v5375_v12 = vpop.eup %4483  ;;  %v1891_v13 = vmul.f32 1.442695, %v1855_v3  ;;  %v2495_v24 = vmul.f32 %v5267_v34, %v2461_v9  ;;  %v1792_v20 = vmul.f32 -0.5, %v1760_v21  ;;  %v2400_v35 = vsub.f32 %v5121_v0, %v5125_v2 }
 0x1b9   : > { %v5381_v41 = vpop.eup %4485  ;;  %1303 = vperm.xlu1 %4414, %v1185_v61   ;;  %v1893_v50 = vmul.f32 1.442695, %v1856_v47  ;;  %v2496_v32 = vmul.f32 %v5267_v34, %v2462_v25  ;;  %v1823_v33 = vmul.f32 %v1791_v31, %v1759_v6  ;;  %v2431_v37 = vmul.f32 -0.5, %v2399_v17  ;;  %v2060_v25 = vld [vmem:[#allocation2 + $0x20] sm:$0xff] }
 0x1ba   : > { %v5386_v39 = vpop.eup %4487  ;;  %v1947_v30 = vpack.c.bf16 %v5381_v41, %v5375_v12  ;;  %4499 = vpow2.f32 %v1891_v13  ;;  %v2533_v36 = vmul.f32 1.442695, %v2495_v24  ;;  %v1824_v22 = vmul.f32 %v1792_v20, %v1760_v21  ;;  %4107 = vmatprep.subr.bf16.mxu1 %v2060_v25 }
 0x1bb   : > { %v5392_v16 = vpop.eup %4489  ;;  %1300 = vperm.xlu0 %4413, %v1184_v40   ;;  %4501 = vpow2.f32 %v1893_v50  ;;  %v2535_v51 = vmul.f32 1.442695, %v2496_v32  ;;  %v1857_v52 = vmul.f32 %v5292_v4, %v1823_v33  ;;  %v2432_v54 = vmul.f32 -0.5, %v2400_v35  ;;  %4108 = vmatpush3.bf16.msra.mxu1 %v2060_v25 }
 0x1bc   : > { %v5395_v28 = vpop.eup %4491  ;;  %v2586_v60 = vpack.c.bf16 %v5392_v16, %v5386_v39  ;;  %4503 = vpow2.f32 %v2533_v36  ;;  %v1858_v6 = vmul.f32 %v5292_v4, %v1824_v22  ;;  %v2463_v61 = vmul.f32 %v2431_v37, %v2399_v17  ;;  %v2061_v22 = vld [vmem:[#allocation2 + $0x38] sm:$0xff] }
 0x1bd   : > { %v5401_v3 = vpop.eup %4493  ;;  %1309 = vperm.xlu1 %4414, %v1187_v45   ;;  %4505 = vpow2.f32 %v2535_v51  ;;  %v1895_v9 = vmul.f32 1.442695, %v1857_v52  ;;  %v2464_v21 = vmul.f32 %v2432_v54, %v2400_v35  ;;  %v1761_v47 = vsub.f32 %v5118_v63, %v5278_v49  ;;  %v1189_v51 = vld [vmem:[%s4884_s12 + $0xe8] sm:$0xff]  ;;  %4109 = vmatprep.subr.bf16.mxu1 %v2061_v22 }
 0x1be   : > { %v1948_v31 = vpack.c.bf16 %v5401_v3, %v5395_v28  ;;  %v1897_v19 = vmul.f32 1.442695, %v1858_v6  ;;  %v2497_v40 = vmul.f32 %v5267_v34, %v2463_v61  ;;  %v1762_v13 = vsub.f32 %v5121_v0, %v5278_v49  ;;  %v2062_v6 = vld [vmem:[#allocation2 + $0x50] sm:$0xff] }
 0x1bf   : > { %v5410_v17 = vpop.eup %4495  ;;  %1306 = vperm.xlu0 %4413, %v1186_v57   ;;  %4507 = vpow2.f32 %v1895_v9  ;;  %v2498_v24 = vmul.f32 %v5267_v34, %v2464_v21  ;;  %v1793_v20 = vmul.f32 -0.5, %v1761_v47  ;;  %v2401_v63 = vsub.f32 %v5109_v58, %v5125_v2  ;;  %4110 = vmatpush3.bf16.msra.mxu1 %v2061_v22  ;;  %v1188_v9 = vld [vmem:[%s4884_s12 + $0xe0] sm:$0xff] }
 0x1c0   : > { %v5415_v35 = vpop.eup %4497  ;;  %4509 = vpow2.f32 %v1897_v19  ;;  %v2537_v50 = vmul.f32 1.442695, %v2497_v40  ;;  %v1794_v32 = vmul.f32 -0.5, %v1762_v13  ;;  %v2402_v0 = vsub.f32 %v5112_v59, %v5125_v2  ;;  %4111 = vmatprep.subr.bf16.mxu1 %v2062_v6 }
 0x1c1   : > { %1714 = vperm.xlu1 %4414, %v1644_v18   ;;  %v2587_v33 = vpack.c.bf16 %v5415_v35, %v5410_v17  ;;  %v2539_v37 = vmul.f32 1.442695, %v2498_v24  ;;  %v1825_v45 = vmul.f32 %v1793_v20, %v1761_v47  ;;  %v2433_v36 = vmul.f32 -0.5, %v2401_v63 }
 0x1c2   : > { %4511 = vpow2.f32 %v2537_v50  ;;  %v1826_v52 = vmul.f32 %v1794_v32, %v1762_v13  ;;  %v2434_v54 = vmul.f32 -0.5, %v2402_v0  ;;  %v1763_v57 = vsub.f32 %v5109_v58, %v5278_v49  ;;  %v1191_v13 = vld [vmem:[%s4884_s12 + $0xf8] sm:$0xff] }
 0x1c3   : > { %1709 = vperm.xlu0 %4413, %v1643_v38   ;;  %4513 = vpow2.f32 %v2539_v37  ;;  %v1859_v1 = vmul.f32 %v5292_v4, %v1825_v45  ;;  %v2465_v8 = vmul.f32 %v2433_v36, %v2401_v63  ;;  %v1764_v18 = vsub.f32 %v5112_v59, %v5278_v49  ;;  %4112 = vmatpush3.bf16.msra.mxu1 %v2062_v6  ;;  %v1190_v36 = vld [vmem:[%s4884_s12 + $0xf0] sm:$0xff] }
 0x1c4   : > { %v5433_v61 = vpop.eup %4499  ;;  %v1860_v58 = vmul.f32 %v5292_v4, %v1826_v52  ;;  %v2466_v21 = vmul.f32 %v2434_v54, %v2402_v0  ;;  %v1795_v47 = vmul.f32 -0.5, %v1763_v57  ;;  %v2403_v53 = vsub.f32 %v5146_v42, %v5125_v2 }
 0x1c5   : > { %v5439_v29 = vpop.eup %4501  ;;  %1315 = vperm.xlu1 %4414, %v1189_v51   ;;  %v1899_v38 = vmul.f32 1.442695, %v1859_v1  ;;  %v2499_v59 = vmul.f32 %v5267_v34, %v2465_v8  ;;  %v1796_v25 = vmul.f32 -0.5, %v1764_v18  ;;  %v2404_v19 = vsub.f32 %v5151_v46, %v5125_v2 }
 0x1c6   : > { %v5444_v40 = vpop.eup %4503  ;;  %v1949_v24 = vpack.c.bf16 %v5439_v29, %v5433_v61  ;;  %v1901_v20 = vmul.f32 1.442695, %v1860_v58  ;;  %v2500_v63 = vmul.f32 %v5267_v34, %v2466_v21  ;;  %v1827_v50 = vmul.f32 %v1795_v47, %v1763_v57  ;;  %v2063_v58 = vld [vmem:[#allocation2 + $0x68] sm:$0xff] }
 0x1c7   : > { %v5450_v32 = vpop.eup %4505  ;;  %1312 = vperm.xlu0 %4413, %v1188_v9   ;;  %4515 = vpow2.f32 %v1899_v38  ;;  %v2541_v0 = vmul.f32 1.442695, %v2499_v59  ;;  %v1828_v37 = vmul.f32 %v1796_v25, %v1764_v18  ;;  %v2435_v45 = vmul.f32 -0.5, %v2403_v53  ;;  %4113 = vmatprep.subr.bf16.mxu1 %v2063_v58 }
 0x1c8   : > { %4517 = vpow2.f32 %v1901_v20  ;;  %v2543_v22 = vmul.f32 1.442695, %v2500_v63  ;;  %v1861_v51 = vmul.f32 %v5292_v4, %v1827_v50  ;;  %v2436_v1 = vmul.f32 -0.5, %v2404_v19  ;;  %4114 = vmatpush3.bf16.msra.mxu1 %v2063_v58  ;;  %v4607_v63 = vld [vmem:[%s4893_s20 + $0x70] sm:$0xff]  ;;  %v4608_v58 = vld [vmem:[%s4893_s20 + $0x78] sm:$0xff] }
 0x1c9   : > { %v5454_v52 = vpop.eup %4507  ;;  %1321 = vperm.xlu1 %4414, %v1191_v13   ;;  %v1862_v54 = vmul.f32 %v5292_v4, %v1828_v37  ;;  %v2467_v57 = vmul.f32 %v2435_v45, %v2403_v53  ;;  %v1225_v8 = vlaneseq  ;;  %v2588_v18 = vpack.c.bf16 %v5450_v32, %v5444_v40  ;;  %v2064_v37 = vld [vmem:[#allocation2 + $0x80] sm:$0xff] }
 0x1ca   : > { %v5457_v9 = vpop.eup %4509  ;;  %v1903_v6 = vmul.f32 1.442695, %v1861_v51  ;;  %v1765_v21 = vsub.f32 %v5146_v42, %v5278_v49  ;;  %v1766_v47 = vsub.f32 %v5151_v46, %v5278_v49  ;;  %4519 = vpow2.f32 %v2541_v0  ;;  %4115 = vmatprep.subr.bf16.mxu1 %v2064_v37 }
 0x1cb   : > { %1318 = vperm.xlu0 %4413, %v1190_v36   ;;  %v1905_v38 = vmul.f32 1.442695, %v1862_v54  ;;  %v2468_v53 = vmul.f32 %v2436_v1, %v2404_v19  ;;  %v2501_v59 = vmul.f32 %v5267_v34, %v2467_v57  ;;  %4521 = vpow2.f32 %v2543_v22  ;;  %v2065_v54 = vld [vmem:[#allocation2 + $0x98] sm:$0xff] }
 0x1cc   : > { %v5466_v25 = vpop.eup %4511  ;;  %v1797_v13 = vmul.f32 -0.5, %v1765_v21  ;;  %v1798_v20 = vmul.f32 -0.5, %v1766_v47  ;;  %v2405_v50 = vsub.f32 %v4607_v63, %v5125_v2  ;;  %v1950_v46 = vpack.c.bf16 %v5457_v9, %v5454_v52  ;;  %4116 = vmatpush3.bf16.msra.mxu1 %v2064_v37 }
 0x1cd   : > { %v5470_v42 = vpop.eup %4513  ;;  %1724 = vperm.xlu1 %4414, %v1646_v10   ;;  %4523 = vpow2.f32 %v1903_v6  ;;  %v2502_v19 = vmul.f32 %v5267_v34, %v2468_v53  ;;  %v2406_v0 = vsub.f32 %v5134_v14, %v5125_v2  ;;  %v2545_v48 = vmul.f32 1.442695, %v2501_v59  ;;  %4117 = vmatprep.subr.bf16.mxu1 %v2065_v54 }
 0x1ce   : > { %4525 = vpow2.f32 %v1905_v38  ;;  %v1829_v45 = vmul.f32 %v1797_v13, %v1765_v21  ;;  %v1830_v36 = vmul.f32 %v1798_v20, %v1766_v47  ;;  %v2437_v22 = vmul.f32 -0.5, %v2405_v50 }
 0x1cf   : > { %1719 = vperm.xlu0 %4413, %v1645_v26   ;;  %v2547_v55 = vmul.f32 1.442695, %v2502_v19  ;;  %v2438_v10 = vmul.f32 -0.5, %v2406_v0  ;;  %v1767_v51 = vsub.f32 %v4607_v63, %v5278_v49  ;;  %v1768_v6 = vsub.f32 %v4608_v58, %v5278_v49  ;;  %v2066_v63 = vld [vmem:[#allocation2 + $0xb0] sm:$0xff] }
 0x1d0   : > { %v1863_v14 = vmul.f32 %v5292_v4, %v1829_v45  ;;  %v1864_v1 = vmul.f32 %v5292_v4, %v1830_v36  ;;  %v2469_v57 = vmul.f32 %v2437_v22, %v2405_v50  ;;  %v2589_v5 = vpack.c.bf16 %v5470_v42, %v5466_v25  ;;  %4118 = vmatpush3.bf16.msra.mxu1 %v2065_v54 }
 0x1d1   : > { %v5488_v21 = vpop.eup %4515  ;;  %2603 = vperm.xlu1 %4414, %v2585_v23   ;;  %v2470_v11 = vmul.f32 %v2438_v10, %v2406_v0  ;;  %v1799_v26 = vmul.f32 -0.5, %v1767_v51  ;;  %v2407_v47 = vsub.f32 %v5165_v7, %v5125_v2  ;;  %v1800_v20 = vmul.f32 -0.5, %v1768_v6  ;;  %4119 = vmatprep.subr.bf16.mxu1 %v2066_v63 }
 0x1d2   : > { %v5497_v38 = vpop.eup %4517  ;;  %v1907_v53 = vmul.f32 1.442695, %v1863_v14  ;;  %v1909_v59 = vmul.f32 1.442695, %v1864_v1  ;;  %v2503_v13 = vmul.f32 %v5267_v34, %v2469_v57  ;;  %4527 = vpow2.f32 %v2545_v48  ;;  %v4610_v57 = vld [vmem:[%s4893_s20 + $0x98] sm:$0xff] }
 0x1d3   : > { %1965 = vperm.xlu0 %4413, %v1947_v30   ;;  %v2504_v43 = vmul.f32 %v5267_v34, %v2470_v11  ;;  %v1831_v44 = vmul.f32 %v1799_v26, %v1767_v51  ;;  %v2408_v23 = vsub.f32 %v5169_v27, %v5125_v2  ;;  %4529 = vpow2.f32 %v2547_v55 }
 0x1d4   : > { %v2549_v50 = vmul.f32 1.442695, %v2503_v13  ;;  %v1832_v19 = vmul.f32 %v1800_v20, %v1768_v6  ;;  %v2439_v0 = vmul.f32 -0.5, %v2407_v47  ;;  %v5506_v37 = vpop.eup %4519  ;;  %v1951_v12 = vpack.c.bf16 %v5497_v38, %v5488_v21  ;;  %4120 = vmatpush3.bf16.msra.mxu1 %v2066_v63 }
 0x1d5   : > { %2608 = vperm.xlu1 %4414, %v2586_v60   ;;  %4531 = vpow2.f32 %v1907_v53  ;;  %v2551_v41 = vmul.f32 1.442695, %v2504_v43  ;;  %v1865_v30 = vmul.f32 %v5292_v4, %v1831_v44  ;;  %v5514_v45 = vpop.eup %4521  ;;  %v2440_v22 = vmul.f32 -0.5, %v2408_v23 }
 0x1d6   : > { %4533 = vpow2.f32 %v1909_v59  ;;  %v1866_v36 = vmul.f32 %v5292_v4, %v1832_v19  ;;  %v2471_v48 = vmul.f32 %v2439_v0, %v2407_v47  ;;  %v1769_v16 = vsub.f32 %v5165_v7, %v5278_v49  ;;  %v4609_v7 = vld [vmem:[%s4893_s20 + $0x90] sm:$0xff] }
 0x1d7   : > { %v5517_v55 = vpop.eup %4523  ;;  %1970 = vperm.xlu0 %4413, %v1948_v31   ;;  %4535 = vpow2.f32 %v2549_v50  ;;  %v1911_v39 = vmul.f32 1.442695, %v1865_v30  ;;  %v1770_v60 = vsub.f32 %v5169_v27, %v5278_v49  ;;  %v2472_v54 = vmul.f32 %v2440_v22, %v2408_v23 }
 0x1d8   : > { %v5526_v10 = vpop.eup %4525  ;;  %4537 = vpow2.f32 %v2551_v41  ;;  %v1913_v51 = vmul.f32 1.442695, %v1866_v36  ;;  %v2505_v14 = vmul.f32 %v5267_v34, %v2471_v48  ;;  %v1801_v28 = vmul.f32 -0.5, %v1769_v16 }
 0x1d9   : > { %2613 = vperm.xlu1 %4414, %v2587_v33   ;;  %4539 = vpow2.f32 %v1911_v39  ;;  %v1802_v3 = vmul.f32 -0.5, %v1770_v60  ;;  %v2409_v31 = vsub.f32 %v4609_v7, %v5125_v2  ;;  %v2506_v27 = vmul.f32 %v5267_v34, %v2472_v54  ;;  %v4611_v39 = vld [vmem:[%s4893_s20 + $0xa0] sm:$0xff] }
 0x1da   : > { %4541 = vpow2.f32 %v1913_v51  ;;  %v2553_v1 = vmul.f32 1.442695, %v2505_v14  ;;  %v2410_v58 = vsub.f32 %v4610_v57, %v5125_v2  ;;  %v1833_v6 = vmul.f32 %v1801_v28, %v1769_v16 }
 0x1db   : > { %1975 = vperm.xlu0 %4413, %v1949_v24   ;;  %v1834_v17 = vmul.f32 %v1802_v3, %v1770_v60  ;;  %v2441_v35 = vmul.f32 -0.5, %v2409_v31  ;;  %v1771_v33 = vsub.f32 %v4609_v7, %v5278_v49  ;;  %v2590_v11 = vpack.c.bf16 %v5514_v45, %v5506_v37  ;;  %v4612_v60 = vld [vmem:[%s4893_s20 + $0xa8] sm:$0xff]  ;;  %v4613_v3 = vld [vmem:[%s4893_s20 + $0xb0] sm:$0xff] }
 0x1dc   : > { %4543 = vpow2.f32 %v2553_v1  ;;  %v2555_v26 = vmul.f32 1.442695, %v2506_v27  ;;  %v2442_v47 = vmul.f32 -0.5, %v2410_v58  ;;  %v5543_v53 = vpop.eup %4527  ;;  %v1867_v61 = vmul.f32 %v5292_v4, %v1833_v6  ;;  %v4614_v1 = vld [vmem:[%s4893_s20 + $0xb8] sm:$0xff] }
 0x1dd   : > { %2618 = vperm.xlu1 %4414, %v2588_v18   ;;  %v1868_v29 = vmul.f32 %v5292_v4, %v1834_v17  ;;  %v2473_v24 = vmul.f32 %v2441_v35, %v2409_v31  ;;  %v1772_v59 = vsub.f32 %v4610_v57, %v5278_v49  ;;  %v4530_v13 = vpop.eup %4529  ;;  %v1803_v43 = vmul.f32 -0.5, %v1771_v33 }
 0x1de   : > { %4545 = vpow2.f32 %v2555_v26  ;;  %v2474_v20 = vmul.f32 %v2442_v47, %v2410_v58  ;;  %v2411_v44 = vsub.f32 %v5183_v56, %v5125_v2  ;;  %v1915_v40 = vmul.f32 1.442695, %v1867_v61 }
 0x1df   : > { %v5553_v23 = vpop.eup %4531  ;;  %1980 = vperm.xlu0 %4413, %v1950_v46   ;;  %v1917_v32 = vmul.f32 1.442695, %v1868_v29  ;;  %v2507_v18 = vmul.f32 %v5267_v34, %v2473_v24  ;;  %v1804_v63 = vmul.f32 -0.5, %v1772_v59  ;;  %v1952_v19 = vpack.c.bf16 %v5526_v10, %v5517_v55 }
 0x1e0   : > { %v4534_v50 = vpop.eup %4533  ;;  %v2508_v0 = vmul.f32 %v5267_v34, %v2474_v20  ;;  %v1835_v37 = vmul.f32 %v1803_v43, %v1771_v33  ;;  %v2412_v56 = vsub.f32 %v5186_v62, %v5125_v2  ;;  %4547 = vpow2.f32 %v1915_v40 }
 0x1e1   : > { %v5564_v41 = vpop.eup %4535  ;;  %2623 = vperm.xlu1 %4414, %v2589_v5   ;;  %v2557_v52 = vmul.f32 1.442695, %v2507_v18  ;;  %v1836_v9 = vmul.f32 %v1804_v63, %v1772_v59  ;;  %v2443_v46 = vmul.f32 -0.5, %v2411_v44  ;;  %v2591_v45 = vpack.c.bf16 %v4530_v13, %v5543_v53 }
 0x1e2   : > { %v4538_v30 = vpop.eup %4537  ;;  %4549 = vpow2.f32 %v1917_v32  ;;  %v2559_v36 = vmul.f32 1.442695, %v2508_v0  ;;  %v1869_v22 = vmul.f32 %v5292_v4, %v1835_v37  ;;  %v2444_v42 = vmul.f32 -0.5, %v2412_v56 }
 0x1e3   : > { %v5571_v62 = vpop.eup %4539  ;;  %1985 = vperm.xlu0 %4413, %v1951_v12   ;;  %4551 = vpow2.f32 %v2557_v52  ;;  %v1870_v25 = vmul.f32 %v5292_v4, %v1836_v9  ;;  %v2475_v5 = vmul.f32 %v2443_v46, %v2411_v44  ;;  %v1773_v16 = vsub.f32 %v4611_v39, %v5278_v49  ;;  %v4616_v39 = vld [vmem:[%s4893_s20 + $0xc8] sm:$0xff] }
 0x1e4   : > { %v4542_v48 = vpop.eup %4541  ;;  %4553 = vpow2.f32 %v2559_v36  ;;  %v1919_v55 = vmul.f32 1.442695, %v1869_v22  ;;  %v1774_v10 = vsub.f32 %v4612_v60, %v5278_v49  ;;  %v1953_v21 = vpack.c.bf16 %v4534_v50, %v5553_v23 }
 0x1e5   : > { %2628 = vperm.xlu1 %4414, %v2590_v11   ;;  %v1921_v38 = vmul.f32 1.442695, %v1870_v25  ;;  %v2476_v12 = vmul.f32 %v2444_v42, %v2412_v56  ;;  %v2509_v51 = vmul.f32 %v5267_v34, %v2475_v5  ;;  %v1805_v14 = vmul.f32 -0.5, %v1773_v16 }
 0x1e6   : > { %v4544_v54 = vpop.eup %4543  ;;  %4555 = vpow2.f32 %v1919_v55  ;;  %v1806_v28 = vmul.f32 -0.5, %v1774_v10  ;;  %v2413_v7 = vsub.f32 %v4613_v3, %v5125_v2  ;;  %v2414_v57 = vsub.f32 %v4614_v1, %v5125_v2 }
 0x1e7   : > { %1990 = vperm.xlu0 %4413, %v1952_v19   ;;  %4557 = vpow2.f32 %v1921_v38  ;;  %v2510_v31 = vmul.f32 %v5267_v34, %v2476_v12  ;;  %v2561_v27 = vmul.f32 1.442695, %v2509_v51  ;;  %v2592_v6 = vpack.c.bf16 %v4538_v30, %v5564_v41  ;;  %v4615_v41 = vld [vmem:[%s4893_s20 + $0xc0] sm:$0xff] }
 0x1e8   : > { %v4546_v58 = vpop.eup %4545  ;;  %v1837_v17 = vmul.f32 %v1805_v14, %v1773_v16  ;;  %v1838_v35 = vmul.f32 %v1806_v28, %v1774_v10  ;;  %v2445_v33 = vmul.f32 -0.5, %v2413_v7  ;;  %v2446_v53 = vmul.f32 -0.5, %v2414_v57 }
 0x1e9   : > { %2633 = vperm.xlu1 %4414, %v2591_v45   ;;  %v1235_v11 = vpop.permute.xlu1 %1234  ;;  %v5589_v26 = vpop.permute.xlu0 %1228  ;;  %4559 = vpow2.f32 %v2561_v27  ;;  %v2563_v47 = vmul.f32 1.442695, %v2510_v31  ;;  %v1775_v61 = vsub.f32 %v4613_v3, %v5278_v49  ;;  %v5595_v13 = vand.u32 127, %v1225_v8 }
 0x1ea   : > { %v1871_v29 = vmul.f32 %v5292_v4, %v1837_v17  ;;  %v1872_v24 = vmul.f32 %v5292_v4, %v1838_v35  ;;  %v4548_v59 = vpop.eup %4547  ;;  %v1954_v20 = vpack.c.bf16 %v4542_v48, %v5571_v62  ;;  %v2477_v43 = vmul.f32 %v2445_v33, %v2413_v7 }
 0x1eb   : > { %1995 = vperm.xlu0 %4413, %v1953_v21   ;;  %4561 = vpow2.f32 %v2563_v47  ;;  %v2593_v23 = vpack.c.bf16 %v4546_v58, %v4544_v54  ;;  %v2478_v18 = vmul.f32 %v2446_v53, %v2414_v57  ;;  %v1776_v37 = vsub.f32 %v4614_v1, %v5278_v49 }
 0x1ec   : > { %v4550_v44 = vpop.eup %4549  ;;  %v1923_v40 = vmul.f32 1.442695, %v1871_v29  ;;  %v1925_v32 = vmul.f32 1.442695, %v1872_v24  ;;  %v2511_v0 = vmul.f32 %v5267_v34, %v2477_v43  ;;  %v1807_v56 = vmul.f32 -0.5, %v1775_v61  ;;  %v4617_v24 = vld [vmem:[%s4893_s20 + $0xd0] sm:$0xff] }
 0x1ed   : > { %v4552_v63 = vpop.eup %4551  ;;  %2638 = vperm.xlu1 %4414, %v2592_v6   ;;  %v1238_v50 = vpop.permute.xlu1 %1237  ;;  %v2415_v52 = vsub.f32 %v4615_v41, %v5125_v2  ;;  %v2512_v46 = vmul.f32 %v5267_v34, %v2478_v18  ;;  %vm1325_vm0 = vcmp.eq.s32.totalorder %v5595_v13, %v1235_v11  ;;  %v1955_v30 = vpack.c.bf16 %v4550_v44, %v4548_v59 }
 0x1ee   : > { %v1232_v19 = vpop.permute.xlu0 %1231  ;;  %v4554_v9 = vpop.eup %4553  ;;  %4563 = vpow2.f32 %v1923_v40  ;;  %vm1326_vm1 = vcmp.eq.s32.totalorder %v5595_v13, %v1238_v50  ;;  %v2565_v22 = vmul.f32 1.442695, %v2511_v0  ;;  %v1808_v48 = vmul.f32 -0.5, %v1776_v37  ;;  %v4618_v40 = vld [vmem:[%s4893_s20 + $0xd8] sm:$0xff] }
 0x1ef   : > { %2000 = vperm.xlu0 %4413, %v1954_v20   ;;  %4565 = vpow2.f32 %v1925_v32  ;;  %v2594_v36 = vpack.c.bf16 %v4554_v9, %v4552_v63  ;;  %v2567_v62 = vmul.f32 1.442695, %v2512_v46  ;;  %v1839_v55 = vmul.f32 %v1807_v56, %v1775_v61 }
 0x1f0   : > { %v4556_v45 = vpop.eup %4555  ;;  %v2416_v16 = vsub.f32 %v4616_v39, %v5125_v2  ;;  %v2447_v60 = vmul.f32 -0.5, %v2415_v52  ;;  %v4770_v10 = vmov 0.0   ;;  %vm1323_vm2 = vcmp.eq.s32.totalorder %v5595_v13, %v5589_v26 }
 0x1f1   : > { %v4558_v25 = vpop.eup %4557  ;;  %2643 = vperm.xlu1 %4414, %v2593_v23   ;;  %v1244_v42 = vpop.permute.xlu1 %1243  ;;  %v3714_v21 = vsel %vm1325_vm0, 1.0, %v4770_v10  ;;  %vm1324_vm3 = vcmp.eq.s32.totalorder %v5595_v13, %v1232_v19  ;;  %4567 = vpow2.f32 %v2565_v22  ;;  %v3715_v12 = vsel %vm1326_vm1, 1.0, %v4770_v10 }
 0x1f2   : > { %v1241_v5 = vpop.permute.xlu0 %1240  ;;  %v1956_v51 = vpack.c.bf16 %v4558_v25, %v4556_v45  ;;  %4569 = vpow2.f32 %v2567_v62  ;;  %v1840_v54 = vmul.f32 %v1808_v48, %v1776_v37  ;;  %v1873_v14 = vmul.f32 %v5292_v4, %v1839_v55 }
 0x1f3   : > { %v4560_v38 = vpop.eup %4559  ;;  %2005 = vperm.xlu0 %4413, %v1955_v30   ;;  %v2448_v28 = vmul.f32 -0.5, %v2416_v16  ;;  %v2479_v3 = vmul.f32 %v2447_v60, %v2415_v52  ;;  %v3712_v31 = vsel %vm1323_vm2, 1.0, %v4770_v10  ;;  %v1777_v57 = vsub.f32 %v4615_v41, %v5278_v49 }
 0x1f4   : > { %v1874_v1 = vmul.f32 %v5292_v4, %v1840_v54  ;;  %v1778_v58 = vsub.f32 %v4616_v39, %v5278_v49  ;;  %v5621_v6 = vpack.c.bf16 %v3715_v12, %v3714_v21  ;;  %v3713_v17 = vsel %vm1324_vm3, 1.0, %v4770_v10  ;;  %v4619_v54 = vld [vmem:[%s4893_s20 + $0xe0] sm:$0xff] }
 0x1f5   : > { %v4562_v7 = vpop.eup %4561  ;;  %2648 = vperm.xlu1 %4414, %v2594_v36   ;;  %v1250_v27 = vpop.permute.xlu1 %1249  ;;  %v1927_v33 = vmul.f32 1.442695, %v1873_v14  ;;  %vm1328_vm4 = vcmp.eq.s32.totalorder %v5595_v13, %v1244_v42  ;;  %vm1327_vm5 = vcmp.eq.s32.totalorder %v5595_v13, %v1241_v5  ;;  %v2480_v47 = vmul.f32 %v2448_v28, %v2416_v16 }
 0x1f6   : > { %v2595_v35 = vpack.c.bf16 %v4562_v7, %v4560_v38  ;;  %v1247_v11 = vpop.permute.xlu0 %1246  ;;  %v1929_v26 = vmul.f32 1.442695, %v1874_v1  ;;  %v2513_v61 = vmul.f32 %v5267_v34, %v2479_v3  ;;  %v1809_v29 = vmul.f32 -0.5, %v1777_v57 }
 0x1f7   : > { %2010 = vperm.xlu0 %4413, %v1956_v51   ;;  %4571 = vpow2.f32 %v1927_v33  ;;  %v2417_v59 = vsub.f32 %v4617_v24, %v5125_v2  ;;  %v2514_v44 = vmul.f32 %v5267_v34, %v2480_v47  ;;  %v1810_v23 = vmul.f32 -0.5, %v1778_v58 }
 0x1f8   : > { %v4564_v53 = vpop.eup %4563  ;;  %4573 = vpow2.f32 %v1929_v26  ;;  %v2418_v32 = vsub.f32 %v4618_v40, %v5125_v2  ;;  %v3717_v18 = vsel %vm1328_vm4, 1.0, %v4770_v10  ;;  %v3716_v63 = vsel %vm1327_vm5, 1.0, %v4770_v10 }
 0x1f9   : > { %v4566_v20 = vpop.eup %4565  ;;  %2653 = vperm.xlu1 %4414, %v2595_v35   ;;  %v1256_v43 = vpop.permute.xlu1 %1255  ;;  %v2569_v19 = vmul.f32 1.442695, %v2513_v61  ;;  %vm1330_vm6 = vcmp.eq.s32.totalorder %v5595_v13, %v1250_v27  ;;  %vm1329_vm7 = vcmp.eq.s32.totalorder %v5595_v13, %v1247_v11  ;;  %v2571_v0 = vmul.f32 1.442695, %v2514_v44  ;;  %v4620_v27 = vld [vmem:[%s4893_s20 + $0xe8] sm:$0xff] }
 0x1fa   : > { %v1957_v50 = vpack.c.bf16 %v4566_v20, %v4564_v53  ;;  %v1841_v37 = vmul.f32 %v1809_v29, %v1777_v57  ;;  %vm1332_vm8 = vcmp.eq.s32.totalorder %v5595_v13, %v1256_v43  ;;  %v1842_v41 = vmul.f32 %v1810_v23, %v1778_v58  ;;  %v5643_v46 = vpop.permute.xlu0 %1252 }
 0x1fb   : > { %v4568_v56 = vpop.eup %4567  ;;  %4575 = vpow2.f32 %v2569_v19  ;;  %v2449_v52 = vmul.f32 -0.5, %v2417_v59  ;;  %v2450_v45 = vmul.f32 -0.5, %v2418_v32  ;;  %v1779_v36 = vsub.f32 %v4617_v24, %v5278_v49 }
 0x1fc   : > { %2015 = vperm.xlu0 %4413, %v1957_v50   ;;  %v4570_v9 = vpop.eup %4569  ;;  %4577 = vpow2.f32 %v2571_v0  ;;  %v1875_v30 = vmul.f32 %v5292_v4, %v1841_v37  ;;  %v5647_v22 = vpack.c.bf16 %v3713_v17, %v3712_v31  ;;  %v5649_v62 = vpack.c.bf16 %v3717_v18, %v3716_v63 }
 0x1fd   : > { %v2596_v25 = vpack.c.bf16 %v4570_v9, %v4568_v56  ;;  %v1876_v42 = vmul.f32 %v5292_v4, %v1842_v41  ;;  %v5655_v5 = vsel %vm1330_vm6, 1.0, %v4770_v10  ;;  %v5660_v48 = vsel %vm1329_vm7, 1.0, %v4770_v10  ;;  %v5673_v3 = vpop.permute.xlu1 %1261 }
 0x1fe   : > { %v1931_v55 = vmul.f32 1.442695, %v1875_v30  ;;  %v2481_v39 = vmul.f32 %v2449_v52, %v2417_v59  ;;  %v5665_v16 = vsel %vm1332_vm8, 1.0, %v4770_v10  ;;  %vm1331_vm9 = vcmp.eq.s32.totalorder %v5595_v13, %v5643_v46  ;;  %v5679_v26 = vpop.permute.xlu0 %1258 }
 0x1ff   : > { %2658 = vperm.xlu1 %4414, %v2596_v25   ;;  %v1933_v60 = vmul.f32 1.442695, %v1876_v42  ;;  %v2482_v21 = vmul.f32 %v2450_v45, %v2418_v32  ;;  %v1780_v38 = vsub.f32 %v4618_v40, %v5278_v49  ;;  %v1811_v51 = vmul.f32 -0.5, %v1779_v36 }
 0x200   : > { %4579 = vpow2.f32 %v1931_v55  ;;  %v2515_v12 = vmul.f32 %v5267_v34, %v2481_v39  ;;  %v2419_v14 = vsub.f32 %v4619_v54, %v5125_v2  ;;  %v2420_v1 = vsub.f32 %v4620_v27, %v5125_v2  ;;  %v4621_v55 = vld [vmem:[%s4893_s20 + $0xf0] sm:$0xff] }
 0x201   : > { %v4572_v28 = vpop.eup %4571  ;;  %4581 = vpow2.f32 %v1933_v60  ;;  %v2516_v7 = vmul.f32 %v5267_v34, %v2482_v21  ;;  %v1812_v31 = vmul.f32 -0.5, %v1780_v38  ;;  %v1843_v17 = vmul.f32 %v1811_v51, %v1779_v36 }
 0x202   : > { %v4574_v57 = vpop.eup %4573  ;;  %v2573_v58 = vmul.f32 1.442695, %v2515_v12  ;;  %v2451_v35 = vmul.f32 -0.5, %v2419_v14  ;;  %v1781_v33 = vsub.f32 %v4619_v54, %v5278_v49  ;;  %v2452_v61 = vmul.f32 -0.5, %v2420_v1  ;;  %v4622_v12 = vld [vmem:[%s4893_s20 + $0xf8] sm:$0xff]  ;;  %v2698_v54 = vld [vmem:[#allocation2 + $0x28] sm:$0xff] }
 0x203   : > { %v1958_v11 = vpack.c.bf16 %v4574_v57, %v4572_v28  ;;  %v2575_v47 = vmul.f32 1.442695, %v2516_v7  ;;  %v1844_v53 = vmul.f32 %v1812_v31, %v1780_v38  ;;  %v1877_v29 = vmul.f32 %v5292_v4, %v1843_v17 }
 0x204   : > { %4583 = vpow2.f32 %v2573_v58  ;;  %v2483_v24 = vmul.f32 %v2451_v35, %v2419_v14  ;;  %v1782_v59 = vsub.f32 %v4620_v27, %v5278_v49  ;;  %v2484_v23 = vmul.f32 %v2452_v61, %v2420_v1 }
 0x205   : > { %v4576_v20 = vpop.eup %4575  ;;  %2020 = vperm.xlu0 %4413, %v1958_v11   ;;  %4585 = vpow2.f32 %v2575_v47  ;;  %v1878_v43 = vmul.f32 %v5292_v4, %v1844_v53  ;;  %v1813_v40 = vmul.f32 -0.5, %v1781_v33  ;;  %v1935_v18 = vmul.f32 1.442695, %v1877_v29  ;;  %v2699_v53 = vld [vmem:[#allocation2 + $0x40] sm:$0xff] }
 0x206   : > { %v1655_v44 = vpop.permute.xlu1 %1654  ;;  %v4578_v32 = vpop.eup %4577  ;;  %v2517_v50 = vmul.f32 %v5267_v34, %v2483_v24  ;;  %v1814_v19 = vmul.f32 -0.5, %v1782_v59  ;;  %v2518_v41 = vmul.f32 %v5267_v34, %v2484_v23  ;;  %v2421_v39 = vsub.f32 %v4621_v55, %v5125_v2 }
 0x207   : > { %v1728_v63 = vmul.bf16 %v1655_v44, %v5621_v6  ;;  %v2597_v0 = vpack.c.bf16 %v4578_v32, %v4576_v20  ;;  %v1937_v37 = vmul.f32 1.442695, %v1878_v43  ;;  %v1845_v52 = vmul.f32 %v1813_v40, %v1781_v33 }
 0x208   : > { %v1650_v56 = vpop.permute.xlu0 %1649  ;;  %4587 = vpow2.f32 %v1935_v18  ;;  %v2577_v9 = vmul.f32 1.442695, %v2517_v50  ;;  %v1846_v30 = vmul.f32 %v1814_v19, %v1782_v59  ;;  %v2579_v36 = vmul.f32 1.442695, %v2518_v41 }
 0x209   : > { %v1727_v45 = vmul.bf16 %v1650_v56, %v5647_v22  ;;  %2663 = vperm.xlu1 %4414, %v2597_v0   ;;  %4589 = vpow2.f32 %v1937_v37  ;;  %v1879_v25 = vmul.f32 %v5292_v4, %v1845_v52  ;;  %v3720_v21 = vsel %vm1331_vm9, 1.0, %v4770_v10 }
 0x20a   : > { %v1665_v42 = vpop.permute.xlu1 %1664  ;;  %v4580_v60 = vpop.eup %4579  ;;  %4591 = vpow2.f32 %v2577_v9  ;;  %v1880_v38 = vmul.f32 %v5292_v4, %v1846_v30  ;;  %v2422_v51 = vsub.f32 %v4622_v12, %v5125_v2  ;;  %v2453_v31 = vmul.f32 -0.5, %v2421_v39 }
 0x20b   : > { %4169 = vmatprep.mubr.bf16.mxu0 %v1727_v45  ;;  %v4582_v14 = vpop.eup %4581  ;;  %4593 = vpow2.f32 %v2579_v36  ;;  %v1939_v28 = vmul.f32 1.442695, %v1879_v25  ;;  %v1783_v27 = vsub.f32 %v4621_v55, %v5278_v49  ;;  %v1784_v2 = vsub.f32 %v4622_v12, %v5278_v49 }
 0x20c   : > { %4170 = vmatmul.mubr.bf16.vlgmr.msra.gmra.mrb[0].mxu0 %v1728_v63  ;;  %v1660_v7 = vpop.permute.xlu0 %1659  ;;  %v1959_v1 = vpack.c.bf16 %v4582_v14, %v4580_v60  ;;  %v1941_v57 = vmul.f32 1.442695, %v1880_v38  ;;  %v2454_v58 = vmul.f32 -0.5, %v2422_v51  ;;  %v2485_v17 = vmul.f32 %v2453_v31, %v2421_v39  ;;  %v2700_v63 = vld [vmem:[#allocation2 + $0x58] sm:$0xff] }
 0x20d   : > { %v1729_v46 = vmul.bf16 %v1660_v7, %v5649_v62  ;;  %4202 = vmatpush3.bf16.msra.mxu0 %v5384_v15  ;;  %4595 = vpow2.f32 %v1939_v28  ;;  %v1815_v35 = vmul.f32 -0.5, %v1783_v27  ;;  %v5704_v11 = vpack.c.bf16 %v5655_v5, %v5660_v48 }
 0x20e   : > { %4203 = vmatprep.subr.bf16.mxu0 %v2698_v54  ;;  %v4584_v33 = vpop.eup %4583  ;;  %2025 = vperm.xlu0 %4413, %v1959_v1   ;;  %4597 = vpow2.f32 %v1941_v57  ;;  %v2486_v47 = vmul.f32 %v2454_v58, %v2422_v51  ;;  %v5707_v29 = vpack.c.bf16 %v5665_v16, %v3720_v21  ;;  %v2519_v15 = vmul.f32 %v5267_v34, %v2485_v17  ;;  %v2702_v51 = vld [vmem:[#allocation2 + $0x88] sm:$0xff] }
 0x20f   : > { %4173 = vmatprep.mubr.bf16.mxu0 %v1729_v46  ;;  %v4586_v61 = vpop.eup %4585  ;;  %v1816_v24 = vmul.f32 -0.5, %v1784_v2  ;;  %v1847_v49 = vmul.f32 %v1815_v35, %v1783_v27  ;;  %vm1334_vm10 = vcmp.eq.s32.totalorder %v5595_v13, %v5673_v3  ;;  %vm1333_vm11 = vcmp.eq.s32.totalorder %v5595_v13, %v5679_v26  ;;  %v2701_v3 = vld [vmem:[#allocation2 + $0x70] sm:$0xff]  ;;  %v2703_v46 = vld [vmem:[#allocation2 + $0xa0] sm:$0xff] }
 0x210   : > { %v1675_v59 = vpop.permute.xlu1 %1674  ;;  %v2598_v5 = vpack.c.bf16 %v4586_v61, %v4584_v33  ;;  %v2520_v48 = vmul.f32 %v5267_v34, %v2486_v47  ;;  %v1730_v20 = vmul.bf16 %v1665_v42, %v5704_v11  ;;  %v2581_v43 = vmul.f32 1.442695, %v2519_v15  ;;  %v2704_v61 = vld [vmem:[#allocation2 + $0xb8] sm:$0xff] }
 0x211   : > { %4204 = vmatpush3.bf16.msra.mxu0 %v2698_v54  ;;  %v1848_v16 = vmul.f32 %v1816_v24, %v1784_v2  ;;  %v1881_v44 = vmul.f32 %v5292_v4, %v1847_v49  ;;  %v3723_v56 = vsel %vm1334_vm10, 1.0, %v4770_v10  ;;  %v3722_v41 = vsel %vm1333_vm11, 1.0, %v4770_v10 }
 0x212   : > { %v1670_v23 = vpop.permute.xlu0 %1669  ;;  %4205 = vmatprep.subr.bf16.mxu0 %v2699_v53  ;;  %v4588_v40 = vpop.eup %4587  ;;  %2668 = vperm.xlu1 %4414, %v2598_v5   ;;  %v2583_v32 = vmul.f32 1.442695, %v2520_v48  ;;  %4599 = vpow2.f32 %v2581_v43  ;;  %v5729_v25 = vpack.c.bf16 %v3723_v56, %v3722_v41 }
 0x213   : > { %v1731_v18 = vmul.bf16 %v1670_v23, %v5707_v29  ;;  %v4590_v50 = vpop.eup %4589  ;;  %v1882_v19 = vmul.f32 %v5292_v4, %v1848_v16  ;;  %v1943_v34 = vmul.f32 1.442695, %v1881_v44 }
 0x214   : > { %v1268_v0 = vpop.permute.xlu1 %1267  ;;  %4174 = vmatmul.mubr.bf16.gmra.mrb[4].mxu0 %v1730_v20  ;;  %v4592_v37 = vpop.eup %4591  ;;  %v1960_v52 = vpack.c.bf16 %v4590_v50, %v4588_v40  ;;  %4601 = vpow2.f32 %v2583_v32  ;;  %v1732_v39 = vmul.bf16 %v1675_v59, %v5729_v25 }
 0x215   : > { %4177 = vmatprep.mubr.bf16.mxu0 %v1731_v18  ;;  %4206 = vmatpush3.bf16.msra.mxu0 %v2699_v53  ;;  %v4594_v9 = vpop.eup %4593  ;;  %4603 = vpow2.f32 %v1943_v34  ;;  %v1945_v4 = vmul.f32 1.442695, %v1882_v19  ;;  %vm1336_vm12 = vcmp.eq.s32.totalorder %v5595_v13, %v1268_v0 }
 0x216   : > { %v1265_v30 = vpop.permute.xlu0 %1264  ;;  %4207 = vmatprep.subr.bf16.mxu0 %v2700_v63  ;;  %2030 = vperm.xlu0 %4413, %v1960_v52   ;;  %v2599_v45 = vpack.c.bf16 %v4594_v9, %v4592_v37  ;;  %v3725_v60 = vsel %vm1336_vm12, 1.0, %v4770_v10 }
 0x217   : > { %vm1335_vm13 = vcmp.eq.s32.totalorder %v5595_v13, %v1265_v30  ;;  %v4596_v36 = vpop.eup %4595  ;;  %4605 = vpow2.f32 %v1945_v4 }
 0x218   : > { %v1274_v26 = vpop.permute.xlu1 %1273  ;;  %v4598_v42 = vpop.eup %4597  ;;  %2673 = vperm.xlu1 %4414, %v2599_v45   ;;  %v3724_v21 = vsel %vm1335_vm13, 1.0, %v4770_v10 }
 0x219   : > { %vm1338_vm14 = vcmp.eq.s32.totalorder %v5595_v13, %v1274_v26  ;;  %4208 = vmatpush3.bf16.msra.mxu0 %v2700_v63  ;;  %v1961_v55 = vpack.c.bf16 %v4598_v42, %v4596_v36  ;;  %v5738_v28 = vpack.c.bf16 %v3725_v60, %v3724_v21 }
 0x21a   : > { %v1271_v38 = vpop.permute.xlu0 %1270  ;;  %4209 = vmatprep.subr.bf16.mxu0 %v2701_v3  ;;  %v3727_v12 = vsel %vm1338_vm14, 1.0, %v4770_v10 }
 0x21b   : > { %vm1337_vm15 = vcmp.eq.s32.totalorder %v5595_v13, %v1271_v38  ;;  %2035 = vperm.xlu0 %4413, %v1961_v55  }
 0x21c   : > { %v3726_v54 = vsel %vm1337_vm15, 1.0, %v4770_v10  ;;  %v1685_v14 = vpop.permute.xlu1 %1684  ;;  %4178 = vmatmul.mubr.bf16.gmra.mrb[8].mxu0 %v1732_v39  ;;  %v4600_v7 = vpop.eup %4599 }
 0x21d   : > { %4210 = vmatpush3.bf16.msra.mxu0 %v2701_v3  ;;  %v5740_v31 = vpack.c.bf16 %v3727_v12, %v3726_v54 }
 0x21e   : > { %v1680_v27 = vpop.permute.xlu0 %1679  ;;  %4211 = vmatprep.subr.bf16.mxu0 %v2702_v51  ;;  %v4602_v1 = vpop.eup %4601 }
 0x21f   : > { %v1733_v57 = vmul.bf16 %v1680_v27, %v5738_v28  ;;  %v4604_v58 = vpop.eup %4603  ;;  %v2600_v17 = vpack.c.bf16 %v4602_v1, %v4600_v7  ;;  %v1734_v33 = vmul.bf16 %v1685_v14, %v5740_v31 }
 0x220   : > { %v1280_v2 = vpop.permute.xlu1 %1279 }
 0x221   : > { %4181 = vmatprep.mubr.bf16.mxu0 %v1733_v57  ;;  %4212 = vmatpush3.bf16.msra.mxu0 %v2702_v51  ;;  %v4606_v35 = vpop.eup %4605  ;;  %vm1340_vm0 = vcmp.eq.s32.totalorder %v5595_v13, %v1280_v2 }
 0x222   : > { %2678 = vperm.xlu1 %4414, %v2600_v17   ;;  %v1277_v47 = vpop.permute.xlu0 %1276  ;;  %4213 = vmatprep.subr.bf16.mxu0 %v2703_v46  ;;  %v1962_v53 = vpack.c.bf16 %v4606_v35, %v4604_v58  ;;  %v3729_v24 = vsel %vm1340_vm0, 1.0, %v4770_v10 }
 0x223   : > { %vm1339_vm1 = vcmp.eq.s32.totalorder %v5595_v13, %v1277_v47 }
 0x224   : > { %v1286_v15 = vpop.permute.xlu1 %1285  ;;  %4182 = vmatmul.mubr.bf16.gmra.mrb[12].mxu0 %v1734_v33  ;;  %2040 = vperm.xlu0 %4413, %v1962_v53   ;;  %v3728_v49 = vsel %vm1339_vm1, 1.0, %v4770_v10 }
 0x225   : > { %vm1342_vm2 = vcmp.eq.s32.totalorder %v5595_v13, %v1286_v15  ;;  %4214 = vmatpush3.bf16.msra.mxu0 %v2703_v46  ;;  %v5752_v43 = vpack.c.bf16 %v3729_v24, %v3728_v49 }
 0x226   : > { %v3731_v59 = vsel %vm1342_vm2, 1.0, %v4770_v10  ;;  %v1283_v5 = vpop.permute.xlu0 %1282  ;;  %4215 = vmatprep.subr.bf16.mxu0 %v2704_v61 }
 0x227   : > { %vm1341_vm3 = vcmp.eq.s32.totalorder %v5595_v13, %v1283_v5 }
 0x228   : > { %v3730_v48 = vsel %vm1341_vm3, 1.0, %v4770_v10  ;;  %v1695_v20 = vpop.permute.xlu1 %1694 }
 0x229   : > { %v5754_v16 = vpack.c.bf16 %v3731_v59, %v3730_v48  ;;  %4216 = vmatpush3.bf16.msra.mxu0 %v2704_v61 }
 0x22a   : > { %v1690_v44 = vpop.permute.xlu0 %1689 }
 0x22b   : > { %v1736_v23 = vmul.bf16 %v1695_v20, %v5754_v16  ;;  %v1735_v40 = vmul.bf16 %v1690_v44, %v5752_v43 }
 0x22c   : > { %v1292_v32 = vpop.permute.xlu1 %1291 }
 0x22d   : > { %4185 = vmatprep.mubr.bf16.mxu0 %v1735_v40  ;;  %vm1344_vm4 = vcmp.eq.s32.totalorder %v5595_v13, %v1292_v32 }
 0x22e   : > { %4186 = vmatmul.mubr.bf16.gmra.mrb[16].mxu0 %v1736_v23  ;;  %v1289_v18 = vpop.permute.xlu0 %1288  ;;  %v3733_v50 = vsel %vm1344_vm4, 1.0, %v4770_v10 }
 0x22f   : > { %vm1343_vm5 = vcmp.eq.s32.totalorder %v5595_v13, %v1289_v18 }
 0x230   : > { %v1298_v63 = vpop.permute.xlu1 %1297  ;;  %v3732_v19 = vsel %vm1343_vm5, 1.0, %v4770_v10 }
 0x231   : > { %vm1346_vm6 = vcmp.eq.s32.totalorder %v5595_v13, %v1298_v63  ;;  %v5766_v41 = vpack.c.bf16 %v3733_v50, %v3732_v19 }
 0x232   : > { %v3735_v34 = vsel %vm1346_vm6, 1.0, %v4770_v10  ;;  %v1295_v0 = vpop.permute.xlu0 %1294 }
 0x233   : > { %vm1345_vm7 = vcmp.eq.s32.totalorder %v5595_v13, %v1295_v0 }
 0x234   : > { %v3734_v37 = vsel %vm1345_vm7, 1.0, %v4770_v10  ;;  %v1705_v56 = vpop.permute.xlu1 %1704 }
 0x235   : > { %v5768_v52 = vpack.c.bf16 %v3735_v34, %v3734_v37 }
 0x236   : > { %v1700_v9 = vpop.permute.xlu0 %1699 }
 0x237   : > { %v1738_v4 = vmul.bf16 %v1705_v56, %v5768_v52  ;;  %v1737_v30 = vmul.bf16 %v1700_v9, %v5766_v41 }
 0x238   : > { %v1304_v45 = vpop.permute.xlu1 %1303 }
 0x239   : > { %4189 = vmatprep.mubr.bf16.mxu0 %v1737_v30  ;;  %vm1348_vm8 = vcmp.eq.s32.totalorder %v5595_v13, %v1304_v45 }
 0x23a   : > { %4190 = vmatmul.mubr.bf16.gmra.mrb[20].mxu0 %v1738_v4  ;;  %v1301_v3 = vpop.permute.xlu0 %1300  ;;  %v3737_v26 = vsel %vm1348_vm8, 1.0, %v4770_v10 }
 0x23b   : > { %vm1347_vm9 = vcmp.eq.s32.totalorder %v5595_v13, %v1301_v3 }
 0x23c   : > { %v1310_v36 = vpop.permute.xlu1 %1309  ;;  %v3736_v42 = vsel %vm1347_vm9, 1.0, %v4770_v10 }
 0x23d   : > { %vm1350_vm10 = vcmp.eq.s32.totalorder %v5595_v13, %v1310_v36  ;;  %v5780_v38 = vpack.c.bf16 %v3737_v26, %v3736_v42 }
 0x23e   : > { %v3739_v55 = vsel %vm1350_vm10, 1.0, %v4770_v10  ;;  %v1307_v39 = vpop.permute.xlu0 %1306 }
 0x23f   : > { %vm1349_vm11 = vcmp.eq.s32.totalorder %v5595_v13, %v1307_v39 }
 0x240   : > { %v3738_v60 = vsel %vm1349_vm11, 1.0, %v4770_v10  ;;  %v1715_v21 = vpop.permute.xlu1 %1714 }
 0x241   : > { %v5782_v12 = vpack.c.bf16 %v3739_v55, %v3738_v60 }
 0x242   : > { %v1710_v51 = vpop.permute.xlu0 %1709 }
 0x243   : > { %v1740_v54 = vmul.bf16 %v1715_v21, %v5782_v12  ;;  %v1739_v14 = vmul.bf16 %v1710_v51, %v5780_v38 }
 0x244   : > { %v1316_v7 = vpop.permute.xlu1 %1315 }
 0x245   : > { %4193 = vmatprep.mubr.bf16.mxu0 %v1739_v14  ;;  %vm1352_vm12 = vcmp.eq.s32.totalorder %v5595_v13, %v1316_v7 }
 0x246   : > { %4194 = vmatmul.mubr.bf16.gmra.mrb[24].mxu0 %v1740_v54  ;;  %v1313_v27 = vpop.permute.xlu0 %1312  ;;  %v3741_v57 = vsel %vm1352_vm12, 1.0, %v4770_v10 }
 0x247   : > { %vm1351_vm13 = vcmp.eq.s32.totalorder %v5595_v13, %v1313_v27 }
 0x248   : > { %v1322_v1 = vpop.permute.xlu1 %1321  ;;  %v3740_v46 = vsel %vm1351_vm13, 1.0, %v4770_v10 }
 0x249   : > { %vm1354_vm14 = vcmp.eq.s32.totalorder %v5595_v13, %v1322_v1  ;;  %v5794_v33 = vpack.c.bf16 %v3741_v57, %v3740_v46 }
 0x24a   : > { %v3743_v58 = vsel %vm1354_vm14, 1.0, %v4770_v10  ;;  %v1319_v17 = vpop.permute.xlu0 %1318 }
 0x24b   : > { %vm1353_vm15 = vcmp.eq.s32.totalorder %v5595_v13, %v1319_v17 }
 0x24c   : > { %v3742_v2 = vsel %vm1353_vm15, 1.0, %v4770_v10  ;;  %v1725_v35 = vpop.permute.xlu1 %1724 }
 0x24d   : > { %v5796_v47 = vpack.c.bf16 %v3743_v58, %v3742_v2 }
 0x24e   : > { %v1720_v53 = vpop.permute.xlu0 %1719 }
 0x24f   : > { %v1742_v61 = vmul.bf16 %v1725_v35, %v5796_v47  ;;  %v1741_v15 = vmul.bf16 %v1720_v53, %v5794_v33 }
 0x250   : > { %v2604_v24 = vpop.permute.xlu1 %2603 }
 0x251   : > { %4197 = vmatprep.mubr.bf16.mxu0 %v1741_v15  ;;  %v2681_v49 = vmul.bf16 %v2604_v24, %v5647_v22 }
 0x252   : > { %4198 = vmatmul.mubr.bf16.gmra.mrb[28].mxu0 %v1742_v61  ;;  %v1966_v59 = vpop.permute.xlu0 %1965 }
 0x253   : > { %v2043_v13 = vmul.bf16 %v1966_v59, %v5647_v22  ;;  %4217 = vmatprep.mubr.bf16.mxu0 %v2681_v49 }
 0x254   : > { %v2609_v10 = vpop.permute.xlu1 %2608 }
 0x255   : > { %4121 = vmatprep.mubr.bf16.mxu1 %v2043_v13  ;;  %v2682_v5 = vmul.bf16 %v2609_v10, %v5621_v6 }
 0x256   : > { %v1971_v48 = vpop.permute.xlu0 %1970 }
 0x257   : > { %v2044_v20 = vmul.bf16 %v1971_v48, %v5621_v6 }
 0x258   : > { %v2614_v44 = vpop.permute.xlu1 %2613 }
 0x259   : > { %4122 = vmatmul.mubr.bf16.vlgmr.msra.gmra.mrb[0].mxu1 %v2044_v20  ;;  %v2683_v23 = vmul.bf16 %v2614_v44, %v5649_v62 }
 0x25a   : > { %4218 = vmatmul.mubr.bf16.vlgmr.msra.gmra.mrb[0].mxu0 %v2682_v5  ;;  %v1976_v40 = vpop.permute.xlu0 %1975  ;;  %v1192_v5 = vld [vmem:[%s408_s17] sm:$0x3] }
 0x25b   : > { %v2045_v32 = vmul.bf16 %v1976_v40, %v5649_v62  ;;  %4221 = vmatprep.mubr.bf16.mxu0 %v2683_v23 }
 0x25c   : > { %v2619_v18 = vpop.permute.xlu1 %2618 }
 0x25d   : > { %4125 = vmatprep.mubr.bf16.mxu1 %v2045_v32  ;;  %v2684_v22 = vmul.bf16 %v2619_v18, %v5704_v11  ;;  %v3035_v32 = vld [vmem:[#allocation4] sm:$0xff] }
 0x25e   : > { %v1981_v63 = vpop.permute.xlu0 %1980 }
 0x25f   : > { %v2046_v50 = vmul.bf16 %v1981_v63, %v5704_v11 }
 0x260   : > { %v2624_v19 = vpop.permute.xlu1 %2623 }
 0x261   : > { %4126 = vmatmul.mubr.bf16.gmra.mrb[4].mxu1 %v2046_v50  ;;  %v2685_v6 = vmul.bf16 %v2624_v19, %v5707_v29 }
 0x262   : > { %4222 = vmatmul.mubr.bf16.gmra.mrb[4].mxu0 %v2684_v22  ;;  %v1986_v34 = vpop.permute.xlu0 %1985 }
 0x263   : > { %v2047_v0 = vmul.bf16 %v1986_v34, %v5707_v29  ;;  %4225 = vmatprep.mubr.bf16.mxu0 %v2685_v6 }
 0x264   : > { %v2629_v37 = vpop.permute.xlu1 %2628 }
 0x265   : > { %4129 = vmatprep.mubr.bf16.mxu1 %v2047_v0  ;;  %v2686_v62 = vmul.bf16 %v2629_v37, %v5729_v25  ;;  %v3036_v0 = vld [vmem:[#allocation4 + $0x8] sm:$0xff] }
 0x266   : > { %v1991_v56 = vpop.permute.xlu0 %1990 }
 0x267   : > { %v2048_v9 = vmul.bf16 %v1991_v56, %v5729_v25 }
 0x268   : > { %v2634_v4 = vpop.permute.xlu1 %2633 }
 0x269   : > { %4130 = vmatmul.mubr.bf16.gmra.mrb[8].mxu1 %v2048_v9  ;;  %v2687_v11 = vmul.bf16 %v2634_v4, %v5738_v28 }
 0x26a   : > { %4226 = vmatmul.mubr.bf16.gmra.mrb[8].mxu0 %v2686_v62  ;;  %v1996_v30 = vpop.permute.xlu0 %1995 }
 0x26b   : > { %v2049_v45 = vmul.bf16 %v1996_v30, %v5738_v28  ;;  %4229 = vmatprep.mubr.bf16.mxu0 %v2687_v11 }
 0x26c   : > { %v2639_v3 = vpop.permute.xlu1 %2638 }
 0x26d   : > { %4133 = vmatprep.mubr.bf16.mxu1 %v2049_v45  ;;  %v2688_v29 = vmul.bf16 %v2639_v3, %v5740_v31 }
 0x26e   : > { %v2001_v36 = vpop.permute.xlu0 %2000 }
 0x26f   : > { %v2050_v26 = vmul.bf16 %v2001_v36, %v5740_v31 }
 0x270   : > { %v2644_v42 = vpop.permute.xlu1 %2643 }
 0x271   : > { %4134 = vmatmul.mubr.bf16.gmra.mrb[12].mxu1 %v2050_v26  ;;  %v2689_v25 = vmul.bf16 %v2644_v42, %v5752_v43 }
 0x272   : > { %4230 = vmatmul.mubr.bf16.gmra.mrb[12].mxu0 %v2688_v29  ;;  %v2006_v55 = vpop.permute.xlu0 %2005 }
 0x273   : > { %v2051_v39 = vmul.bf16 %v2006_v55, %v5752_v43  ;;  %4233 = vmatprep.mubr.bf16.mxu0 %v2689_v25  ;;  %v6316_v55 = vmov 0 }
 0x274   : > { %v2649_v60 = vpop.permute.xlu1 %2648 }
 0x275   : > { %4137 = vmatprep.mubr.bf16.mxu1 %v2051_v39  ;;  %v2690_v28 = vmul.bf16 %v2649_v60, %v5754_v16 }
 0x276   : > { %v2011_v21 = vpop.permute.xlu0 %2010 }
 0x277   : > { %v2052_v51 = vmul.bf16 %v2011_v21, %v5754_v16 }
 0x278   : > { %v2654_v54 = vpop.permute.xlu1 %2653 }
 0x279   : > { %4138 = vmatmul.mubr.bf16.gmra.mrb[16].mxu1 %v2052_v51  ;;  %v2691_v31 = vmul.bf16 %v2654_v54, %v5766_v41 }
 0x27a   : > { %4234 = vmatmul.mubr.bf16.gmra.mrb[16].mxu0 %v2690_v28 }
 0x27b   : > { %v2016_v14 = vpop.permute.xlu0 %2015  ;;  %4237 = vmatprep.mubr.bf16.mxu0 %v2691_v31 }
 0x27c   : > { %v2053_v7 = vmul.bf16 %v2016_v14, %v5766_v41 }
 0x27e   : > { %4141 = vmatprep.mubr.bf16.mxu1 %v2053_v7  ;;  %v2659_v27 = vpop.permute.xlu1 %2658 }
 0x27f   : > { %v2692_v43 = vmul.bf16 %v2659_v27, %v5768_v52 }
 0x282   : > { %4238 = vmatmul.mubr.bf16.gmra.mrb[20].mxu0 %v2692_v43 }
 0x284   : > { %v2021_v1 = vpop.permute.xlu0 %2020 }
 0x285   : > { %v2054_v57 = vmul.bf16 %v2021_v1, %v5768_v52 }
 0x287   : > { %4142 = vmatmul.mubr.bf16.gmra.mrb[20].mxu1 %v2054_v57 }
 0x288   : > { %v2664_v46 = vpop.permute.xlu1 %2663 }
 0x289   : > { %v2693_v16 = vmul.bf16 %v2664_v46, %v5780_v38  ;;  %v6318_v46 = vmov 0 }
 0x28b   : > { %4241 = vmatprep.mubr.bf16.mxu0 %v2693_v16 }
 0x28d   : > { %v2026_v58 = vpop.permute.xlu0 %2025 }
 0x28e   : > { %v2055_v17 = vmul.bf16 %v2026_v58, %v5780_v38 }
 0x290   : > { %4145 = vmatprep.mubr.bf16.mxu1 %v2055_v17 }
 0x291   : > { %v2669_v2 = vpop.permute.xlu1 %2668 }
 0x292   : > { %v2694_v41 = vmul.bf16 %v2669_v2, %v5782_v12  ;;  %v6320_v2 = vmov 0 }
 0x294   : > { %4242 = vmatmul.mubr.bf16.gmra.mrb[24].mxu0 %v2694_v41 }
 0x295   : > { %v2031_v35 = vpop.permute.xlu0 %2030 }
 0x296   : > { %v2056_v53 = vmul.bf16 %v2031_v35, %v5782_v12  ;;  %v5833_v12 = vshrl.u32 %v1225_v8, 7  ;;  %v4771_v8 = vmov 1.0|1.0  }
 0x297   : > { %v2674_v61 = vpop.permute.xlu1 %2673 }
 0x298   : > { %4146 = vmatmul.mubr.bf16.gmra.mrb[24].mxu1 %v2056_v53  ;;  %v2695_v52 = vmul.bf16 %v2674_v61, %v5794_v33  ;;  %v2921_v10 = vsub.s32 1, %v5833_v12  ;;  %v2900_v48 = vadd.s32 8, %v5833_v12  ;;  %v2901_v23 = vadd.s32 16, %v5833_v12 }
 0x299   : > { %v2902_v40 = vadd.s32 24, %v5833_v12  ;;  %v2903_v22 = vadd.s32 32, %v5833_v12  ;;  %v2904_v63 = vadd.s32 40, %v5833_v12  ;;  %v2905_v6 = vadd.s32 48, %v5833_v12 }
 0x29a   : > { %v2036_v15 = vpop.permute.xlu0 %2035  ;;  %4245 = vmatprep.mubr.bf16.mxu0 %v2695_v52  ;;  %v5843_v20 = vrot.slane %v1192_v5, %v2921_v10  ;;  %v2906_v34 = vadd.s32 56, %v5833_v12  ;;  %v2907_v62 = vadd.s32 64, %v5833_v12  ;;  %v2908_v56 = vadd.s32 72, %v5833_v12 }
 0x29b   : > { %v2057_v24 = vmul.bf16 %v2036_v15, %v5794_v33  ;;  %v2917_v33 = vsub.s32 0, %v5833_v12  ;;  %v2909_v11 = vadd.s32 80, %v5833_v12  ;;  %v2910_v30 = vadd.s32 88, %v5833_v12 }
 0x29c   : > { %vm2924_vm0 = vcmp.eq.s32.totalorder %v5833_v12, %v5843_v20  ;;  %vm2926_vm1 = vcmp.eq.s32.totalorder %v2900_v48, %v5843_v20  ;;  %vm2928_vm6 = vcmp.eq.s32.totalorder %v2901_v23, %v5843_v20  ;;  %vm2930_vm7 = vcmp.eq.s32.totalorder %v2902_v40, %v5843_v20 }
 0x29d   : > { %4149 = vmatprep.mubr.bf16.mxu1 %v2057_v24  ;;  %v5845_v44 = vrot.slane %v1192_v5, %v2917_v33  ;;  %vm3780_vm3 = vmpackc.low %vm2926_vm1, %vm2924_vm0  ;;  %vm2932_vm12 = vcmp.eq.s32.totalorder %v2903_v22, %v5843_v20  ;;  %vm2934_vm13 = vcmp.eq.s32.totalorder %v2904_v63, %v5843_v20  ;;  %v2911_v14 = vadd.s32 96, %v5833_v12 }
 0x29e   : > { %vm5864_vm10 = vmpackc.low %vm2930_vm7, %vm2928_vm6  ;;  %v2912_v7 = vadd.s32 104, %v5833_v12 }
 0x29f   : > { %vm2925_vm2 = vcmp.eq.s32.totalorder %v2900_v48, %v5845_v44  ;;  %vm2923_vm4 = vcmp.eq.s32.totalorder %v5833_v12, %v5845_v44  ;;  %vm2927_vm8 = vcmp.eq.s32.totalorder %v2901_v23, %v5845_v44  ;;  %vm2929_vm9 = vcmp.eq.s32.totalorder %v2902_v40, %v5845_v44  ;;  %vm5878_vm0 = vmpackc.low %vm2934_vm13, %vm2932_vm12 }
 0x2a0   : > { %vm5854_vm5 = vmpackc.low %vm2925_vm2, %vm2923_vm4  ;;  %vm2931_vm14 = vcmp.eq.s32.totalorder %v2903_v22, %v5845_v44  ;;  %vm2933_vm15 = vcmp.eq.s32.totalorder %v2904_v63, %v5845_v44  ;;  %vm2936_vm2 = vcmp.eq.s32.totalorder %v2905_v6, %v5843_v20  ;;  %vm2935_vm4 = vcmp.eq.s32.totalorder %v2905_v6, %v5845_v44 }
 0x2a1   : > { %v2679_v49 = vpop.permute.xlu1 %2678  ;;  %vm5868_vm11 = vmpackc.low %vm2929_vm9, %vm2927_vm8  ;;  %vm2937_vm6 = vcmp.eq.s32.totalorder %v2906_v34, %v5845_v44  ;;  %vm2940_vm9 = vcmp.eq.s32.totalorder %v2907_v62, %v5843_v20  ;;  %vm2942_vm12 = vcmp.eq.s32.totalorder %v2908_v56, %v5843_v20  ;;  %vm2939_vm13 = vcmp.eq.s32.totalorder %v2907_v62, %v5845_v44 }
 0x2a2   : > { %v2696_v38 = vmul.bf16 %v2679_v49, %v5796_v47  ;;  %vm5882_vm1 = vmpackc.low %vm2933_vm15, %vm2931_vm14  ;;  %vm2941_vm14 = vcmp.eq.s32.totalorder %v2908_v56, %v5845_v44  ;;  %v2913_v49 = vadd.s32 112, %v5833_v12 }
 0x2a3   : > { %v2041_v59 = vpop.permute.xlu0 %2040  ;;  %vm5896_vm8 = vmpackc.low %vm2937_vm6, %vm2935_vm4  ;;  %vm2946_vm4 = vcmp.eq.s32.totalorder %v2910_v30, %v5843_v20  ;;  %vm2943_vm6 = vcmp.eq.s32.totalorder %v2909_v11, %v5845_v44 }
 0x2a4   : > { %4246 = vmatmul.mubr.bf16.gmra.mrb[28].mxu0 %v2696_v38  ;;  %v2058_v13 = vmul.bf16 %v2041_v59, %v5796_v47  ;;  %vm5906_vm15 = vmpackc.low %vm2942_vm12, %vm2940_vm9  ;;  %vm2945_vm9 = vcmp.eq.s32.totalorder %v2910_v30, %v5845_v44  ;;  %v2914_v38 = vadd.s32 120, %v5833_v12 }
 0x2a6   : > { %4150 = vmatmul.mubr.bf16.gmra.mrb[28].mxu1 %v2058_v13 }
 0x2a7   : > { %3781 = vmatprep.mubr.msk.bf16.mxu1 %vm3780_vm3, %v4771_v8  ;;  %vm2938_vm3 = vcmp.eq.s32.totalorder %v2906_v34, %v5843_v20 }
 0x2a8   : > { %vm5892_vm7 = vmpackc.low %vm2938_vm3, %vm2936_vm2  ;;  %vm2944_vm3 = vcmp.eq.s32.totalorder %v2909_v11, %v5843_v20 }
 0x2a9   : > { %vm5910_vm2 = vmpackc.low %vm2941_vm14, %vm2939_vm13  ;;  %vm2948_vm14 = vcmp.eq.s32.totalorder %v2911_v14, %v5843_v20 }
 0x2aa   : > { %vm5920_vm12 = vmpackc.low %vm2946_vm4, %vm2944_vm3  ;;  %vm2950_vm3 = vcmp.eq.s32.totalorder %v2912_v7, %v5843_v20  ;;  %vm2947_vm4 = vcmp.eq.s32.totalorder %v2911_v14, %v5845_v44 }
 0x2ab   : > { %vm5926_vm13 = vmpackc.low %vm2945_vm9, %vm2943_vm6  ;;  %vm2949_vm6 = vcmp.eq.s32.totalorder %v2912_v7, %v5845_v44 }
 0x2ac   : > { %v6317_v55 = vsel %vm5926_vm13, 4294967295, %v6316_v55  ;;  %vm5946_vm9 = vmpackc.low %vm2950_vm3, %vm2948_vm14  ;;  %vm2952_vm14 = vcmp.eq.s32.totalorder %v2913_v49, %v5843_v20  ;;  %vm2954_vm3 = vcmp.eq.s32.totalorder %v2914_v38, %v5843_v20 }
 0x2ad   : > { %v6319_v46 = vsel %vm5946_vm9, 4294967295, %v6318_v46  ;;  %vm5952_vm13 = vmpackc.low %vm2949_vm6, %vm2947_vm4  ;;  %vm2951_vm4 = vcmp.eq.s32.totalorder %v2913_v49, %v5845_v44  ;;  %vm2953_vm6 = vcmp.eq.s32.totalorder %v2914_v38, %v5845_v44 }
 0x2ae   : > { %v6321_v2 = vsel %vm5952_vm13, 4294967295, %v6320_v2  ;;  %vm5972_vm13 = vmpackc.low %vm2954_vm3, %vm2952_vm14 }
 0x2af   : > { %vm5978_vm9 = vmpackc.low %vm2953_vm6, %vm2951_vm4 }
 0x32c   : > { %v4123_v45 = vpop.f32.mrb[0].mxu1 }
 0x32d   : > { %v2101_v3 = vpop.f32.mrb[1].mxu1  ;;  %v4219_v29 = vpop.f32.mrb[0].mxu0 }
 0x32e   : > { %v5924_v26 = vadd.f32 %v4219_v29, %v4123_v45  ;;  %v4124_v42 = vpop.f32.mrb[2].mxu1  ;;  %v2739_v25 = vpop.f32.mrb[1].mxu0 }
 0x32f   : > { %v5930_v39 = vadd.f32 %v2739_v25, %v2101_v3  ;;  %v2104_v60 = vpop.f32.mrb[3].mxu1  ;;  %v4220_v28 = vpop.f32.mrb[2].mxu0 }
 0x330   : > { %v5932_v21 = vadd.f32 %v4220_v28, %v4124_v42  ;;  %v2742_v51 = vpop.f32.mrb[3].mxu0 }
 0x331   : > { %v5934_v54 = vadd.f32 %v2742_v51, %v2104_v60 }
 0x332   : > { %v3052_v31 = vpack.c.bf16 %v5932_v21, %v5924_v26 }
 0x333   : > { %v3051_v27 = vpack.c.bf16 %v5934_v54, %v5930_v39 }
 0x334   : > { %v4127_v43 = vpop.f32.mrb[4].mxu1 }
 0x335   : > { %v2117_v1 = vpop.f32.mrb[5].mxu1  ;;  %v4223_v57 = vpop.f32.mrb[4].mxu0 }
 0x336   : > { %v5950_v16 = vadd.f32 %v4223_v57, %v4127_v43  ;;  %v4128_v58 = vpop.f32.mrb[6].mxu1  ;;  %v2755_v17 = vpop.f32.mrb[5].mxu0 }
 0x337   : > { %v5956_v41 = vadd.f32 %v2755_v17, %v2117_v1  ;;  %v2120_v35 = vpop.f32.mrb[7].mxu1  ;;  %v4224_v53 = vpop.f32.mrb[6].mxu0 }
 0x338   : > { %v5958_v61 = vadd.f32 %v4224_v53, %v4128_v58  ;;  %v2758_v52 = vpop.f32.mrb[7].mxu0 }
 0x339   : > { %v5960_v15 = vadd.f32 %v2758_v52, %v2120_v35 }
 0x33a   : > { %v3054_v24 = vpack.c.bf16 %v5958_v61, %v5950_v16 }
 0x33b   : > { %v3053_v59 = vpack.c.bf16 %v5960_v15, %v5956_v41 }
 0x33c   : > { %v4131_v13 = vpop.f32.mrb[8].mxu1 }
 0x33d   : > { %v2133_v10 = vpop.f32.mrb[9].mxu1  ;;  %v4227_v5 = vpop.f32.mrb[8].mxu0 }
 0x33e   : > { %v5976_v48 = vadd.f32 %v4227_v5, %v4131_v13  ;;  %v4132_v12 = vpop.f32.mrb[10].mxu1  ;;  %v2771_v23 = vpop.f32.mrb[9].mxu0 }
 0x33f   : > { %v5982_v22 = vadd.f32 %v2771_v23, %v2133_v10  ;;  %v2136_v20 = vpop.f32.mrb[11].mxu1  ;;  %v4228_v63 = vpop.f32.mrb[10].mxu0 }
 0x340   : > { %v5984_v6 = vadd.f32 %v4228_v63, %v4132_v12  ;;  %v2774_v44 = vpop.f32.mrb[11].mxu0 }
 0x341   : > { %v5986_v34 = vadd.f32 %v2774_v44, %v2136_v20 }
 0x342   : > { %v3056_v62 = vpack.c.bf16 %v5984_v6, %v5976_v48  ;;  %v3038_v6 = vld [vmem:[#allocation4 + $0x18] sm:$0xff] }
 0x343   : > { %v3055_v56 = vpack.c.bf16 %v5986_v34, %v5982_v22 }
 0x344   : > { %v4135_v11 = vpop.f32.mrb[12].mxu1 }
 0x345   : > { %v2149_v30 = vpop.f32.mrb[13].mxu1  ;;  %v4231_v45 = vpop.f32.mrb[12].mxu0 }
 0x346   : > { %v5992_v3 = vadd.f32 %v4231_v45, %v4135_v11  ;;  %v4136_v29 = vpop.f32.mrb[14].mxu1  ;;  %v2787_v42 = vpop.f32.mrb[13].mxu0 }
 0x347   : > { %v5994_v25 = vadd.f32 %v2787_v42, %v2149_v30  ;;  %v2152_v60 = vpop.f32.mrb[15].mxu1  ;;  %v4232_v28 = vpop.f32.mrb[14].mxu0 }
 0x348   : > { %v5996_v51 = vadd.f32 %v4232_v28, %v4136_v29  ;;  %v2790_v14 = vpop.f32.mrb[15].mxu0 }
 0x349   : > { %v5998_v7 = vadd.f32 %v2790_v14, %v2152_v60 }
 0x34a   : > { %v3058_v43 = vpack.c.bf16 %v5996_v51, %v5992_v3  ;;  %v3039_v3 = vld [vmem:[#allocation4 + $0x20] sm:$0xff] }
 0x34b   : > { %v3057_v1 = vpack.c.bf16 %v5998_v7, %v5994_v25 }
 0x34c   : > { %v4139_v57 = vpop.f32.mrb[16].mxu1 }
 0x34d   : > { %v2165_v58 = vpop.f32.mrb[17].mxu1  ;;  %v4235_v17 = vpop.f32.mrb[16].mxu0 }
 0x34e   : > { %v4265_v35 = vadd.f32 %v4235_v17, %v4139_v57  ;;  %v4140_v53 = vpop.f32.mrb[18].mxu1  ;;  %v2803_v52 = vpop.f32.mrb[17].mxu0 }
 0x34f   : > { %v4266_v49 = vadd.f32 %v2803_v52, %v2165_v58  ;;  %v2168_v38 = vpop.f32.mrb[19].mxu1  ;;  %v4236_v13 = vpop.f32.mrb[18].mxu0 }
 0x350   : > { %v4267_v10 = vadd.f32 %v4236_v13, %v4140_v53  ;;  %v2806_v5 = vpop.f32.mrb[19].mxu0 }
 0x351   : > { %v4268_v12 = vadd.f32 %v2806_v5, %v2168_v38 }
 0x352   : > { %v3060_v23 = vpack.c.bf16 %v4267_v10, %v4265_v35 }
 0x353   : > { %v3059_v20 = vpack.c.bf16 %v4268_v12, %v4266_v49 }
 0x355   : > { %v4239_v63 = vpop.f32.mrb[20].mxu0  ;;  %3977 = vmatprep.subr.bf16.mxu1 %v3059_v20 }
 0x356   : > { %v2819_v44 = vpop.f32.mrb[21].mxu0  ;;  %3978 = vmatpush3.bf16.msra.mxu1 %v3051_v27 }
 0x357   : > { %v4240_v11 = vpop.f32.mrb[22].mxu0  ;;  %3979 = vmatprep.subr.bf16.mxu1 %v3060_v23 }
 0x358   : > { %v2822_v30 = vpop.f32.mrb[23].mxu0 }
 0x35a   : > { %3980 = vmatpush3.bf16.msra.mxu1 %v3052_v31  ;;  %v4143_v45 = vpop.f32.mrb[20].mxu1 }
 0x35b   : > { %v2181_v29 = vpop.f32.mrb[21].mxu1  ;;  %v4269_v42 = vadd.f32 %v4239_v63, %v4143_v45 }
 0x35c   : > { %v4144_v60 = vpop.f32.mrb[22].mxu1  ;;  %v4270_v28 = vadd.f32 %v2819_v44, %v2181_v29 }
 0x35d   : > { %v2184_v14 = vpop.f32.mrb[23].mxu1  ;;  %v4271_v57 = vadd.f32 %v4240_v11, %v4144_v60 }
 0x35e   : > { %v4272_v58 = vadd.f32 %v2822_v30, %v2184_v14  ;;  %v3041_v14 = vld [vmem:[#allocation4 + $0x30] sm:$0xff] }
 0x35f   : > { %v3062_v17 = vpack.c.bf16 %v4271_v57, %v4269_v42 }
 0x360   : > { %v3061_v35 = vpack.c.bf16 %v4272_v58, %v4270_v28 }
 0x362   : > { %3981 = vmatprep.subr.bf16.mxu1 %v3061_v35  ;;  %v3042_v35 = vld [vmem:[#allocation4 + $0x38] sm:$0xff] }
 0x363   : > { %3982 = vmatpush3.bf16.msra.mxu1 %v3053_v59 }
 0x364   : > { %3983 = vmatprep.subr.bf16.mxu1 %v3062_v17 }
 0x367   : > { %v4243_v39 = vpop.f32.mrb[24].mxu0  ;;  %3984 = vmatpush3.bf16.msra.mxu1 %v3054_v24 }
 0x368   : > { %v2835_v26 = vpop.f32.mrb[25].mxu0 }
 0x369   : > { %v4244_v21 = vpop.f32.mrb[26].mxu0 }
 0x36a   : > { %v2838_v54 = vpop.f32.mrb[27].mxu0 }
 0x36b   : > { %v4147_v31 = vpop.f32.mrb[24].mxu1 }
 0x36c   : > { %v2197_v27 = vpop.f32.mrb[25].mxu1  ;;  %v4273_v53 = vadd.f32 %v4243_v39, %v4147_v31 }
 0x36d   : > { %v4148_v52 = vpop.f32.mrb[26].mxu1  ;;  %v4274_v49 = vadd.f32 %v2835_v26, %v2197_v27  ;;  %v3043_v27 = vld [vmem:[#allocation4 + $0x40] sm:$0xff] }
 0x36e   : > { %v2200_v38 = vpop.f32.mrb[27].mxu1  ;;  %v4275_v13 = vadd.f32 %v4244_v21, %v4148_v52 }
 0x36f   : > { %v4276_v10 = vadd.f32 %v2838_v54, %v2200_v38  ;;  %v3044_v38 = vld [vmem:[#allocation4 + $0x48] sm:$0xff] }
 0x370   : > { %v3064_v5 = vpack.c.bf16 %v4275_v13, %v4273_v53 }
 0x371   : > { %v3063_v41 = vpack.c.bf16 %v4276_v10, %v4274_v49 }
 0x373   : > { %3985 = vmatprep.subr.bf16.mxu1 %v3063_v41 }
 0x374   : > { %3986 = vmatpush3.bf16.msra.mxu1 %v3055_v56 }
 0x375   : > { %3987 = vmatprep.subr.bf16.mxu1 %v3064_v5 }
 0x377   : > { %v4247_v16 = vpop.f32.mrb[28].mxu0 }
 0x378   : > { %v2851_v61 = vpop.f32.mrb[29].mxu0  ;;  %3988 = vmatpush3.bf16.msra.mxu1 %v3056_v62 }
 0x379   : > { %v4248_v15 = vpop.f32.mrb[30].mxu0  ;;  %v4151_v24 = vpop.f32.mrb[28].mxu1 }
 0x37a   : > { %v2854_v59 = vpop.f32.mrb[31].mxu0  ;;  %v2213_v12 = vpop.f32.mrb[29].mxu1  ;;  %v4277_v23 = vadd.f32 %v4247_v16, %v4151_v24 }
 0x37b   : > { %v4152_v20 = vpop.f32.mrb[30].mxu1  ;;  %v4278_v63 = vadd.f32 %v2851_v61, %v2213_v12  ;;  %v3045_v61 = vld [vmem:[#allocation4 + $0x50] sm:$0xff]  ;;  %v3046_v12 = vld [vmem:[#allocation4 + $0x58] sm:$0xff] }
 0x37c   : > { %v2216_v44 = vpop.f32.mrb[31].mxu1  ;;  %v4279_v11 = vadd.f32 %v4248_v15, %v4152_v20 }
 0x37d   : > { %v4280_v30 = vadd.f32 %v2854_v59, %v2216_v44 }
 0x37e   : > { %v3066_v45 = vpack.c.bf16 %v4279_v11, %v4277_v23 }
 0x37f   : > { %v3065_v22 = vpack.c.bf16 %v4280_v30, %v4278_v63  ;;  %v3047_v30 = vld [vmem:[#allocation4 + $0x60] sm:$0xff] }
 0x381   : > { %3989 = vmatprep.subr.bf16.mxu1 %v3065_v22 }
 0x382   : > { %3990 = vmatpush3.bf16.msra.mxu1 %v3057_v1 }
 0x383   : > { %3991 = vmatprep.subr.bf16.mxu1 %v3066_v45 }
 0x386   : > { %3992 = vmatpush3.bf16.msra.mxu1 %v3058_v43  ;;  %v3040_v43 = vld [vmem:[#allocation4 + $0x28] sm:$0xff] }
 0x389   : > { %3783 = vmatmul.mubr.msk.bf16.vlgmr.msra.gmra.mrb[32].mxu1 %vm5854_vm5, %v4771_v8  ;;  %vm6326_vm5 = vnez %v6317_v55 }
 0x38a   : > { %3785 = vmatprep.mubr.msk.bf16.mxu1 %vm5864_vm10, %v4771_v8  ;;  %vm6327_vm10 = vnez %v6319_v46  ;;  %v3037_v46 = vld [vmem:[#allocation4 + $0x10] sm:$0xff] }
 0x391   : > { %3787 = vmatmul.mubr.msk.bf16.gmra.mrb[36].mxu1 %vm5868_vm11, %v4771_v8  ;;  %vm6328_vm11 = vnez %v6321_v2 }
 0x392   : > { %3789 = vmatprep.mubr.msk.bf16.mxu1 %vm5878_vm0, %v4771_v8 }
 0x399   : > { %3791 = vmatmul.mubr.msk.bf16.gmra.mrb[40].mxu1 %vm5882_vm1, %v4771_v8 }
 0x39a   : > { %3793 = vmatprep.mubr.msk.bf16.mxu1 %vm5892_vm7, %v4771_v8 }
 0x3a1   : > { %3795 = vmatmul.mubr.msk.bf16.gmra.mrb[44].mxu1 %vm5896_vm8, %v4771_v8 }
 0x3a2   : > { %3797 = vmatprep.mubr.msk.bf16.mxu1 %vm5906_vm15, %v4771_v8 }
 0x3a9   : > { %3799 = vmatmul.mubr.msk.bf16.gmra.mrb[48].mxu1 %vm5910_vm2, %v4771_v8 }
 0x3aa   : > { %3801 = vmatprep.mubr.msk.bf16.mxu1 %vm5920_vm12, %v4771_v8 }
 0x3b1   : > { %3803 = vmatmul.mubr.msk.bf16.gmra.mrb[52].mxu1 %vm6326_vm5, %v4771_v8 }
 0x3b2   : > { %3805 = vmatprep.mubr.msk.bf16.mxu1 %vm6327_vm10, %v4771_v8 }
 0x3b9   : > { %3807 = vmatmul.mubr.msk.bf16.gmra.mrb[56].mxu1 %vm6328_vm11, %v4771_v8 }
 0x3ba   : > { %3809 = vmatprep.mubr.msk.bf16.mxu1 %vm5972_vm13, %v4771_v8 }
 0x3c1   : > { %3811 = vmatmul.mubr.msk.bf16.gmra.mrb[60].mxu1 %vm5978_vm9, %v4771_v8 }
 0x45c   : > { %v3993_v47 = vpop.f32.mrb[32].mxu1 }
 0x45d   : > { %v3994_v18 = vpop.f32.mrb[33].mxu1 }
 0x45e   : > { %v3995_v50 = vadd.f32 %v3994_v18, %v3993_v47  ;;  %v3996_v19 = vpop.f32.mrb[34].mxu1 }
 0x45f   : > { %v3997_v37 = vpop.f32.mrb[35].mxu1 }
 0x460   : > { %v3164_v9 = vadd.f32 %v3995_v50, %v3035_v32  ;;  %v3998_v4 = vadd.f32 %v3997_v37, %v3996_v19  ;;  %v3048_v32 = vld [vmem:[#allocation4 + $0x68] sm:$0xff] }
 0x462   : > { %3180 = vst [vmem:[#allocation4] sm:$0xff] %v3164_v9  ;;  %v3165_v36 = vadd.f32 %v3998_v4, %v3036_v0  ;;  %v3049_v9 = vld [vmem:[#allocation4 + $0x70] sm:$0xff] }
 0x464   : > { %3181 = vst [vmem:[#allocation4 + $0x8] sm:$0xff] %v3165_v36  ;;  %v3999_v55 = vpop.f32.mrb[36].mxu1 }
 0x465   : > { %v4000_v2 = vpop.f32.mrb[37].mxu1 }
 0x466   : > { %v4001_v33 = vadd.f32 %v4000_v2, %v3999_v55  ;;  %v4002_v48 = vpop.f32.mrb[38].mxu1 }
 0x467   : > { %v4003_v40 = vpop.f32.mrb[39].mxu1 }
 0x468   : > { %v3166_v8 = vadd.f32 %v4001_v33, %v3037_v46  ;;  %v4004_v34 = vadd.f32 %v4003_v40, %v4002_v48  ;;  %v3050_v46 = vld [vmem:[#allocation4 + $0x78] sm:$0xff]  ;;  %v3218_v40 = vld [vmem:[%s6279_s4 + $0x10] sm:$0xff] (!%p3812_p13) }
 0x46a   : > { %3182 = vst [vmem:[#allocation4 + $0x10] sm:$0xff] %v3166_v8  ;;  %v3167_v62 = vadd.f32 %v4004_v34, %v3038_v6  ;;  %v3216_v8 = vld [vmem:[%s6279_s4] sm:$0xff] (!%p3812_p13)  ;;  %v4772_v34 = vmov (!%p3812_p13), 0  }
 0x46b   : > { %4624 = vset.pattern.permute.xlu1 (!%p3812_p13), %v4772_v34  ;;  %4623 = vset.pattern.permute.xlu0 (!%p3812_p13), %v4772_v34  ;;  %v3868_v34 = vld [vmem:[%s6275_s0 + $0x18] sm:$0xff] (!%p3812_p13)  }
 0x46c   : > { %3183 = vst [vmem:[#allocation4 + $0x18] sm:$0xff] %v3167_v62  ;;  %v4005_v56 = vpop.f32.mrb[40].mxu1  ;;  %3244 = vperm.xlu1 (!%p3812_p13), %4624, %v3218_v40   ;;  %3234 = vperm.xlu0 (!%p3812_p13), %4623, %v3216_v8   ;;  %v3219_v62 = vld [vmem:[%s6279_s4 + $0x18] sm:$0xff] (!%p3812_p13) }
 0x46d   : > { %v4006_v25 = vpop.f32.mrb[41].mxu1 }
 0x46e   : > { %v4007_v51 = vadd.f32 %v4006_v25, %v4005_v56  ;;  %v4008_v7 = vpop.f32.mrb[42].mxu1  ;;  %v3217_v56 = vld [vmem:[%s6279_s4 + $0x8] sm:$0xff] (!%p3812_p13)  ;;  %v3220_v25 = vld [vmem:[%s6279_s4 + $0x20] sm:$0xff] (!%p3812_p13) }
 0x46f   : > { %v4009_v1 = vpop.f32.mrb[43].mxu1 }
 0x470   : > { %v3168_v29 = vadd.f32 %v4007_v51, %v3039_v3  ;;  %v4010_v42 = vadd.f32 %v4009_v1, %v4008_v7  ;;  %3249 = vperm.xlu1 (!%p3812_p13), %4624, %v3219_v62   ;;  %3239 = vperm.xlu0 (!%p3812_p13), %4623, %v3217_v56   ;;  %v3221_v3 = vld [vmem:[%s6279_s4 + $0x28] sm:$0xff] (!%p3812_p13)  ;;  %v3223_v51 = vld [vmem:[%s6279_s4 + $0x38] sm:$0xff] (!%p3812_p13)  ;;  %v3222_v7 = vld [vmem:[%s6279_s4 + $0x30] sm:$0xff] (!%p3812_p13) }
 0x471   : > { %v3224_v1 = vld [vmem:[%s6279_s4 + $0x40] sm:$0xff] (!%p3812_p13) }
 0x472   : > { %3184 = vst [vmem:[#allocation4 + $0x20] sm:$0xff] %v3168_v29  ;;  %v3169_v60 = vadd.f32 %v4010_v42, %v3040_v43  ;;  %v3225_v43 = vld [vmem:[%s6279_s4 + $0x48] sm:$0xff] (!%p3812_p13)  ;;  %v3227_v29 = vld [vmem:[%s6279_s4 + $0x58] sm:$0xff] (!%p3812_p13)  ;;  %v3226_v42 = vld [vmem:[%s6279_s4 + $0x50] sm:$0xff] (!%p3812_p13) }
 0x474   : > { %3185 = vst [vmem:[#allocation4 + $0x28] sm:$0xff] %v3169_v60  ;;  %v4011_v28 = vpop.f32.mrb[44].mxu1  ;;  %3259 = vperm.xlu1 (!%p3812_p13), %4624, %v3221_v3   ;;  %3254 = vperm.xlu0 (!%p3812_p13), %4623, %v3220_v25   ;;  %v3229_v60 = vld [vmem:[%s6279_s4 + $0x68] sm:$0xff] (!%p3812_p13)  ;;  %v3335_v25 = vld [vmem:[#allocation3 + $0x38] sm:$0xff] (!%p3812_p13) }
 0x475   : > { %v4012_v57 = vpop.f32.mrb[45].mxu1 }
 0x476   : > { %v4013_v58 = vadd.f32 %v4012_v57, %v4011_v28  ;;  %v4014_v17 = vpop.f32.mrb[46].mxu1  ;;  %v3228_v28 = vld [vmem:[%s6279_s4 + $0x60] sm:$0xff] (!%p3812_p13)  ;;  %v3230_v57 = vld [vmem:[%s6279_s4 + $0x70] sm:$0xff] (!%p3812_p13) }
 0x477   : > { %v4015_v39 = vpop.f32.mrb[47].mxu1 }
 0x478   : > { %v3170_v26 = vadd.f32 %v4013_v58, %v3041_v14  ;;  %v4016_v21 = vadd.f32 %v4015_v39, %v4014_v17  ;;  %3269 = vperm.xlu1 (!%p3812_p13), %4624, %v3223_v51   ;;  %3264 = vperm.xlu0 (!%p3812_p13), %4623, %v3222_v7   ;;  %v3231_v14 = vld [vmem:[%s6279_s4 + $0x78] sm:$0xff] (!%p3812_p13)  ;;  %v3202_v58 = vld [vmem:[#allocation4 + $0x10] sm:$0xff] (!%p3812_p13)  ;;  %v3200_v17 = vld [vmem:[#allocation4] sm:$0xff] (!%p3812_p13) }
 0x479   : > { %v3866_v39 = vld [vmem:[%s6275_s0 + $0x8] sm:$0xff] (!%p3812_p13)   ;;  %v3334_v7 = vld [vmem:[#allocation3 + $0x30] sm:$0xff] (!%p3812_p13) }
 0x47a   : > { %3186 = vst [vmem:[#allocation4 + $0x30] sm:$0xff] %v3170_v26  ;;  %v3171_v54 = vadd.f32 %v4016_v21, %v3042_v35  ;;  %v3330_v35 = vld [vmem:[#allocation3 + $0x10] sm:$0xff] (!%p3812_p13)  ;;  %v3328_v21 = vld [vmem:[#allocation3] sm:$0xff] (!%p3812_p13) }
 0x47c   : > { %3187 = vst [vmem:[#allocation4 + $0x38] sm:$0xff] %v3171_v54  ;;  %v4017_v31 = vpop.f32.mrb[48].mxu1  ;;  %3279 = vperm.xlu1 (!%p3812_p13), %4624, %v3225_v43   ;;  %3274 = vperm.xlu0 (!%p3812_p13), %4623, %v3224_v1   ;;  %v3835_v54 = vld [vmem:[%s6275_s0] sm:$0xff] (!%p3812_p13)  }
 0x47d   : > { %v4018_v53 = vpop.f32.mrb[49].mxu1 }
 0x47e   : > { %v4019_v52 = vadd.f32 %v4018_v53, %v4017_v31  ;;  %v4020_v49 = vpop.f32.mrb[50].mxu1 }
 0x47f   : > { %v4021_v13 = vpop.f32.mrb[51].mxu1 }
 0x480   : > { %v3172_v10 = vadd.f32 %v4019_v52, %v3043_v27  ;;  %v4022_v5 = vadd.f32 %v4021_v13, %v4020_v49  ;;  %3289 = vperm.xlu1 (!%p3812_p13), %4624, %v3227_v29   ;;  %3284 = vperm.xlu0 (!%p3812_p13), %4623, %v3226_v42   ;;  %v6131_v52 = vld [vmem:[%s6278_s3] ss:$0 sm:$0xff] (!%p3812_p13)  ;;  %v3203_v49 = vld [vmem:[#allocation4 + $0x18] sm:$0xff] (!%p3812_p13)  ;;  %v3840_v13 = vunpack.c.l.bf16 (!%p3812_p13), %v3866_v39 }
 0x482   : > { %3188 = vst [vmem:[#allocation4 + $0x40] sm:$0xff] %v3172_v10  ;;  %v3173_v41 = vadd.f32 %v4022_v5, %v3044_v38  ;;  %v3201_v38 = vld [vmem:[#allocation4 + $0x8] sm:$0xff] (!%p3812_p13)  ;;  %v3836_v5 = vunpack.c.l.bf16 (!%p3812_p13), %v3835_v54 }
 0x484   : > { %3189 = vst [vmem:[#allocation4 + $0x48] sm:$0xff] %v3173_v41  ;;  %v4023_v16 = vpop.f32.mrb[52].mxu1  ;;  %3299 = vperm.xlu1 (!%p3812_p13), %4624, %v3229_v60   ;;  %3294 = vperm.xlu0 (!%p3812_p13), %4623, %v3228_v28   ;;  %v3869_v28 = vld [vmem:[%s6275_s0 + $0x20] sm:$0xff] (!%p3812_p13)  }
 0x485   : > { %v4024_v15 = vpop.f32.mrb[53].mxu1 }
 0x486   : > { %v4025_v24 = vadd.f32 %v4024_v15, %v4023_v16  ;;  %v4026_v59 = vpop.f32.mrb[54].mxu1  ;;  %v3331_v16 = vld [vmem:[#allocation3 + $0x18] sm:$0xff] (!%p3812_p13)  ;;  %v3329_v15 = vld [vmem:[#allocation3 + $0x8] sm:$0xff] (!%p3812_p13) }
 0x487   : > { %v4027_v23 = vpop.f32.mrb[55].mxu1 }
 0x488   : > { %v3174_v20 = vadd.f32 %v4025_v24, %v3045_v61  ;;  %v4028_v63 = vadd.f32 %v4027_v23, %v4026_v59  ;;  %3309 = vperm.xlu1 (!%p3812_p13), %4624, %v3231_v14   ;;  %3304 = vperm.xlu0 (!%p3812_p13), %4623, %v3230_v57  }
 0x48a   : > { %3190 = vst [vmem:[#allocation4 + $0x50] sm:$0xff] %v3174_v20  ;;  %v3175_v44 = vadd.f32 %v4028_v63, %v3046_v12  ;;  %v3841_v63 = vunpack.c.h.bf16 (!%p3812_p13), %v3866_v39 }
 0x48c   : > { %3191 = vst [vmem:[#allocation4 + $0x58] sm:$0xff] %v3175_v44  ;;  %v4029_v11 = vpop.f32.mrb[56].mxu1  ;;  %v3837_v44 = vunpack.c.h.bf16 (!%p3812_p13), %v3835_v54  ;;  %v6163_v54 = vld [vmem:[%s6275_s0 + $0x28] sm:$0xff] (!%p3812_p13)  }
 0x48d   : > { %v4030_v45 = vpop.f32.mrb[57].mxu1 }
 0x48e   : > { %v4031_v22 = vadd.f32 %v4030_v45, %v4029_v11  ;;  %v4032_v47 = vpop.f32.mrb[58].mxu1 }
 0x48f   : > { %v4033_v18 = vpop.f32.mrb[59].mxu1 }
 0x490   : > { %v3176_v50 = vadd.f32 %v4031_v22, %v3047_v30  ;;  %v4034_v19 = vadd.f32 %v4033_v18, %v4032_v47  ;;  %v3205_v47 = vld [vmem:[#allocation4 + $0x28] sm:$0xff] (!%p3812_p13)  ;;  %v3867_v18 = vld [vmem:[%s6275_s0 + $0x10] sm:$0xff] (!%p3812_p13)  }
 0x491   : > { %v3845_v8 = vunpack.c.h.bf16 (!%p3812_p13), %v3867_v18  ;;  %v3844_v56 = vunpack.c.l.bf16 (!%p3812_p13), %v3867_v18  ;;  %v3856_v18 = vunpack.c.l.bf16 (!%p3812_p13), %v6163_v54 }
 0x492   : > { %3192 = vst [vmem:[#allocation4 + $0x60] sm:$0xff] %v3176_v50  ;;  %v3177_v0 = vadd.f32 %v4034_v19, %v3048_v32  ;;  %v3204_v32 = vld [vmem:[#allocation4 + $0x20] sm:$0xff] (!%p3812_p13) }
 0x494   : > { %3193 = vst [vmem:[#allocation4 + $0x68] sm:$0xff] %v3177_v0  ;;  %v4035_v37 = vpop.f32.mrb[60].mxu1 }
 0x495   : > { %v4036_v4 = vpop.f32.mrb[61].mxu1 }
 0x496   : > { %v4037_v36 = vadd.f32 %v4036_v4, %v4035_v37  ;;  %v4038_v55 = vpop.f32.mrb[62].mxu1  ;;  %3199 = sbr.rel (%p3812_p13) target bundleno = 1328 (0x530), region = 76 }
 0x497   : > { %v4039_v2 = vpop.f32.mrb[63].mxu1 }
 0x498   : > { %v3178_v33 = vadd.f32 %v4037_v36, %v3049_v9  ;;  %v4040_v48 = vadd.f32 %v4039_v2, %v4038_v55  ;;  %v3333_v36 = vld [vmem:[#allocation3 + $0x28] sm:$0xff] (!%p3812_p13)  ;;  %v3332_v55 = vld [vmem:[#allocation3 + $0x20] sm:$0xff] (!%p3812_p13) }
 0x49a   : > { %3194 = vst [vmem:[#allocation4 + $0x70] sm:$0xff] %v3178_v33  ;;  %v3179_v6 = vadd.f32 %v4040_v48, %v3050_v46  ;;  %v3207_v33 = vld [vmem:[#allocation4 + $0x38] sm:$0xff] (!%p3812_p13)  ;;  %v3206_v48 = vld [vmem:[#allocation4 + $0x30] sm:$0xff] (!%p3812_p13) }
 0x49c   : > { %3195 = vst [vmem:[#allocation4 + $0x78] sm:$0xff] %v3179_v6 }
 0x4eb   : > { %v3245_v26 = vpop.permute.xlu1 %3244  ;;  %v3235_v31 = vpop.permute.xlu0 %3234 }
 0x4ec   : > { %v3314_v27 = vmul.f32 %v3245_v26, %v3202_v58  ;;  %v3312_v53 = vmul.f32 %v3235_v31, %v3200_v17  ;;  %v3849_v58 = vunpack.c.h.bf16 %v3868_v34  ;;  %v3209_v17 = vld [vmem:[#allocation4 + $0x48] sm:$0xff]  ;;  %v3848_v26 = vunpack.c.l.bf16 %v3868_v34 }
 0x4ee   : > { %v3346_v10 = vadd.f32 %v3330_v35, %v3314_v27  ;;  %v3344_v41 = vadd.f32 %v3328_v21, %v3312_v53  ;;  %v3208_v35 = vld [vmem:[#allocation4 + $0x40] sm:$0xff]  ;;  %v3337_v53 = vld [vmem:[#allocation3 + $0x48] sm:$0xff] }
 0x4ef   : > { %v3250_v61 = vpop.permute.xlu1 %3249  ;;  %v3240_v24 = vpop.permute.xlu0 %3239 }
 0x4f0   : > { %v3369_v59 = vadd.f32 %v6131_v52, %v3346_v10  ;;  %v3367_v12 = vadd.f32 %v6131_v52, %v3344_v41  ;;  %v3315_v23 = vmul.f32 %v3250_v61, %v3203_v49  ;;  %v3313_v20 = vmul.f32 %v3240_v24, %v3201_v38 }
 0x4f1   : > { %v3853_v49 = vunpack.c.h.bf16 %v3869_v28 }
 0x4f2   : > { %v6135_v11 = vadd.f32 %v3840_v13, %v3369_v59  ;;  %v6137_v30 = vadd.f32 %v3836_v5, %v3367_v12  ;;  %v3347_v45 = vadd.f32 %v3331_v16, %v3315_v23  ;;  %v3345_v22 = vadd.f32 %v3329_v15, %v3313_v20  ;;  %v3336_v13 = vld [vmem:[#allocation3 + $0x40] sm:$0xff]  ;;  %v6174_v15 = vld [vmem:[%s6275_s0 + $0x30] sm:$0xff]  }
 0x4f3   : > { %v3260_v50 = vpop.permute.xlu1 %3259  ;;  %v3255_v19 = vpop.permute.xlu0 %3254  ;;  %v3852_v12 = vunpack.c.l.bf16 %v3869_v28  ;;  %v3857_v23 = vunpack.c.h.bf16 %v6163_v54 }
 0x4f4   : > { %v3816_v0 = vmul.f32 -1.442695, %v6135_v11  ;;  %v3814_v37 = vmul.f32 -1.442695, %v6137_v30  ;;  %v3370_v9 = vadd.f32 %v6131_v52, %v3347_v45  ;;  %v3368_v4 = vadd.f32 %v6131_v52, %v3345_v22  ;;  %v3211_v22 = vld [vmem:[#allocation4 + $0x58] sm:$0xff] }
 0x4f5   : > { %v3317_v46 = vmul.f32 %v3260_v50, %v3205_v47  ;;  %v3316_v2 = vmul.f32 %v3255_v19, %v3204_v32  ;;  %v3210_v47 = vld [vmem:[#allocation4 + $0x50] sm:$0xff]  ;;  %v3861_v19 = vunpack.c.h.bf16 %v6174_v15 }
 0x4f6   : > { %4625 = vpow2.f32 %v3816_v0  ;;  %v6146_v6 = vadd.f32 %v3841_v63, %v3370_v9  ;;  %v6148_v40 = vadd.f32 %v3837_v44, %v3368_v4  ;;  %v3860_v0 = vunpack.c.l.bf16 %v6174_v15 }
 0x4f7   : > { %4627 = vpow2.f32 %v3814_v37  ;;  %v3349_v62 = vadd.f32 %v3333_v36, %v3317_v46  ;;  %v3348_v3 = vadd.f32 %v3332_v55, %v3316_v2  ;;  %v3270_v51 = vpop.permute.xlu1 %3269  ;;  %v3265_v43 = vpop.permute.xlu0 %3264  ;;  %v6189_v37 = vld [vmem:[%s6275_s0 + $0x38] sm:$0xff]   ;;  %v3338_v2 = vld [vmem:[#allocation3 + $0x50] sm:$0xff] }
 0x4f8   : > { %v3817_v1 = vmul.f32 -1.442695, %v6146_v6  ;;  %v3815_v29 = vmul.f32 -1.442695, %v6148_v40  ;;  %v3319_v42 = vmul.f32 %v3270_v51, %v3207_v33  ;;  %v3318_v60 = vmul.f32 %v3265_v43, %v3206_v48  ;;  %v3339_v46 = vld [vmem:[#allocation3 + $0x58] sm:$0xff] }
 0x4f9   : > { %v3372_v14 = vadd.f32 %v6131_v52, %v3349_v62  ;;  %v3371_v57 = vadd.f32 %v6131_v52, %v3348_v3  ;;  %v3212_v3 = vld [vmem:[#allocation4 + $0x60] sm:$0xff] }
 0x4fa   : > { %4629 = vpow2.f32 %v3817_v1  ;;  %v3351_v39 = vadd.f32 %v3335_v25, %v3319_v42  ;;  %v3350_v21 = vadd.f32 %v3334_v7, %v3318_v60  ;;  %v3865_v7 = vunpack.c.h.bf16 %v6189_v37  ;;  %v3341_v42 = vld [vmem:[#allocation3 + $0x68] sm:$0xff] }
 0x4fb   : > { %4631 = vpow2.f32 %v3815_v29  ;;  %v6165_v31 = vadd.f32 %v3845_v8, %v3372_v14  ;;  %v6167_v27 = vadd.f32 %v3844_v56, %v3371_v57  ;;  %v3280_v38 = vpop.permute.xlu1 %3279  ;;  %v3275_v10 = vpop.permute.xlu0 %3274  ;;  %v3213_v56 = vld [vmem:[#allocation4 + $0x68] sm:$0xff] }
 0x4fc   : > { %v3374_v5 = vadd.f32 %v6131_v52, %v3351_v39  ;;  %v3373_v41 = vadd.f32 %v6131_v52, %v3350_v21  ;;  %v3321_v16 = vmul.f32 %v3280_v38, %v3209_v17  ;;  %v3320_v61 = vmul.f32 %v3275_v10, %v3208_v35  ;;  %v3340_v17 = vld [vmem:[#allocation3 + $0x60] sm:$0xff]  ;;  %v3214_v10 = vld [vmem:[#allocation4 + $0x70] sm:$0xff] }
 0x4fd   : > { %v3819_v24 = vmul.f32 -1.442695, %v6165_v31  ;;  %v3818_v59 = vmul.f32 -1.442695, %v6167_v27 }
 0x4fe   : > { %v6179_v20 = vadd.f32 %v3849_v58, %v3374_v5  ;;  %v6181_v63 = vadd.f32 %v3848_v26, %v3373_v41  ;;  %v3353_v44 = vadd.f32 %v3337_v53, %v3321_v16  ;;  %v3352_v45 = vadd.f32 %v3336_v13, %v3320_v61  ;;  %v3215_v53 = vld [vmem:[#allocation4 + $0x78] sm:$0xff] }
 0x4ff   : > { %4633 = vpow2.f32 %v3819_v24  ;;  %v3290_v32 = vpop.permute.xlu1 %3289  ;;  %v3285_v50 = vpop.permute.xlu0 %3284  ;;  %v3343_v16 = vld [vmem:[#allocation3 + $0x78] sm:$0xff]  ;;  %v3864_v24 = vunpack.c.l.bf16 %v6189_v37 }
 0x500   : > { %v4626_v9 = vpop.eup %4625  ;;  %4635 = vpow2.f32 %v3818_v59  ;;  %v3821_v4 = vmul.f32 -1.442695, %v6179_v20  ;;  %v3820_v36 = vmul.f32 -1.442695, %v6181_v63  ;;  %v3376_v55 = vadd.f32 %v6131_v52, %v3353_v44 }
 0x501   : > { %v4628_v33 = vpop.eup %4627  ;;  %v3481_v48 = vadd.f32 1.0, %v4626_v9  ;;  %v3375_v8 = vadd.f32 %v6131_v52, %v3352_v45  ;;  %v3323_v34 = vmul.f32 %v3290_v32, %v3211_v22  ;;  %v3322_v62 = vmul.f32 %v3285_v50, %v3210_v47  ;;  %v3342_v22 = vld [vmem:[#allocation3 + $0x70] sm:$0xff] }
 0x502   : > { %v3479_v25 = vadd.f32 1.0, %v4628_v33  ;;  %4637 = vpow2.f32 %v3821_v4  ;;  %v6195_v51 = vadd.f32 %v3853_v49, %v3376_v55 }
 0x503   : > { %4639 = vrcp.f32 %v3481_v48  ;;  %v6198_v43 = vadd.f32 %v3852_v12, %v3375_v8  ;;  %v3355_v1 = vadd.f32 %v3339_v46, %v3323_v34  ;;  %v3354_v29 = vadd.f32 %v3338_v2, %v3322_v62  ;;  %v3300_v60 = vpop.permute.xlu1 %3299  ;;  %v3295_v28 = vpop.permute.xlu0 %3294 }
 0x504   : > { %v4630_v14 = vpop.eup %4629  ;;  %4641 = vrcp.f32 %v3479_v25  ;;  %v3823_v57 = vmul.f32 -1.442695, %v6195_v51  ;;  %v3325_v58 = vmul.f32 %v3300_v60, %v3213_v56  ;;  %v3324_v35 = vmul.f32 %v3295_v28, %v3212_v3 }
 0x505   : > { %v4632_v39 = vpop.eup %4631  ;;  %v3482_v26 = vadd.f32 1.0, %v4630_v14  ;;  %4643 = vpow2.f32 %v3820_v36  ;;  %v3822_v21 = vmul.f32 -1.442695, %v6198_v43  ;;  %v3378_v54 = vadd.f32 %v6131_v52, %v3355_v1 }
 0x506   : > { %v3480_v49 = vadd.f32 1.0, %v4632_v39  ;;  %4645 = vpow2.f32 %v3823_v57  ;;  %v3377_v38 = vadd.f32 %v6131_v52, %v3354_v29  ;;  %v3357_v13 = vadd.f32 %v3341_v42, %v3325_v58 }
 0x507   : > { %4647 = vrcp.f32 %v3482_v26  ;;  %v6204_v5 = vadd.f32 %v3857_v23, %v3378_v54  ;;  %v3356_v41 = vadd.f32 %v3340_v17, %v3324_v35  ;;  %v3310_v61 = vpop.permute.xlu1 %3309  ;;  %v3305_v59 = vpop.permute.xlu0 %3304 }
 0x508   : > { %4649 = vrcp.f32 %v3480_v49  ;;  %v6207_v12 = vadd.f32 %v3856_v18, %v3377_v38  ;;  %v3380_v44 = vadd.f32 %v6131_v52, %v3357_v13  ;;  %v3327_v45 = vmul.f32 %v3310_v61, %v3215_v53 }
 0x509   : > { %v4634_v47 = vpop.eup %4633  ;;  %4651 = vpow2.f32 %v3822_v21  ;;  %v3825_v32 = vmul.f32 -1.442695, %v6204_v5  ;;  %v3379_v23 = vadd.f32 %v6131_v52, %v3356_v41  ;;  %v3326_v50 = vmul.f32 %v3305_v59, %v3214_v10 }
 0x50a   : > { %v4636_v9 = vpop.eup %4635  ;;  %v3484_v4 = vadd.f32 1.0, %v4634_v47  ;;  %v3824_v36 = vmul.f32 -1.442695, %v6207_v12  ;;  %v6215_v55 = vadd.f32 %v3861_v19, %v3380_v44  ;;  %v3359_v18 = vadd.f32 %v3343_v16, %v3327_v45 }
 0x50b   : > { %v3483_v46 = vadd.f32 1.0, %v4636_v9  ;;  %4653 = vpow2.f32 %v3825_v32  ;;  %v6219_v2 = vadd.f32 %v3860_v0, %v3379_v23  ;;  %v3358_v33 = vadd.f32 %v3342_v22, %v3326_v50 }
 0x50c   : > { %v4638_v48 = vpop.eup %4637  ;;  %4655 = vrcp.f32 %v3484_v4  ;;  %v3827_v8 = vmul.f32 -1.442695, %v6215_v55  ;;  %v3382_v34 = vadd.f32 %v6131_v52, %v3359_v18 }
 0x50d   : > { %v4640_v62 = vpop.eup %4639  ;;  %4657 = vrcp.f32 %v3483_v46  ;;  %v3486_v56 = vadd.f32 1.0, %v4638_v48  ;;  %v3826_v19 = vmul.f32 -1.442695, %v6219_v2  ;;  %v3381_v3 = vadd.f32 %v6131_v52, %v3358_v33 }
 0x50e   : > { %v4642_v25 = vpop.eup %4641  ;;  %v3529_v1 = vmul.f32 %v4640_v62, %v6135_v11  ;;  %4659 = vpow2.f32 %v3824_v36  ;;  %v6228_v15 = vadd.f32 %v3865_v7, %v3382_v34 }
 0x50f   : > { %v4644_v0 = vpop.eup %4643  ;;  %v3527_v29 = vmul.f32 %v4642_v25, %v6137_v30  ;;  %4661 = vrcp.f32 %v3486_v56  ;;  %v6231_v42 = vadd.f32 %v3864_v24, %v3381_v3 }
 0x510   : > { %v4646_v60 = vpop.eup %4645  ;;  %3545 = vst [vmem:[#allocation10 + $0x10] sm:$0xff] %v3529_v1  ;;  %v3485_v28 = vadd.f32 1.0, %v4644_v0  ;;  %4663 = vpow2.f32 %v3827_v8  ;;  %v3829_v52 = vmul.f32 -1.442695, %v6228_v15 }
 0x511   : > { %v4648_v14 = vpop.eup %4647  ;;  %3543 = vst [vmem:[#allocation10] sm:$0xff] %v3527_v29  ;;  %v3488_v11 = vadd.f32 1.0, %v4646_v60  ;;  %4665 = vpow2.f32 %v3826_v19  ;;  %v3828_v37 = vmul.f32 -1.442695, %v6231_v42 }
 0x512   : > { %v4650_v7 = vpop.eup %4649  ;;  %v3530_v57 = vmul.f32 %v4648_v14, %v6146_v6  ;;  %4667 = vrcp.f32 %v3485_v28 }
 0x513   : > { %v4652_v30 = vpop.eup %4651  ;;  %v3528_v58 = vmul.f32 %v4650_v7, %v6148_v40  ;;  %4669 = vrcp.f32 %v3488_v11 }
 0x514   : > { %3546 = vst [vmem:[#allocation10 + $0x18] sm:$0xff] %v3530_v57  ;;  %v3487_v17 = vadd.f32 1.0, %v4652_v30  ;;  %4671 = vpow2.f32 %v3829_v52 }
 0x515   : > { %v4654_v35 = vpop.eup %4653  ;;  %3544 = vst [vmem:[#allocation10 + $0x8] sm:$0xff] %v3528_v58  ;;  %4673 = vpow2.f32 %v3828_v37 }
 0x516   : > { %v4656_v39 = vpop.eup %4655  ;;  %4675 = vrcp.f32 %v3487_v17  ;;  %v3490_v26 = vadd.f32 1.0, %v4654_v35 }
 0x517   : > { %v4658_v21 = vpop.eup %4657  ;;  %v3532_v54 = vmul.f32 %v4656_v39, %v6165_v31 }
 0x518   : > { %v4660_v53 = vpop.eup %4659  ;;  %v3531_v6 = vmul.f32 %v4658_v21, %v6167_v27  ;;  %4677 = vrcp.f32 %v3490_v26 }
 0x519   : > { %v4662_v49 = vpop.eup %4661  ;;  %3548 = vst [vmem:[#allocation10 + $0x28] sm:$0xff] %v3532_v54  ;;  %v3489_v40 = vadd.f32 1.0, %v4660_v53 }
 0x51a   : > { %v4664_v38 = vpop.eup %4663  ;;  %3547 = vst [vmem:[#allocation10 + $0x20] sm:$0xff] %v3531_v6  ;;  %v3534_v13 = vmul.f32 %v4662_v49, %v6179_v20 }
 0x51b   : > { %v4666_v10 = vpop.eup %4665  ;;  %4679 = vrcp.f32 %v3489_v40  ;;  %v3492_v41 = vadd.f32 1.0, %v4664_v38 }
 0x51c   : > { %v4668_v16 = vpop.eup %4667  ;;  %3550 = vst [vmem:[#allocation10 + $0x38] sm:$0xff] %v3534_v13  ;;  %v3491_v61 = vadd.f32 1.0, %v4666_v10 }
 0x51d   : > { %v4670_v24 = vpop.eup %4669  ;;  %v3533_v31 = vmul.f32 %v4668_v16, %v6181_v63  ;;  %4681 = vrcp.f32 %v3492_v41 }
 0x51e   : > { %v4672_v59 = vpop.eup %4671  ;;  %v3536_v27 = vmul.f32 %v4670_v24, %v6195_v51  ;;  %4683 = vrcp.f32 %v3491_v61 }
 0x51f   : > { %v4674_v44 = vpop.eup %4673  ;;  %3549 = vst [vmem:[#allocation10 + $0x30] sm:$0xff] %v3533_v31  ;;  %v3494_v45 = vadd.f32 1.0, %v4672_v59 }
 0x520   : > { %v4676_v22 = vpop.eup %4675  ;;  %3552 = vst [vmem:[#allocation10 + $0x48] sm:$0xff] %v3536_v27  ;;  %v3493_v20 = vadd.f32 1.0, %v4674_v44 }
 0x521   : > { %v3535_v47 = vmul.f32 %v4676_v22, %v6198_v43  ;;  %4685 = vrcp.f32 %v3494_v45 }
 0x522   : > { %v4678_v32 = vpop.eup %4677  ;;  %4687 = vrcp.f32 %v3493_v20 }
 0x523   : > { %3551 = vst [vmem:[#allocation10 + $0x40] sm:$0xff] %v3535_v47  ;;  %v3538_v23 = vmul.f32 %v4678_v32, %v6204_v5 }
 0x525   : > { %v4680_v63 = vpop.eup %4679  ;;  %3554 = vst [vmem:[#allocation10 + $0x58] sm:$0xff] %v3538_v23 }
 0x526   : > { %v3537_v50 = vmul.f32 %v4680_v63, %v6207_v12 }
 0x527   : > { %v4682_v51 = vpop.eup %4681 }
 0x528   : > { %v4684_v9 = vpop.eup %4683  ;;  %3553 = vst [vmem:[#allocation10 + $0x50] sm:$0xff] %v3537_v50  ;;  %v3540_v4 = vmul.f32 %v4682_v51, %v6215_v55 }
 0x529   : > { %v3539_v36 = vmul.f32 %v4684_v9, %v6219_v2 }
 0x52a   : > { %3556 = vst [vmem:[#allocation10 + $0x68] sm:$0xff] %v3540_v4 }
 0x52b   : > { %v4686_v18 = vpop.eup %4685  ;;  %3555 = vst [vmem:[#allocation10 + $0x60] sm:$0xff] %v3539_v36 }
 0x52c   : > { %v4688_v43 = vpop.eup %4687  ;;  %v3542_v46 = vmul.f32 %v4686_v18, %v6228_v15 }
 0x52d   : > { %v3541_v33 = vmul.f32 %v4688_v43, %v6231_v42 }
 0x52e   : > { %3558 = vst [vmem:[#allocation10 + $0x78] sm:$0xff] %v3542_v46 }
 0x52f   : > { %3557 = vst [vmem:[#allocation10 + $0x70] sm:$0xff] %v3541_v33 }
 0x530 PF: > { %p4336_p0 = scmp.eq.s32.totalorder %s4837_s14, 1  ;;  %s4773_s23 = smov [#allocation10]  }
 0x531   : > { %s3565_s24 = sshll.u32 %s4773_s23, 4  ;;  %s3566_s24 = int_to_ptr.vmem [resolvable:$true] %s3565_s24 }
 0x532   : > { %s4719_s12 = scalar_lea.vmem %s3566_s24, 2048  ;;  %p4726_p9 = scmp.lt.s32.totalorder %s3566_s24, %s3566_s24 }
 0x533   : > { %p4720_p1 = scmp.ne.s32.totalorder %s3566_s24, %s4719_s12  ;;  %p4727_p10 = scmp.lt.s32.totalorder %s4719_s12, %s4719_s12 }
 0x535   : > { %p4721_p5 = pnand %p4720_p1, %p4336_p0  ;;  %p4728_p11 = por %p4727_p10, %p4726_p9 }
 0x537   : > { %p4722_p7 = pneg %p4721_p5 }
 0x539   : > { %p4729_p12 = pnand %p4728_p11, %p4722_p7 }
 0x53b   : > { %4732 = shalt.err (!%p4729_p12)
}
 0x53c   : > { %s4733_s17 = scalar_lea.hbm %s6285_s10, 2048 }
 0x53d   : > { %p4734_p8 = scmp.ne.s32.totalorder %s6285_s10, %s4733_s17  ;;  %p4739_p4 = scmp.lt.u32.totalorder %s4733_s17, %s6285_s10 }
 0x53f   : > { %p4735_p3 = pnand %p4734_p8, %p4336_p0 }
 0x541   : > { %p4736_p2 = pneg %p4735_p3 }
 0x543   : > { %p4741_p6 = pnand %p4739_p4, %p4736_p2 }
 0x545   : > { %4744 = shalt.err (!%p4741_p6)
}
 0x546   : > { %s4774_s30 = smov 128   ;;  %s4775_s11 = smov 8  }
 0x547   : > { %4322 = dma.vmem_to_hbm [thread:$0]  (%p4336_p0), %s3566_s24, 2048, %s6285_s10, [#allocation6], %s4774_s30, %s4774_s30, %s4775_s11  }
 0x548   : > { %4758 = dma.done.wait (%p4336_p0), [#allocation6], 2048  }
 0x549   : > { %4760 = vsyncadd (%p4336_p0), [#allocation6], 4294965248 }
 0x54a PF: > { %s23_s13 = sadd.s32 1, %s4763_s13  }
 0x54b   : > { %p20_p13 = scmp.ge.s32.totalorder %s23_s13, 4  }
 0x54d   :  { %22 = sbr.rel (!%p20_p13) target bundleno = 3 (0x3), region = 110 }
 0x554   :  { %3581 = vsyncpa [#allocation6], 1 }
 0x555   :  { %3583 = vsyncpa [#allocation6 + $0x1], 1 }
 0x556   :  { %3584 = vsyncpa [#allocation7], 1 }
 0x557   :  { %3586 = vsyncpa [#allocation7 + $0x1], 1 }
 0x558   :  { %3587 = vsyncpa [#allocation9], 1 }

</bundles_post_ra>
